<compile_context>
chip_gen: v6e
topology: v6e:2x2x1
jax: 0.10.0
libtpu: 0.0.40
codegen_flags: <defaults>
</compile_context>

<pallas_src>
import jax
import jax.numpy as jnp
from jax.experimental import pallas as pl
from jax.experimental.pallas import tpu as pltpu

N_IN = 642                      # level-4 icosahedron (fine mesh)
N_OUT = (N_IN + 6) // 4         # 162 (coarse mesh after mean pooling)
IN_CH = 8
OUT_CH = 16
BN_EPS = 1e-5
LEAKY_SLOPE = 0.2

_VMEM = pl.BlockSpec(memory_space=pltpu.MemorySpace.VMEM)


# ------------------------------ Pallas kernel ------------------------------

def _down_block_kernel(x_ref, poolT_ref, ohT_ref,
                       w1_ref, b1_ref, g1_ref, be1_ref,
                       w2_ref, b2_ref, g2_ref, be2_ref,
                       out_ref):
    """Fused mean-pool -> (conv -> BN -> LeakyReLU) x 2, channels-first layout.

    x_ref:     (IN_CH, N_IN)      f32   input features, transposed to (C, N)
    poolT_ref: (N_IN, N_OUT)      bf16  pooling count matrix (column v = counts
                                        of the 7 pooling neighbours of vertex v)
    ohT_ref:   (7, N_OUT, N_OUT)  bf16  one-ring gather one-hots, transposed
    w1_ref:    (OUT_CH, 7*IN_CH)  f32   conv1 = Linear(7*in_ch, out_ch) weight
    b1/g1/be1: (OUT_CH, 1)        f32   conv1 bias, BN1 gamma, BN1 beta
    w2_ref:    (OUT_CH, 7*OUT_CH) f32
    b2/g2/be2: (OUT_CH, 1)        f32
    out_ref:   (OUT_CH, N_OUT)    f32
    """
    x = x_ref[...]                                             # (Cin, N_in) f32
    poolT = poolT_ref[...].astype(jnp.float32)                 # (N_in, N_out)
    # mean pooling over 7 fine-mesh neighbours: count-matmul, then * 1/7
    h = jnp.dot(x, poolT, preferred_element_type=jnp.float32) * (1.0 / 7.0)

    def conv_bn_lrelu(h, w_ref, b_ref, g_ref, be_ref):
        # one-ring gather as 7 small one-hot matmuls (K = N_OUT, lane-dense),
        # stacked so that G[j*C + c, v] = h[c, neigh_orders[v*7 + j]]
        taps = [jnp.dot(h, ohT_ref[j].astype(jnp.float32),
                        preferred_element_type=jnp.float32)    # (C, N_out)
                for j in range(7)]
        gmat = jnp.concatenate(taps, axis=0)                   # (7*C, N_out)
        # single conv matmul (== Linear(7*C, Cout)) + bias
        y = jnp.dot(w_ref[...], gmat,
                    preferred_element_type=jnp.float32) + b_ref[...]
        # BatchNorm1d over the vertex ("batch") axis: batch stats, biased var,
        # affine gamma/beta (track_running_stats=False in the module).
        mean = jnp.mean(y, axis=1, keepdims=True)
        var = jnp.mean((y - mean) ** 2, axis=1, keepdims=True)
        yh = (y - mean) / jnp.sqrt(var + BN_EPS)
        yh = yh * g_ref[...] + be_ref[...]
        # LeakyReLU(0.2)
        return jnp.where(yh > 0, yh, LEAKY_SLOPE * yh)

    h = conv_bn_lrelu(h, w1_ref, b1_ref, g1_ref, be1_ref)
    out_ref[...] = conv_bn_lrelu(h, w2_ref, b2_ref, g2_ref, be2_ref)


# ------------------------------ host wrapper -------------------------------

def down_block_forward(x, kp):
    """x: (N_IN, IN_CH) f32  ->  (N_OUT, OUT_CH) f32 (same layout as PyTorch)."""
    args = (x.T, kp["poolT"], kp["ohT"],
            kp["w1"], kp["b1"], kp["g1"], kp["be1"],
            kp["w2"], kp["b2"], kp["g2"], kp["be2"])
    out_t = pl.pallas_call(
        _down_block_kernel,
        out_shape=jax.ShapeDtypeStruct((OUT_CH, N_OUT), jnp.float32),
        in_specs=[_VMEM] * len(args),
        out_specs=_VMEM,
        compiler_params=pltpu.CompilerParams(vmem_limit_bytes=32 * 1024 * 1024),
    )(*args)
    # kernel emits the lane-dense (C, N) slab; transpose back to module layout
    return out_t.T


# ------------------------- params / topology (glue) -------------------------

def init_raw_params(key):
    """Deterministic synthetic params (PyTorch shapes) + synthetic mesh topology."""
    ks = jax.random.split(key, 10)
    raw = {
        "conv1_w": 0.1 * jax.random.normal(ks[0], (OUT_CH, 7 * IN_CH), jnp.float32),
        "conv1_b": 0.1 * jax.random.normal(ks[1], (OUT_CH,), jnp.float32),
        "bn1_g": 1.0 + 0.1 * jax.random.normal(ks[2], (OUT_CH,), jnp.float32),
        "bn1_b": 0.1 * jax.random.normal(ks[3], (OUT_CH,), jnp.float32),
        "conv2_w": 0.1 * jax.random.normal(ks[4], (OUT_CH, 7 * OUT_CH), jnp.float32),
        "conv2_b": 0.1 * jax.random.normal(ks[5], (OUT_CH,), jnp.float32),
        "bn2_g": 1.0 + 0.1 * jax.random.normal(ks[6], (OUT_CH,), jnp.float32),
        "bn2_b": 0.1 * jax.random.normal(ks[7], (OUT_CH,), jnp.float32),
    }
    # synthetic stand-ins for Get_neighs_order(): flat (N*7,) index tables,
    # self vertex included as the first of the 7 entries.
    neigh = jax.random.randint(ks[8], (N_OUT, 7), 0, N_OUT, dtype=jnp.int32)
    neigh = neigh.at[:, 0].set(jnp.arange(N_OUT, dtype=jnp.int32)).reshape(-1)
    pool_neigh = jax.random.randint(ks[9], (N_OUT, 7), 0, N_IN, dtype=jnp.int32)
    pool_neigh = pool_neigh.at[:, 0].set(jnp.arange(N_OUT, dtype=jnp.int32)).reshape(-1)
    return raw, neigh, pool_neigh


def pack_kernel_params(raw, neigh, pool_neigh):
    """Re-layout params into kernel-friendly (channels-first, bf16 gather) tensors."""
    # pooling count matrix, transposed to (N_IN, N_OUT); small integer counts
    # are exact in bf16 (cast back to f32 inside the kernel).
    pool_counts = jax.nn.one_hot(pool_neigh.reshape(N_OUT, 7), N_IN,
                                 dtype=jnp.float32).sum(axis=1)          # (N_OUT, N_IN)
    # one-ring gather one-hots, transposed: ohT[j, u, v] = 1 iff neigh[v*7+j] == u
    oh = jax.nn.one_hot(neigh.reshape(N_OUT, 7), N_OUT, dtype=jnp.float32)  # (v, j, u)
    return {
        "poolT": pool_counts.T.astype(jnp.bfloat16),                     # (N_IN, N_OUT)
        "ohT": jnp.transpose(oh, (1, 2, 0)).astype(jnp.bfloat16),        # (7, u, v)
        "w1": raw["conv1_w"], "b1": raw["conv1_b"].reshape(OUT_CH, 1),
        "g1": raw["bn1_g"].reshape(OUT_CH, 1), "be1": raw["bn1_b"].reshape(OUT_CH, 1),
        "w2": raw["conv2_w"], "b2": raw["conv2_b"].reshape(OUT_CH, 1),
        "g2": raw["bn2_g"].reshape(OUT_CH, 1), "be2": raw["bn2_b"].reshape(OUT_CH, 1),
    }


def ref_forward(x, raw, neigh, pool_neigh):
    """Pure-JAX reference mirroring the PyTorch ops (index-gather based)."""
    # pool_layer(pool_neigh_orders, 'mean')
    h = x[pool_neigh.reshape(N_OUT, 7)].mean(axis=1)                    # (N_OUT, IN_CH)
    for i in (1, 2):
        g = h[neigh.reshape(N_OUT, 7)].reshape(N_OUT, -1)               # one-ring gather
        y = g @ raw[f"conv{i}_w"].T + raw[f"conv{i}_b"]                 # Linear(7*C, Cout)
        mean = y.mean(axis=0, keepdims=True)
        var = ((y - mean) ** 2).mean(axis=0, keepdims=True)
        yh = (y - mean) / jnp.sqrt(var + BN_EPS)
        yh = yh * raw[f"bn{i}_g"] + raw[f"bn{i}_b"]
        h = jnp.where(yh > 0, yh, LEAKY_SLOPE * yh)
    return h


if __name__ == "__main__":
    key = jax.random.PRNGKey(0)
    k_param, k_x = jax.random.split(key)
    raw, neigh, pool_neigh = init_raw_params(k_param)
    kp = pack_kernel_params(raw, neigh, pool_neigh)

    x = jax.random.normal(k_x, (N_IN, IN_CH), jnp.float32)

    out = jax.block_until_ready(down_block_forward(x, kp))
    assert out.shape == (N_OUT, OUT_CH) and out.dtype == jnp.float32

    ref = jax.block_until_ready(ref_forward(x, raw, neigh, pool_neigh))
    assert jnp.allclose(out, ref, rtol=2e-3, atol=2e-3), "mismatch vs JAX reference"

    print("KERNEL_OK")
</pallas_src>

<mosaic_0001>
module attributes {stable_mosaic.version = 11 : i64} {
  func.func @_down_block_kernel(%arg0: memref<8x642xf32, #tpu.memory_space<vmem>>, %arg1: memref<642x162xbf16, #tpu.memory_space<vmem>>, %arg2: memref<7x162x162xbf16, #tpu.memory_space<vmem>>, %arg3: memref<16x56xf32, #tpu.memory_space<vmem>>, %arg4: memref<16x1xf32, #tpu.memory_space<vmem>>, %arg5: memref<16x1xf32, #tpu.memory_space<vmem>>, %arg6: memref<16x1xf32, #tpu.memory_space<vmem>>, %arg7: memref<16x112xf32, #tpu.memory_space<vmem>>, %arg8: memref<16x1xf32, #tpu.memory_space<vmem>>, %arg9: memref<16x1xf32, #tpu.memory_space<vmem>>, %arg10: memref<16x1xf32, #tpu.memory_space<vmem>>, %arg11: memref<16x162xf32, #tpu.memory_space<vmem>>) attributes {dimension_semantics = [], scalar_prefetch = 0 : i64, scratch_operands = 0 : i64, tpu.core_type = #tpu.core_type<tc>} {
    %c0 = arith.constant 0 : index
    %c0_0 = arith.constant 0 : index
    %0 = vector.load %arg0[%c0, %c0_0] : memref<8x642xf32, #tpu.memory_space<vmem>>, vector<8x642xf32>
    %c0_1 = arith.constant 0 : index
    %c0_2 = arith.constant 0 : index
    %1 = vector.load %arg1[%c0_1, %c0_2] : memref<642x162xbf16, #tpu.memory_space<vmem>>, vector<642x162xbf16>
    %2 = arith.extf %1 : vector<642x162xbf16> to vector<642x162xf32>
    %cst = arith.constant dense<0.000000e+00> : vector<8x162xf32>
    %3 = tpu.matmul %0, %2, %cst {dimension_numbers = #tpu.dot_dimension_numbers<[1], [0], [0], [1], [0, 0, 1, 1], [], []>} : vector<8x642xf32>, vector<642x162xf32>, vector<8x162xf32> -> vector<8x162xf32>
    %cst_3 = arith.constant 0.142857149 : f32
    %4 = vector.broadcast %cst_3 : f32 to vector<8x162xf32>
    %5 = arith.mulf %3, %4 : vector<8x162xf32>
    %c0_4 = arith.constant 0 : index
    %c0_5 = arith.constant 0 : index
    %c0_6 = arith.constant 0 : index
    %6 = vector.load %arg2[%c0_4, %c0_5, %c0_6] : memref<7x162x162xbf16, #tpu.memory_space<vmem>>, vector<1x162x162xbf16>
    %7 = vector.shape_cast %6 : vector<1x162x162xbf16> to vector<162x162xbf16>
    %8 = arith.extf %7 : vector<162x162xbf16> to vector<162x162xf32>
    %cst_7 = arith.constant dense<0.000000e+00> : vector<8x162xf32>
    %9 = tpu.matmul %5, %8, %cst_7 {dimension_numbers = #tpu.dot_dimension_numbers<[1], [0], [0], [1], [0, 0, 1, 1], [], []>} : vector<8x162xf32>, vector<162x162xf32>, vector<8x162xf32> -> vector<8x162xf32>
    %c1 = arith.constant 1 : index
    %c0_8 = arith.constant 0 : index
    %c0_9 = arith.constant 0 : index
    %10 = vector.load %arg2[%c1, %c0_8, %c0_9] : memref<7x162x162xbf16, #tpu.memory_space<vmem>>, vector<1x162x162xbf16>
    %11 = vector.shape_cast %10 : vector<1x162x162xbf16> to vector<162x162xbf16>
    %12 = arith.extf %11 : vector<162x162xbf16> to vector<162x162xf32>
    %cst_10 = arith.constant dense<0.000000e+00> : vector<8x162xf32>
    %13 = tpu.matmul %5, %12, %cst_10 {dimension_numbers = #tpu.dot_dimension_numbers<[1], [0], [0], [1], [0, 0, 1, 1], [], []>} : vector<8x162xf32>, vector<162x162xf32>, vector<8x162xf32> -> vector<8x162xf32>
    %c2 = arith.constant 2 : index
    %c0_11 = arith.constant 0 : index
    %c0_12 = arith.constant 0 : index
    %14 = vector.load %arg2[%c2, %c0_11, %c0_12] : memref<7x162x162xbf16, #tpu.memory_space<vmem>>, vector<1x162x162xbf16>
    %15 = vector.shape_cast %14 : vector<1x162x162xbf16> to vector<162x162xbf16>
    %16 = arith.extf %15 : vector<162x162xbf16> to vector<162x162xf32>
    %cst_13 = arith.constant dense<0.000000e+00> : vector<8x162xf32>
    %17 = tpu.matmul %5, %16, %cst_13 {dimension_numbers = #tpu.dot_dimension_numbers<[1], [0], [0], [1], [0, 0, 1, 1], [], []>} : vector<8x162xf32>, vector<162x162xf32>, vector<8x162xf32> -> vector<8x162xf32>
    %c3 = arith.constant 3 : index
    %c0_14 = arith.constant 0 : index
    %c0_15 = arith.constant 0 : index
    %18 = vector.load %arg2[%c3, %c0_14, %c0_15] : memref<7x162x162xbf16, #tpu.memory_space<vmem>>, vector<1x162x162xbf16>
    %19 = vector.shape_cast %18 : vector<1x162x162xbf16> to vector<162x162xbf16>
    %20 = arith.extf %19 : vector<162x162xbf16> to vector<162x162xf32>
    %cst_16 = arith.constant dense<0.000000e+00> : vector<8x162xf32>
    %21 = tpu.matmul %5, %20, %cst_16 {dimension_numbers = #tpu.dot_dimension_numbers<[1], [0], [0], [1], [0, 0, 1, 1], [], []>} : vector<8x162xf32>, vector<162x162xf32>, vector<8x162xf32> -> vector<8x162xf32>
    %c4 = arith.constant 4 : index
    %c0_17 = arith.constant 0 : index
    %c0_18 = arith.constant 0 : index
    %22 = vector.load %arg2[%c4, %c0_17, %c0_18] : memref<7x162x162xbf16, #tpu.memory_space<vmem>>, vector<1x162x162xbf16>
    %23 = vector.shape_cast %22 : vector<1x162x162xbf16> to vector<162x162xbf16>
    %24 = arith.extf %23 : vector<162x162xbf16> to vector<162x162xf32>
    %cst_19 = arith.constant dense<0.000000e+00> : vector<8x162xf32>
    %25 = tpu.matmul %5, %24, %cst_19 {dimension_numbers = #tpu.dot_dimension_numbers<[1], [0], [0], [1], [0, 0, 1, 1], [], []>} : vector<8x162xf32>, vector<162x162xf32>, vector<8x162xf32> -> vector<8x162xf32>
    %c5 = arith.constant 5 : index
    %c0_20 = arith.constant 0 : index
    %c0_21 = arith.constant 0 : index
    %26 = vector.load %arg2[%c5, %c0_20, %c0_21] : memref<7x162x162xbf16, #tpu.memory_space<vmem>>, vector<1x162x162xbf16>
    %27 = vector.shape_cast %26 : vector<1x162x162xbf16> to vector<162x162xbf16>
    %28 = arith.extf %27 : vector<162x162xbf16> to vector<162x162xf32>
    %cst_22 = arith.constant dense<0.000000e+00> : vector<8x162xf32>
    %29 = tpu.matmul %5, %28, %cst_22 {dimension_numbers = #tpu.dot_dimension_numbers<[1], [0], [0], [1], [0, 0, 1, 1], [], []>} : vector<8x162xf32>, vector<162x162xf32>, vector<8x162xf32> -> vector<8x162xf32>
    %c6 = arith.constant 6 : index
    %c0_23 = arith.constant 0 : index
    %c0_24 = arith.constant 0 : index
    %30 = vector.load %arg2[%c6, %c0_23, %c0_24] : memref<7x162x162xbf16, #tpu.memory_space<vmem>>, vector<1x162x162xbf16>
    %31 = vector.shape_cast %30 : vector<1x162x162xbf16> to vector<162x162xbf16>
    %32 = arith.extf %31 : vector<162x162xbf16> to vector<162x162xf32>
    %cst_25 = arith.constant dense<0.000000e+00> : vector<8x162xf32>
    %33 = tpu.matmul %5, %32, %cst_25 {dimension_numbers = #tpu.dot_dimension_numbers<[1], [0], [0], [1], [0, 0, 1, 1], [], []>} : vector<8x162xf32>, vector<162x162xf32>, vector<8x162xf32> -> vector<8x162xf32>
    %34 = tpu.concatenate %9, %13, %17, %21, %25, %29, %33 in 0 : vector<8x162xf32>, vector<8x162xf32>, vector<8x162xf32>, vector<8x162xf32>, vector<8x162xf32>, vector<8x162xf32>, vector<8x162xf32> -> vector<56x162xf32>
    %c0_26 = arith.constant 0 : index
    %c0_27 = arith.constant 0 : index
    %35 = vector.load %arg3[%c0_26, %c0_27] : memref<16x56xf32, #tpu.memory_space<vmem>>, vector<16x56xf32>
    %cst_28 = arith.constant dense<0.000000e+00> : vector<16x162xf32>
    %36 = tpu.matmul %35, %34, %cst_28 {dimension_numbers = #tpu.dot_dimension_numbers<[1], [0], [0], [1], [0, 0, 1, 1], [], []>} : vector<16x56xf32>, vector<56x162xf32>, vector<16x162xf32> -> vector<16x162xf32>
    %c0_29 = arith.constant 0 : index
    %c0_30 = arith.constant 0 : index
    %37 = vector.load %arg4[%c0_29, %c0_30] : memref<16x1xf32, #tpu.memory_space<vmem>>, vector<16x1xf32>
    %38 = vector.broadcast %37 : vector<16x1xf32> to vector<16x162xf32>
    %39 = arith.addf %36, %38 : vector<16x162xf32>
    %cst_31 = arith.constant dense<0.000000e+00> : vector<16xf32>
    %40 = vector.multi_reduction <add>, %39, %cst_31 [1] : vector<16x162xf32> to vector<16xf32>
    %41 = vector.shape_cast %40 : vector<16xf32> to vector<16x1xf32>
    %cst_32 = arith.constant 1.620000e+02 : f32
    %42 = vector.broadcast %cst_32 : f32 to vector<16x1xf32>
    %43 = arith.divf %41, %42 : vector<16x1xf32>
    %44 = vector.broadcast %43 : vector<16x1xf32> to vector<16x162xf32>
    %45 = arith.subf %39, %44 : vector<16x162xf32>
    %46 = arith.mulf %45, %45 : vector<16x162xf32>
    %cst_33 = arith.constant dense<0.000000e+00> : vector<16xf32>
    %47 = vector.multi_reduction <add>, %46, %cst_33 [1] : vector<16x162xf32> to vector<16xf32>
    %48 = vector.shape_cast %47 : vector<16xf32> to vector<16x1xf32>
    %cst_34 = arith.constant 1.620000e+02 : f32
    %49 = vector.broadcast %cst_34 : f32 to vector<16x1xf32>
    %50 = arith.divf %48, %49 : vector<16x1xf32>
    %51 = vector.broadcast %43 : vector<16x1xf32> to vector<16x162xf32>
    %52 = arith.subf %39, %51 : vector<16x162xf32>
    %cst_35 = arith.constant 9.99999974E-6 : f32
    %53 = vector.broadcast %cst_35 : f32 to vector<16x1xf32>
    %54 = arith.addf %50, %53 : vector<16x1xf32>
    %55 = math.sqrt %54 : vector<16x1xf32>
    %56 = vector.broadcast %55 : vector<16x1xf32> to vector<16x162xf32>
    %57 = arith.divf %52, %56 : vector<16x162xf32>
    %c0_36 = arith.constant 0 : index
    %c0_37 = arith.constant 0 : index
    %58 = vector.load %arg5[%c0_36, %c0_37] : memref<16x1xf32, #tpu.memory_space<vmem>>, vector<16x1xf32>
    %59 = vector.broadcast %58 : vector<16x1xf32> to vector<16x162xf32>
    %60 = arith.mulf %57, %59 : vector<16x162xf32>
    %c0_38 = arith.constant 0 : index
    %c0_39 = arith.constant 0 : index
    %61 = vector.load %arg6[%c0_38, %c0_39] : memref<16x1xf32, #tpu.memory_space<vmem>>, vector<16x1xf32>
    %62 = vector.broadcast %61 : vector<16x1xf32> to vector<16x162xf32>
    %63 = arith.addf %60, %62 : vector<16x162xf32>
    %cst_40 = arith.constant 0.000000e+00 : f32
    %64 = vector.broadcast %cst_40 : f32 to vector<16x162xf32>
    %65 = arith.cmpf ogt, %63, %64 : vector<16x162xf32>
    %cst_41 = arith.constant 2.000000e-01 : f32
    %66 = vector.broadcast %cst_41 : f32 to vector<16x162xf32>
    %67 = arith.mulf %66, %63 : vector<16x162xf32>
    %68 = arith.select %65, %63, %67 : vector<16x162xi1>, vector<16x162xf32>
    %c0_42 = arith.constant 0 : index
    %c0_43 = arith.constant 0 : index
    %c0_44 = arith.constant 0 : index
    %69 = vector.load %arg2[%c0_42, %c0_43, %c0_44] : memref<7x162x162xbf16, #tpu.memory_space<vmem>>, vector<1x162x162xbf16>
    %70 = vector.shape_cast %69 : vector<1x162x162xbf16> to vector<162x162xbf16>
    %71 = arith.extf %70 : vector<162x162xbf16> to vector<162x162xf32>
    %cst_45 = arith.constant dense<0.000000e+00> : vector<16x162xf32>
    %72 = tpu.matmul %68, %71, %cst_45 {dimension_numbers = #tpu.dot_dimension_numbers<[1], [0], [0], [1], [0, 0, 1, 1], [], []>} : vector<16x162xf32>, vector<162x162xf32>, vector<16x162xf32> -> vector<16x162xf32>
    %c1_46 = arith.constant 1 : index
    %c0_47 = arith.constant 0 : index
    %c0_48 = arith.constant 0 : index
    %73 = vector.load %arg2[%c1_46, %c0_47, %c0_48] : memref<7x162x162xbf16, #tpu.memory_space<vmem>>, vector<1x162x162xbf16>
    %74 = vector.shape_cast %73 : vector<1x162x162xbf16> to vector<162x162xbf16>
    %75 = arith.extf %74 : vector<162x162xbf16> to vector<162x162xf32>
    %cst_49 = arith.constant dense<0.000000e+00> : vector<16x162xf32>
    %76 = tpu.matmul %68, %75, %cst_49 {dimension_numbers = #tpu.dot_dimension_numbers<[1], [0], [0], [1], [0, 0, 1, 1], [], []>} : vector<16x162xf32>, vector<162x162xf32>, vector<16x162xf32> -> vector<16x162xf32>
    %c2_50 = arith.constant 2 : index
    %c0_51 = arith.constant 0 : index
    %c0_52 = arith.constant 0 : index
    %77 = vector.load %arg2[%c2_50, %c0_51, %c0_52] : memref<7x162x162xbf16, #tpu.memory_space<vmem>>, vector<1x162x162xbf16>
    %78 = vector.shape_cast %77 : vector<1x162x162xbf16> to vector<162x162xbf16>
    %79 = arith.extf %78 : vector<162x162xbf16> to vector<162x162xf32>
    %cst_53 = arith.constant dense<0.000000e+00> : vector<16x162xf32>
    %80 = tpu.matmul %68, %79, %cst_53 {dimension_numbers = #tpu.dot_dimension_numbers<[1], [0], [0], [1], [0, 0, 1, 1], [], []>} : vector<16x162xf32>, vector<162x162xf32>, vector<16x162xf32> -> vector<16x162xf32>
    %c3_54 = arith.constant 3 : index
    %c0_55 = arith.constant 0 : index
    %c0_56 = arith.constant 0 : index
    %81 = vector.load %arg2[%c3_54, %c0_55, %c0_56] : memref<7x162x162xbf16, #tpu.memory_space<vmem>>, vector<1x162x162xbf16>
    %82 = vector.shape_cast %81 : vector<1x162x162xbf16> to vector<162x162xbf16>
    %83 = arith.extf %82 : vector<162x162xbf16> to vector<162x162xf32>
    %cst_57 = arith.constant dense<0.000000e+00> : vector<16x162xf32>
    %84 = tpu.matmul %68, %83, %cst_57 {dimension_numbers = #tpu.dot_dimension_numbers<[1], [0], [0], [1], [0, 0, 1, 1], [], []>} : vector<16x162xf32>, vector<162x162xf32>, vector<16x162xf32> -> vector<16x162xf32>
    %c4_58 = arith.constant 4 : index
    %c0_59 = arith.constant 0 : index
    %c0_60 = arith.constant 0 : index
    %85 = vector.load %arg2[%c4_58, %c0_59, %c0_60] : memref<7x162x162xbf16, #tpu.memory_space<vmem>>, vector<1x162x162xbf16>
    %86 = vector.shape_cast %85 : vector<1x162x162xbf16> to vector<162x162xbf16>
    %87 = arith.extf %86 : vector<162x162xbf16> to vector<162x162xf32>
    %cst_61 = arith.constant dense<0.000000e+00> : vector<16x162xf32>
    %88 = tpu.matmul %68, %87, %cst_61 {dimension_numbers = #tpu.dot_dimension_numbers<[1], [0], [0], [1], [0, 0, 1, 1], [], []>} : vector<16x162xf32>, vector<162x162xf32>, vector<16x162xf32> -> vector<16x162xf32>
    %c5_62 = arith.constant 5 : index
    %c0_63 = arith.constant 0 : index
    %c0_64 = arith.constant 0 : index
    %89 = vector.load %arg2[%c5_62, %c0_63, %c0_64] : memref<7x162x162xbf16, #tpu.memory_space<vmem>>, vector<1x162x162xbf16>
    %90 = vector.shape_cast %89 : vector<1x162x162xbf16> to vector<162x162xbf16>
    %91 = arith.extf %90 : vector<162x162xbf16> to vector<162x162xf32>
    %cst_65 = arith.constant dense<0.000000e+00> : vector<16x162xf32>
    %92 = tpu.matmul %68, %91, %cst_65 {dimension_numbers = #tpu.dot_dimension_numbers<[1], [0], [0], [1], [0, 0, 1, 1], [], []>} : vector<16x162xf32>, vector<162x162xf32>, vector<16x162xf32> -> vector<16x162xf32>
    %c6_66 = arith.constant 6 : index
    %c0_67 = arith.constant 0 : index
    %c0_68 = arith.constant 0 : index
    %93 = vector.load %arg2[%c6_66, %c0_67, %c0_68] : memref<7x162x162xbf16, #tpu.memory_space<vmem>>, vector<1x162x162xbf16>
    %94 = vector.shape_cast %93 : vector<1x162x162xbf16> to vector<162x162xbf16>
    %95 = arith.extf %94 : vector<162x162xbf16> to vector<162x162xf32>
    %cst_69 = arith.constant dense<0.000000e+00> : vector<16x162xf32>
    %96 = tpu.matmul %68, %95, %cst_69 {dimension_numbers = #tpu.dot_dimension_numbers<[1], [0], [0], [1], [0, 0, 1, 1], [], []>} : vector<16x162xf32>, vector<162x162xf32>, vector<16x162xf32> -> vector<16x162xf32>
    %97 = tpu.concatenate %72, %76, %80, %84, %88, %92, %96 in 0 : vector<16x162xf32>, vector<16x162xf32>, vector<16x162xf32>, vector<16x162xf32>, vector<16x162xf32>, vector<16x162xf32>, vector<16x162xf32> -> vector<112x162xf32>
    %c0_70 = arith.constant 0 : index
    %c0_71 = arith.constant 0 : index
    %98 = vector.load %arg7[%c0_70, %c0_71] : memref<16x112xf32, #tpu.memory_space<vmem>>, vector<16x112xf32>
    %cst_72 = arith.constant dense<0.000000e+00> : vector<16x162xf32>
    %99 = tpu.matmul %98, %97, %cst_72 {dimension_numbers = #tpu.dot_dimension_numbers<[1], [0], [0], [1], [0, 0, 1, 1], [], []>} : vector<16x112xf32>, vector<112x162xf32>, vector<16x162xf32> -> vector<16x162xf32>
    %c0_73 = arith.constant 0 : index
    %c0_74 = arith.constant 0 : index
    %100 = vector.load %arg8[%c0_73, %c0_74] : memref<16x1xf32, #tpu.memory_space<vmem>>, vector<16x1xf32>
    %101 = vector.broadcast %100 : vector<16x1xf32> to vector<16x162xf32>
    %102 = arith.addf %99, %101 : vector<16x162xf32>
    %cst_75 = arith.constant dense<0.000000e+00> : vector<16xf32>
    %103 = vector.multi_reduction <add>, %102, %cst_75 [1] : vector<16x162xf32> to vector<16xf32>
    %104 = vector.shape_cast %103 : vector<16xf32> to vector<16x1xf32>
    %cst_76 = arith.constant 1.620000e+02 : f32
    %105 = vector.broadcast %cst_76 : f32 to vector<16x1xf32>
    %106 = arith.divf %104, %105 : vector<16x1xf32>
    %107 = vector.broadcast %106 : vector<16x1xf32> to vector<16x162xf32>
    %108 = arith.subf %102, %107 : vector<16x162xf32>
    %109 = arith.mulf %108, %108 : vector<16x162xf32>
    %cst_77 = arith.constant dense<0.000000e+00> : vector<16xf32>
    %110 = vector.multi_reduction <add>, %109, %cst_77 [1] : vector<16x162xf32> to vector<16xf32>
    %111 = vector.shape_cast %110 : vector<16xf32> to vector<16x1xf32>
    %cst_78 = arith.constant 1.620000e+02 : f32
    %112 = vector.broadcast %cst_78 : f32 to vector<16x1xf32>
    %113 = arith.divf %111, %112 : vector<16x1xf32>
    %114 = vector.broadcast %106 : vector<16x1xf32> to vector<16x162xf32>
    %115 = arith.subf %102, %114 : vector<16x162xf32>
    %cst_79 = arith.constant 9.99999974E-6 : f32
    %116 = vector.broadcast %cst_79 : f32 to vector<16x1xf32>
    %117 = arith.addf %113, %116 : vector<16x1xf32>
    %118 = math.sqrt %117 : vector<16x1xf32>
    %119 = vector.broadcast %118 : vector<16x1xf32> to vector<16x162xf32>
    %120 = arith.divf %115, %119 : vector<16x162xf32>
    %c0_80 = arith.constant 0 : index
    %c0_81 = arith.constant 0 : index
    %121 = vector.load %arg9[%c0_80, %c0_81] : memref<16x1xf32, #tpu.memory_space<vmem>>, vector<16x1xf32>
    %122 = vector.broadcast %121 : vector<16x1xf32> to vector<16x162xf32>
    %123 = arith.mulf %120, %122 : vector<16x162xf32>
    %c0_82 = arith.constant 0 : index
    %c0_83 = arith.constant 0 : index
    %124 = vector.load %arg10[%c0_82, %c0_83] : memref<16x1xf32, #tpu.memory_space<vmem>>, vector<16x1xf32>
    %125 = vector.broadcast %124 : vector<16x1xf32> to vector<16x162xf32>
    %126 = arith.addf %123, %125 : vector<16x162xf32>
    %cst_84 = arith.constant 0.000000e+00 : f32
    %127 = vector.broadcast %cst_84 : f32 to vector<16x162xf32>
    %128 = arith.cmpf ogt, %126, %127 : vector<16x162xf32>
    %cst_85 = arith.constant 2.000000e-01 : f32
    %129 = vector.broadcast %cst_85 : f32 to vector<16x162xf32>
    %130 = arith.mulf %129, %126 : vector<16x162xf32>
    %131 = arith.select %128, %126, %130 : vector<16x162xi1>, vector<16x162xf32>
    %c0_86 = arith.constant 0 : index
    %c0_87 = arith.constant 0 : index
    %132 = vector.load %arg11[%c0_86, %c0_87] : memref<16x162xf32, #tpu.memory_space<vmem>>, vector<16x162xf32>
    tpu.vector_store %arg11[%c0_86, %c0_87], %131 {strides = array<i32>} : memref<16x162xf32, #tpu.memory_space<vmem>>, vector<16x162xf32>,
    return
  }
}

</mosaic_0001>

<bundles_post_ra>
// kernel: tpu_custom_call.1
= control target key start
LH: loop header
LB: loop body
LE: loop exit
PB: predicated region body
PF: predicated region fallthrough
CT: control target
= control target key end

     0   :  { %s5382_s0 = inlined_call_operand.vmem [shape: f32[8,642], index: 0, kind: input, shape index: {}]   ;;  %s5383_s1 = inlined_call_operand.vmem [shape: bf16[642,162], index: 1, kind: input, shape index: {}]   ;;  %s5384_s2 = inlined_call_operand.vmem [shape: bf16[7,162,162], index: 2, kind: input, shape index: {}]   ;;  %s5385_s3 = inlined_call_operand.vmem [shape: f32[16,56], index: 3, kind: input, shape index: {}]   ;;  %s5386_s4 = inlined_call_operand.vmem [shape: f32[16,1], index: 4, kind: input, shape index: {}]   ;;  %s5387_s5 = inlined_call_operand.vmem [shape: f32[16,1], index: 5, kind: input, shape index: {}]   ;;  %s5388_s6 = inlined_call_operand.vmem [shape: f32[16,1], index: 6, kind: input, shape index: {}]   ;;  %s5389_s7 = inlined_call_operand.vmem [shape: f32[16,112], index: 7, kind: input, shape index: {}]   ;;  %s5390_s8 = inlined_call_operand.vmem [shape: f32[16,1], index: 8, kind: input, shape index: {}]   ;;  %s5391_s9 = inlined_call_operand.vmem [shape: f32[16,1], index: 9, kind: input, shape index: {}]   ;;  %s5392_s10 = inlined_call_operand.vmem [shape: f32[16,1], index: 10, kind: input, shape index: {}]   ;;  %s5393_s11 = inlined_call_operand.hbm [shape: f32[16,162], index: 11, kind: output, shape index: {}]  }
   0x1   :  { %v60_v0 = vld [vmem:[%s5383_s1 + $0x78] sm:$0xff]  ;;  %v59_v2 = vld [vmem:[%s5383_s1 + $0x70] sm:$0xff]  ;;  %v58_v8 = vld [vmem:[%s5383_s1 + $0x68] sm:$0xff] }
   0x2   :  { %v92_v1 = vld [vmem:[%s5383_s1 + $0x178] sm:$0xff]  ;;  %v157_v3 = vunpack.c.h.bf16 %v60_v0  ;;  %v156_v5 = vunpack.c.l.bf16 %v60_v0  ;;  %v91_v7 = vld [vmem:[%s5383_s1 + $0x170] sm:$0xff]  ;;  %v90_v9 = vld [vmem:[%s5383_s1 + $0x168] sm:$0xff]  ;;  %v155_v10 = vunpack.c.h.bf16 %v59_v2  ;;  %v154_v12 = vunpack.c.l.bf16 %v59_v2 }
   0x3   :  { %v221_v4 = vunpack.c.h.bf16 %v92_v1  ;;  %v220_v6 = vunpack.c.l.bf16 %v92_v1  ;;  %v219_v11 = vunpack.c.h.bf16 %v91_v7  ;;  %v218_v13 = vunpack.c.l.bf16 %v91_v7  ;;  %v57_v14 = vld [vmem:[%s5383_s1 + $0x60] sm:$0xff]  ;;  %v56_v20 = vld [vmem:[%s5383_s1 + $0x58] sm:$0xff]  ;;  %v55_v26 = vld [vmem:[%s5383_s1 + $0x50] sm:$0xff] }
   0x4   :  { %v89_v15 = vld [vmem:[%s5383_s1 + $0x160] sm:$0xff]  ;;  %299 = vmatprep.subr.mxu0 %v157_v3  ;;  %v153_v16 = vunpack.c.h.bf16 %v58_v8  ;;  %v217_v17 = vunpack.c.h.bf16 %v90_v9  ;;  %v152_v18 = vunpack.c.l.bf16 %v58_v8  ;;  %v216_v19 = vunpack.c.l.bf16 %v90_v9  ;;  %v88_v21 = vld [vmem:[%s5383_s1 + $0x158] sm:$0xff]  ;;  %v87_v27 = vld [vmem:[%s5383_s1 + $0x150] sm:$0xff] }
   0x5   :  { %370 = vmatprep.subr.mxu1 %v221_v4  ;;  %300 = vmatpush1.msra.mxu0 %v156_v5  ;;  %v151_v22 = vunpack.c.h.bf16 %v57_v14  ;;  %v215_v23 = vunpack.c.h.bf16 %v89_v15  ;;  %v150_v24 = vunpack.c.l.bf16 %v57_v14  ;;  %v214_v25 = vunpack.c.l.bf16 %v89_v15  ;;  %v54_v32 = vld [vmem:[%s5383_s1 + $0x48] sm:$0xff]  ;;  %v53_v38 = vld [vmem:[%s5383_s1 + $0x40] sm:$0xff]  ;;  %v52_v44 = vld [vmem:[%s5383_s1 + $0x38] sm:$0xff] }
   0x6   :  { %371 = vmatpush1.msra.mxu1 %v220_v6  ;;  %301 = vmatprep.subr.mxu0 %v155_v10  ;;  %v149_v28 = vunpack.c.h.bf16 %v56_v20  ;;  %v213_v29 = vunpack.c.h.bf16 %v88_v21  ;;  %v148_v30 = vunpack.c.l.bf16 %v56_v20  ;;  %v212_v31 = vunpack.c.l.bf16 %v88_v21  ;;  %v86_v33 = vld [vmem:[%s5383_s1 + $0x148] sm:$0xff]  ;;  %v85_v39 = vld [vmem:[%s5383_s1 + $0x140] sm:$0xff]  ;;  %v84_v45 = vld [vmem:[%s5383_s1 + $0x138] sm:$0xff] }
   0x7   :  { %372 = vmatprep.subr.mxu1 %v219_v11  ;;  %302 = vmatpush1.msra.mxu0 %v154_v12  ;;  %v147_v34 = vunpack.c.h.bf16 %v55_v26  ;;  %v211_v35 = vunpack.c.h.bf16 %v87_v27  ;;  %v146_v36 = vunpack.c.l.bf16 %v55_v26  ;;  %v210_v37 = vunpack.c.l.bf16 %v87_v27  ;;  %v51_v50 = vld [vmem:[%s5383_s1 + $0x30] sm:$0xff]  ;;  %v50_v56 = vld [vmem:[%s5383_s1 + $0x28] sm:$0xff]  ;;  %v49_v62 = vld [vmem:[%s5383_s1 + $0x20] sm:$0xff] }
   0x8   :  { %373 = vmatpush1.msra.mxu1 %v218_v13  ;;  %303 = vmatprep.subr.mxu0 %v153_v16  ;;  %v145_v40 = vunpack.c.h.bf16 %v54_v32  ;;  %v209_v41 = vunpack.c.h.bf16 %v86_v33  ;;  %v144_v42 = vunpack.c.l.bf16 %v54_v32  ;;  %v208_v43 = vunpack.c.l.bf16 %v86_v33  ;;  %v83_v51 = vld [vmem:[%s5383_s1 + $0x130] sm:$0xff]  ;;  %v82_v57 = vld [vmem:[%s5383_s1 + $0x128] sm:$0xff]  ;;  %v81_v63 = vld [vmem:[%s5383_s1 + $0x120] sm:$0xff] }
   0x9   :  { %374 = vmatprep.subr.mxu1 %v217_v17  ;;  %304 = vmatpush1.msra.mxu0 %v152_v18  ;;  %v143_v46 = vunpack.c.h.bf16 %v53_v38  ;;  %v207_v47 = vunpack.c.h.bf16 %v85_v39  ;;  %v142_v48 = vunpack.c.l.bf16 %v53_v38  ;;  %v206_v49 = vunpack.c.l.bf16 %v85_v39  ;;  %v48_v4 = vld [vmem:[%s5383_s1 + $0x18] sm:$0xff]  ;;  %v47_v10 = vld [vmem:[%s5383_s1 + $0x10] sm:$0xff]  ;;  %v46_v16 = vld [vmem:[%s5383_s1 + $0x8] sm:$0xff] }
   0xa   :  { %375 = vmatpush1.msra.mxu1 %v216_v19  ;;  %305 = vmatprep.subr.mxu0 %v151_v22  ;;  %v141_v52 = vunpack.c.h.bf16 %v52_v44  ;;  %v205_v53 = vunpack.c.h.bf16 %v84_v45  ;;  %v140_v54 = vunpack.c.l.bf16 %v52_v44  ;;  %v204_v55 = vunpack.c.l.bf16 %v84_v45  ;;  %v80_v5 = vld [vmem:[%s5383_s1 + $0x118] sm:$0xff]  ;;  %v79_v11 = vld [vmem:[%s5383_s1 + $0x110] sm:$0xff]  ;;  %v78_v17 = vld [vmem:[%s5383_s1 + $0x108] sm:$0xff] }
   0xb   :  { %376 = vmatprep.subr.mxu1 %v215_v23  ;;  %306 = vmatpush1.msra.mxu0 %v150_v24  ;;  %v139_v58 = vunpack.c.h.bf16 %v51_v50  ;;  %v203_v59 = vunpack.c.h.bf16 %v83_v51  ;;  %v138_v60 = vunpack.c.l.bf16 %v51_v50  ;;  %v202_v61 = vunpack.c.l.bf16 %v83_v51  ;;  %v45_v22 = vld [vmem:[%s5383_s1] sm:$0xff] }
   0xc   :  { %377 = vmatpush1.msra.mxu1 %v214_v25  ;;  %307 = vmatprep.subr.mxu0 %v149_v28  ;;  %v137_v0 = vunpack.c.h.bf16 %v50_v56  ;;  %v201_v1 = vunpack.c.h.bf16 %v82_v57  ;;  %v136_v2 = vunpack.c.l.bf16 %v50_v56  ;;  %v200_v3 = vunpack.c.l.bf16 %v82_v57  ;;  %v77_v23 = vld [vmem:[%s5383_s1 + $0x100] sm:$0xff]  ;;  %v76_v28 = vld [vmem:[%s5383_s1 + $0xf8] sm:$0xff] }
   0xd   :  { %378 = vmatprep.subr.mxu1 %v213_v29  ;;  %308 = vmatpush1.msra.mxu0 %v148_v30  ;;  %v135_v6 = vunpack.c.h.bf16 %v49_v62  ;;  %v199_v7 = vunpack.c.h.bf16 %v81_v63  ;;  %v134_v8 = vunpack.c.l.bf16 %v49_v62  ;;  %v198_v9 = vunpack.c.l.bf16 %v81_v63  ;;  %v108_v29 = vld [vmem:[%s5383_s1 + $0x1f8] sm:$0xff] }
   0xe   :  { %379 = vmatpush1.msra.mxu1 %v212_v31  ;;  %309 = vmatprep.subr.mxu0 %v147_v34  ;;  %v133_v12 = vunpack.c.h.bf16 %v48_v4  ;;  %v197_v13 = vunpack.c.h.bf16 %v80_v5  ;;  %v132_v14 = vunpack.c.l.bf16 %v48_v4  ;;  %v196_v15 = vunpack.c.l.bf16 %v80_v5 }
   0xf   :  { %380 = vmatprep.subr.mxu1 %v211_v35  ;;  %310 = vmatpush1.msra.mxu0 %v146_v36  ;;  %v131_v18 = vunpack.c.h.bf16 %v47_v10  ;;  %v195_v19 = vunpack.c.h.bf16 %v79_v11  ;;  %v130_v20 = vunpack.c.l.bf16 %v47_v10  ;;  %v194_v21 = vunpack.c.l.bf16 %v79_v11 }
  0x10   :  { %381 = vmatpush1.msra.mxu1 %v210_v37  ;;  %311 = vmatprep.subr.mxu0 %v145_v40  ;;  %v129_v24 = vunpack.c.h.bf16 %v46_v16  ;;  %v193_v25 = vunpack.c.h.bf16 %v78_v17  ;;  %v128_v26 = vunpack.c.l.bf16 %v46_v16  ;;  %v192_v27 = vunpack.c.l.bf16 %v78_v17 }
  0x11   :  { %382 = vmatprep.subr.mxu1 %v209_v41  ;;  %312 = vmatpush1.msra.mxu0 %v144_v42  ;;  %v127_v30 = vunpack.c.h.bf16 %v45_v22  ;;  %v191_v31 = vunpack.c.h.bf16 %v77_v23 }
  0x12   :  { %383 = vmatpush1.msra.mxu1 %v208_v43  ;;  %313 = vmatprep.subr.mxu0 %v143_v46 }
  0x13   :  { %384 = vmatprep.subr.mxu1 %v207_v47  ;;  %314 = vmatpush1.msra.mxu0 %v142_v48 }
  0x14   :  { %385 = vmatpush1.msra.mxu1 %v206_v49  ;;  %315 = vmatprep.subr.mxu0 %v141_v52 }
  0x15   :  { %386 = vmatprep.subr.mxu1 %v205_v53  ;;  %316 = vmatpush1.msra.mxu0 %v140_v54 }
  0x16   :  { %387 = vmatpush1.msra.mxu1 %v204_v55  ;;  %317 = vmatprep.subr.mxu0 %v139_v58 }
  0x17   :  { %388 = vmatprep.subr.mxu1 %v203_v59  ;;  %318 = vmatpush1.msra.mxu0 %v138_v60 }
  0x18   :  { %389 = vmatpush1.msra.mxu1 %v202_v61  ;;  %319 = vmatprep.subr.mxu0 %v137_v0 }
  0x19   :  { %390 = vmatprep.subr.mxu1 %v201_v1  ;;  %320 = vmatpush1.msra.mxu0 %v136_v2 }
  0x1a   :  { %391 = vmatpush1.msra.mxu1 %v200_v3  ;;  %321 = vmatprep.subr.mxu0 %v135_v6 }
  0x1b   :  { %392 = vmatprep.subr.mxu1 %v199_v7  ;;  %322 = vmatpush1.msra.mxu0 %v134_v8 }
  0x1c   :  { %393 = vmatpush1.msra.mxu1 %v198_v9  ;;  %323 = vmatprep.subr.mxu0 %v133_v12 }
  0x1d   :  { %394 = vmatprep.subr.mxu1 %v197_v13  ;;  %324 = vmatpush1.msra.mxu0 %v132_v14 }
  0x1e   :  { %395 = vmatpush1.msra.mxu1 %v196_v15  ;;  %325 = vmatprep.subr.mxu0 %v131_v18 }
  0x1f   :  { %396 = vmatprep.subr.mxu1 %v195_v19 }
  0x20   :  { %16 = vsyncpa [#allocation3], 0  ;;  %326 = vmatpush1.msra.mxu0 %v130_v20  ;;  %397 = vmatpush1.msra.mxu1 %v194_v21  ;;  %v126_v32 = vunpack.c.l.bf16 %v45_v22  ;;  %v190_v33 = vunpack.c.l.bf16 %v77_v23  ;;  %v75_v34 = vld [vmem:[%s5383_s1 + $0xf0] sm:$0xff]  ;;  %v189_v36 = vunpack.c.h.bf16 %v76_v28  ;;  %v253_v37 = vunpack.c.h.bf16 %v108_v29  ;;  %v74_v40 = vld [vmem:[%s5383_s1 + $0xe8] sm:$0xff] }
  0x21   :  { %v107_v35 = vld [vmem:[%s5383_s1 + $0x1f0] sm:$0xff]  ;;  %327 = vmatprep.subr.mxu0 %v129_v24  ;;  %398 = vmatprep.subr.mxu1 %v193_v25  ;;  %v188_v38 = vunpack.c.l.bf16 %v76_v28  ;;  %v252_v39 = vunpack.c.l.bf16 %v108_v29  ;;  %v106_v41 = vld [vmem:[%s5383_s1 + $0x1e8] sm:$0xff]  ;;  %v187_v42 = vunpack.c.h.bf16 %v75_v34  ;;  %v186_v44 = vunpack.c.l.bf16 %v75_v34  ;;  %v73_v46 = vld [vmem:[%s5383_s1 + $0xe0] sm:$0xff] }
  0x22   :  { %328 = vmatpush1.msra.mxu0 %v128_v26  ;;  %399 = vmatpush1.msra.mxu1 %v192_v27  ;;  %v251_v43 = vunpack.c.h.bf16 %v107_v35  ;;  %v250_v45 = vunpack.c.l.bf16 %v107_v35  ;;  %v105_v47 = vld [vmem:[%s5383_s1 + $0x1e0] sm:$0xff]  ;;  %v185_v48 = vunpack.c.h.bf16 %v74_v40  ;;  %v249_v49 = vunpack.c.h.bf16 %v106_v41  ;;  %v72_v52 = vld [vmem:[%s5383_s1 + $0xd8] sm:$0xff]  ;;  %v71_v58 = vld [vmem:[%s5383_s1 + $0xd0] sm:$0xff] }
  0x23   :  { %329 = vmatprep.subr.mxu0 %v127_v30  ;;  %400 = vmatprep.subr.mxu1 %v191_v31  ;;  %v184_v50 = vunpack.c.l.bf16 %v74_v40  ;;  %v248_v51 = vunpack.c.l.bf16 %v106_v41  ;;  %v104_v53 = vld [vmem:[%s5383_s1 + $0x1d8] sm:$0xff]  ;;  %v183_v54 = vunpack.c.h.bf16 %v73_v46  ;;  %v247_v55 = vunpack.c.h.bf16 %v105_v47  ;;  %v103_v59 = vld [vmem:[%s5383_s1 + $0x1d0] sm:$0xff]  ;;  %v70_v0 = vld [vmem:[%s5383_s1 + $0xc8] sm:$0xff] }
  0x24   :  { %330 = vmatpush1.msra.mxu0 %v126_v32  ;;  %401 = vmatpush1.msra.mxu1 %v190_v33  ;;  %v182_v56 = vunpack.c.l.bf16 %v73_v46  ;;  %v246_v57 = vunpack.c.l.bf16 %v105_v47  ;;  %v181_v60 = vunpack.c.h.bf16 %v72_v52  ;;  %v245_v61 = vunpack.c.h.bf16 %v104_v53  ;;  %v102_v1 = vld [vmem:[%s5383_s1 + $0x1c8] sm:$0xff]  ;;  %v69_v6 = vld [vmem:[%s5383_s1 + $0xc0] sm:$0xff]  ;;  %v68_v12 = vld [vmem:[%s5383_s1 + $0xb8] sm:$0xff] }
  0x25   :  { %331 = vmatprep.subr.mxu0 %v189_v36  ;;  %402 = vmatprep.subr.mxu1 %v253_v37  ;;  %v180_v62 = vunpack.c.l.bf16 %v72_v52  ;;  %v244_v63 = vunpack.c.l.bf16 %v104_v53  ;;  %v179_v2 = vunpack.c.h.bf16 %v71_v58  ;;  %v243_v3 = vunpack.c.h.bf16 %v103_v59  ;;  %v101_v7 = vld [vmem:[%s5383_s1 + $0x1c0] sm:$0xff]  ;;  %v100_v13 = vld [vmem:[%s5383_s1 + $0x1b8] sm:$0xff]  ;;  %v67_v18 = vld [vmem:[%s5383_s1 + $0xb0] sm:$0xff] }
  0x26   :  { %332 = vmatpush2.msra.mxu0 %v188_v38  ;;  %403 = vmatpush2.msra.mxu1 %v252_v39  ;;  %v178_v4 = vunpack.c.l.bf16 %v71_v58  ;;  %v242_v5 = vunpack.c.l.bf16 %v103_v59  ;;  %v177_v8 = vunpack.c.h.bf16 %v70_v0  ;;  %v241_v9 = vunpack.c.h.bf16 %v102_v1  ;;  %v99_v19 = vld [vmem:[%s5383_s1 + $0x1b0] sm:$0xff]  ;;  %v66_v24 = vld [vmem:[%s5383_s1 + $0xa8] sm:$0xff]  ;;  %v65_v30 = vld [vmem:[%s5383_s1 + $0xa0] sm:$0xff] }
  0x27   :  { %333 = vmatprep.subr.mxu0 %v187_v42  ;;  %404 = vmatprep.subr.mxu1 %v251_v43  ;;  %v176_v10 = vunpack.c.l.bf16 %v70_v0  ;;  %v240_v11 = vunpack.c.l.bf16 %v102_v1  ;;  %v175_v14 = vunpack.c.h.bf16 %v69_v6  ;;  %v239_v15 = vunpack.c.h.bf16 %v101_v7  ;;  %v98_v25 = vld [vmem:[%s5383_s1 + $0x1a8] sm:$0xff]  ;;  %v97_v31 = vld [vmem:[%s5383_s1 + $0x1a0] sm:$0xff]  ;;  %v64_v36 = vld [vmem:[%s5383_s1 + $0x98] sm:$0xff] }
  0x28   :  { %334 = vmatpush2.msra.mxu0 %v186_v44  ;;  %405 = vmatpush2.msra.mxu1 %v250_v45  ;;  %v174_v16 = vunpack.c.l.bf16 %v69_v6  ;;  %v238_v17 = vunpack.c.l.bf16 %v101_v7  ;;  %v173_v20 = vunpack.c.h.bf16 %v68_v12  ;;  %v237_v21 = vunpack.c.h.bf16 %v100_v13  ;;  %v96_v37 = vld [vmem:[%s5383_s1 + $0x198] sm:$0xff]  ;;  %v63_v42 = vld [vmem:[%s5383_s1 + $0x90] sm:$0xff]  ;;  %v40_v0 = vld [vmem:[%s5382_s0 + $0x8] sm:$0xff] }
  0x29   :  { %335 = vmatprep.subr.mxu0 %v185_v48  ;;  %406 = vmatprep.subr.mxu1 %v249_v49  ;;  %v172_v22 = vunpack.c.l.bf16 %v68_v12  ;;  %v236_v23 = vunpack.c.l.bf16 %v100_v13  ;;  %v171_v26 = vunpack.c.h.bf16 %v67_v18  ;;  %v235_v27 = vunpack.c.h.bf16 %v99_v19  ;;  %v95_v43 = vld [vmem:[%s5383_s1 + $0x190] sm:$0xff]  ;;  %v62_v48 = vld [vmem:[%s5383_s1 + $0x88] sm:$0xff] }
  0x2a   :  { %336 = vmatpush2.msra.mxu0 %v184_v50  ;;  %407 = vmatpush2.msra.mxu1 %v248_v51  ;;  %v170_v28 = vunpack.c.l.bf16 %v67_v18  ;;  %v234_v29 = vunpack.c.l.bf16 %v99_v19  ;;  %v169_v32 = vunpack.c.h.bf16 %v66_v24  ;;  %v233_v33 = vunpack.c.h.bf16 %v98_v25  ;;  %v94_v49 = vld [vmem:[%s5383_s1 + $0x188] sm:$0xff]  ;;  %v41_v6 = vld [vmem:[%s5382_s0 + $0x10] sm:$0xff]  ;;  %v120_v18 = vld [vmem:[%s5383_s1 + $0x258] sm:$0xff] }
  0x2b   :  { %337 = vmatprep.subr.mxu0 %v183_v54  ;;  %408 = vmatprep.subr.mxu1 %v247_v55  ;;  %v168_v34 = vunpack.c.l.bf16 %v66_v24  ;;  %v232_v35 = vunpack.c.l.bf16 %v98_v25  ;;  %v167_v38 = vunpack.c.h.bf16 %v65_v30  ;;  %v231_v39 = vunpack.c.h.bf16 %v97_v31  ;;  %v61_v54 = vld [vmem:[%s5383_s1 + $0x80] sm:$0xff]  ;;  %v118_v24 = vld [vmem:[%s5383_s1 + $0x248] sm:$0xff] }
  0x2c   :  { %338 = vmatpush2.msra.mxu0 %v182_v56  ;;  %409 = vmatpush2.msra.mxu1 %v246_v57  ;;  %v166_v40 = vunpack.c.l.bf16 %v65_v30  ;;  %v230_v41 = vunpack.c.l.bf16 %v97_v31  ;;  %v165_v44 = vunpack.c.h.bf16 %v64_v36  ;;  %v229_v45 = vunpack.c.h.bf16 %v96_v37  ;;  %v93_v55 = vld [vmem:[%s5383_s1 + $0x180] sm:$0xff]  ;;  %v116_v30 = vld [vmem:[%s5383_s1 + $0x238] sm:$0xff] }
  0x2d   :  { %339 = vmatprep.subr.mxu0 %v181_v60  ;;  %410 = vmatprep.subr.mxu1 %v245_v61  ;;  %v164_v46 = vunpack.c.l.bf16 %v64_v36  ;;  %v228_v47 = vunpack.c.l.bf16 %v96_v37  ;;  %v163_v50 = vunpack.c.h.bf16 %v63_v42  ;;  %v227_v51 = vunpack.c.h.bf16 %v95_v43  ;;  %v114_v36 = vld [vmem:[%s5383_s1 + $0x228] sm:$0xff] }
  0x2e   :  { %340 = vmatpush2.msra.mxu0 %v180_v62  ;;  %411 = vmatpush2.msra.mxu1 %v244_v63  ;;  %v162_v52 = vunpack.c.l.bf16 %v63_v42  ;;  %v226_v53 = vunpack.c.l.bf16 %v95_v43  ;;  %v161_v56 = vunpack.c.h.bf16 %v62_v48  ;;  %v225_v57 = vunpack.c.h.bf16 %v94_v49  ;;  %v124_v63 = vld [vmem:[%s5383_s1 + $0x278] sm:$0xff] }
  0x2f   :  { %341 = vmatprep.subr.mxu0 %v179_v2  ;;  %412 = vmatprep.subr.mxu1 %v243_v3  ;;  %v160_v58 = vunpack.c.l.bf16 %v62_v48  ;;  %v224_v59 = vunpack.c.l.bf16 %v94_v49  ;;  %v159_v60 = vunpack.c.h.bf16 %v61_v54  ;;  %v223_v61 = vunpack.c.h.bf16 %v93_v55  ;;  %v2947_v2 = vld [vmem:[%s5384_s2 + $0x78] sm:$0xff]  ;;  %v110_v48 = vld [vmem:[%s5383_s1 + $0x208] sm:$0xff] }
  0x30   :  { %342 = vmatpush2.msra.mxu0 %v178_v4  ;;  %413 = vmatpush2.msra.mxu1 %v242_v5  ;;  %v158_v62 = vunpack.c.l.bf16 %v61_v54  ;;  %v222_v1 = vunpack.c.l.bf16 %v93_v55  ;;  %v42_v3 = vld [vmem:[%s5382_s0 + $0x18] sm:$0xff]  ;;  %v123_v4 = vld [vmem:[%s5383_s1 + $0x270] sm:$0xff]  ;;  %v39_v5 = vld [vmem:[%s5382_s0] sm:$0xff]  ;;  %v285_v7 = vunpack.c.h.bf16 %v124_v63  ;;  %vm288_vm0 = vcmask 15360  }
  0x31   :  { %343 = vmatprep.subr.mxu0 %v177_v8  ;;  %414 = vmatprep.subr.mxu1 %v241_v9  ;;  %v284_v8 = vunpack.c.l.bf16 %v124_v63  ;;  %v122_v9 = vld [vmem:[%s5383_s1 + $0x268] sm:$0xff]  ;;  %v283_v12 = vunpack.c.h.bf16 %v123_v4  ;;  %v5481_v13 = vunpack.c.l.bf16 %v2947_v2  ;;  %v112_v42 = vld [vmem:[%s5383_s1 + $0x218] sm:$0xff]  ;;  %v125_v54 = vld [vmem:[%s5383_s1 + $0x280] sm:$0x11]  ;;  %vm292_vm1 = vcmask 1041408  }
  0x32   :  { %344 = vmatpush2.msra.mxu0 %v176_v10  ;;  %415 = vmatpush2.msra.mxu1 %v240_v11  ;;  %v44_v10 = vld [vmem:[%s5382_s0 + $0x28] sm:$0xff]  ;;  %v5482_v11 = vunpack.c.h.bf16 %v2947_v2  ;;  %v3034_v63 = vld [vmem:[%s5384_s2 + $0x70] sm:$0xff]  ;;  %vm577_vm2 = vcmask 277504   ;;  %vm1518_vm3 = vcmask 457728   ;;  %vm2256_vm12 = vcmask 916480  }
  0x33   :  { %345 = vmatprep.subr.mxu0 %v175_v14  ;;  %416 = vmatprep.subr.mxu1 %v239_v15  ;;  %v282_v14 = vunpack.c.l.bf16 %v123_v4  ;;  %v121_v15 = vld [vmem:[%s5383_s1 + $0x260] sm:$0xff]  ;;  %v5476_v4 = vunpack.c.l.bf16 %v3034_v63 }
  0x34   :  { %346 = vmatpush2.msra.mxu0 %v174_v16  ;;  %417 = vmatpush2.msra.mxu1 %v238_v17  ;;  %v281_v16 = vunpack.c.h.bf16 %v122_v9  ;;  %v280_v17 = vunpack.c.l.bf16 %v122_v9  ;;  %v279_v19 = vunpack.c.h.bf16 %v121_v15 }
  0x35   :  { %347 = vmatprep.subr.mxu0 %v173_v20  ;;  %418 = vmatprep.subr.mxu1 %v237_v21  ;;  %v278_v20 = vunpack.c.l.bf16 %v121_v15  ;;  %v119_v21 = vld [vmem:[%s5383_s1 + $0x250] sm:$0xff]  ;;  %v3075_v15 = vld [vmem:[%s5384_s2 + $0x108] sm:$0xff] }
  0x36   :  { %348 = vmatpush2.msra.mxu0 %v172_v22  ;;  %419 = vmatpush2.msra.mxu1 %v236_v23  ;;  %v277_v22 = vunpack.c.h.bf16 %v120_v18  ;;  %v276_v23 = vunpack.c.l.bf16 %v120_v18  ;;  %v275_v25 = vunpack.c.h.bf16 %v119_v21 }
  0x37   :  { %349 = vmatprep.subr.mxu0 %v171_v26  ;;  %420 = vmatprep.subr.mxu1 %v235_v27  ;;  %v274_v26 = vunpack.c.l.bf16 %v119_v21  ;;  %v117_v27 = vld [vmem:[%s5383_s1 + $0x240] sm:$0xff] }
  0x38   :  { %350 = vmatpush2.msra.mxu0 %v170_v28  ;;  %421 = vmatpush2.msra.mxu1 %v234_v29  ;;  %v273_v28 = vunpack.c.h.bf16 %v118_v24  ;;  %v272_v29 = vunpack.c.l.bf16 %v118_v24  ;;  %v271_v31 = vunpack.c.h.bf16 %v117_v27  ;;  %v3093_v21 = vld [vmem:[%s5384_s2 + $0x100] sm:$0xff] }
  0x39   :  { %351 = vmatprep.subr.mxu0 %v169_v32  ;;  %422 = vmatprep.subr.mxu1 %v233_v33  ;;  %v270_v32 = vunpack.c.l.bf16 %v117_v27  ;;  %v115_v33 = vld [vmem:[%s5383_s1 + $0x230] sm:$0xff]  ;;  %v5403_v27 = vunpack.c.h.bf16 %v3093_v21 }
  0x3a   :  { %352 = vmatpush2.msra.mxu0 %v168_v34  ;;  %423 = vmatpush2.msra.mxu1 %v232_v35  ;;  %v269_v34 = vunpack.c.h.bf16 %v116_v30  ;;  %v268_v35 = vunpack.c.l.bf16 %v116_v30  ;;  %v267_v37 = vunpack.c.h.bf16 %v115_v33 }
  0x3b   :  { %353 = vmatprep.subr.mxu0 %v167_v38  ;;  %424 = vmatprep.subr.mxu1 %v231_v39  ;;  %v266_v38 = vunpack.c.l.bf16 %v115_v33  ;;  %v113_v39 = vld [vmem:[%s5383_s1 + $0x220] sm:$0xff] }
  0x3c   :  { %354 = vmatpush2.msra.mxu0 %v166_v40  ;;  %425 = vmatpush2.msra.mxu1 %v230_v41  ;;  %v265_v40 = vunpack.c.h.bf16 %v114_v36  ;;  %v264_v41 = vunpack.c.l.bf16 %v114_v36  ;;  %v263_v43 = vunpack.c.h.bf16 %v113_v39 }
  0x3d   :  { %355 = vmatprep.subr.mxu0 %v165_v44  ;;  %426 = vmatprep.subr.mxu1 %v229_v45  ;;  %v262_v44 = vunpack.c.l.bf16 %v113_v39  ;;  %v111_v45 = vld [vmem:[%s5383_s1 + $0x210] sm:$0xff] }
  0x3e   :  { %356 = vmatpush2.msra.mxu0 %v164_v46  ;;  %427 = vmatpush2.msra.mxu1 %v228_v47  ;;  %v261_v46 = vunpack.c.h.bf16 %v112_v42  ;;  %v260_v47 = vunpack.c.l.bf16 %v112_v42  ;;  %v259_v49 = vunpack.c.h.bf16 %v111_v45 }
  0x3f   :  { %357 = vmatprep.subr.mxu0 %v163_v50  ;;  %428 = vmatprep.subr.mxu1 %v227_v51  ;;  %v258_v50 = vunpack.c.l.bf16 %v111_v45  ;;  %v109_v51 = vld [vmem:[%s5383_s1 + $0x200] sm:$0xff] }
  0x40   :  { %358 = vmatpush2.msra.mxu0 %v162_v52  ;;  %429 = vmatpush2.msra.mxu1 %v226_v53  ;;  %v257_v52 = vunpack.c.h.bf16 %v110_v48  ;;  %v256_v53 = vunpack.c.l.bf16 %v110_v48  ;;  %v255_v55 = vunpack.c.h.bf16 %v109_v51 }
  0x41   :  { %359 = vmatprep.subr.mxu0 %v161_v56  ;;  %430 = vmatprep.subr.mxu1 %v225_v57  ;;  %v254_v56 = vunpack.c.l.bf16 %v109_v51  ;;  %v3018_v57 = vld [vmem:[%s5384_s2 + $0x120] sm:$0xff] }
  0x42   :  { %360 = vmatpush2.msra.mxu0 %v160_v58  ;;  %431 = vmatpush2.msra.mxu1 %v224_v59  ;;  %v287_v58 = vunpack.c.h.bf16 %v125_v54  ;;  %v286_v59 = vunpack.c.l.bf16 %v125_v54 }
  0x43   :  { %361 = vmatprep.subr.mxu0 %v159_v60  ;;  %432 = vmatprep.subr.mxu1 %v223_v61  ;;  %v5415_v60 = vunpack.c.h.bf16 %v3018_v57  ;;  %v43_v61 = vld [vmem:[%s5382_s0 + $0x20] sm:$0xff] }
  0x44   :  { %362 = vmatpush2.msra.mxu0 %v158_v62  ;;  %363 = vmatprep.mubr.f32.mxu0 %v40_v0  ;;  %v5414_v62 = vunpack.c.l.bf16 %v3018_v57  ;;  %v3039_v0 = vld [vmem:[%s5384_s2 + $0x118] sm:$0xff] }
  0x45   :  { %433 = vmatpush2.msra.mxu1 %v222_v1  ;;  %434 = vmatprep.mubr.f32.mxu1 %v42_v3  ;;  %v5477_v1 = vunpack.c.h.bf16 %v3034_v63  ;;  %v5413_v3 = vunpack.c.h.bf16 %v3039_v0 }
  0x46   :  { %364 = vmatmul.mubr.f32.vlgmr.msra.gmra.mxu0 %v39_v5  ;;  %435 = vmatmul.mubr.f32.vlgmr.msra.gmra.mxu1 %v41_v6  ;;  %v5410_v5 = vunpack.c.l.bf16 %v3039_v0  ;;  %v3048_v6 = vld [vmem:[%s5384_s2 + $0x68] sm:$0xff] }
  0x47   :  { %441 = vmatprep.subr.mxu0 %v285_v7  ;;  %2456 = vmatprep.mubr.msk.f32.mxu0 %vm288_vm0, %v44_v10  ;;  %v3053_v7 = vld [vmem:[%s5384_s2 + $0x110] sm:$0xff]  ;;  %v5474_v10 = vunpack.c.l.bf16 %v3048_v6 }
  0x48   :  { %442 = vmatpush1.msra.mxu0 %v284_v8  ;;  %587 = vmatprep.subr.mxu1 %v5482_v11  ;;  %v5475_v8 = vunpack.c.h.bf16 %v3048_v6  ;;  %v5409_v9 = vunpack.c.h.bf16 %v3053_v7 }
  0x49   :  { %443 = vmatprep.subr.mxu0 %v283_v12  ;;  %588 = vmatpush1.msra.mxu1 %v5481_v13  ;;  %v5408_v12 = vunpack.c.l.bf16 %v3053_v7 }
  0x4a   :  { %444 = vmatpush1.msra.mxu0 %v282_v14  ;;  %589 = vmatprep.subr.mxu1 %v5477_v1  ;;  %v3070_v14 = vld [vmem:[%s5384_s2 + $0x60] sm:$0xff] }
  0x4b   :  { %445 = vmatprep.subr.mxu0 %v281_v16  ;;  %590 = vmatpush1.msra.mxu1 %v5476_v4  ;;  %v3080_v16 = vld [vmem:[%s5384_s2 + $0x58] sm:$0xff]  ;;  %v5469_v18 = vunpack.c.h.bf16 %v3070_v14 }
  0x4c   :  { %446 = vmatpush1.msra.mxu0 %v280_v17  ;;  %591 = vmatprep.subr.mxu1 %v5475_v8  ;;  %v5468_v17 = vunpack.c.l.bf16 %v3070_v14  ;;  %v5466_v24 = vunpack.c.l.bf16 %v3080_v16 }
  0x4d   :  { %447 = vmatprep.subr.mxu0 %v279_v19  ;;  %v5404_v19 = vunpack.c.l.bf16 %v3075_v15  ;;  %592 = vmatpush1.msra.mxu1 %v5474_v10 }
  0x4e   :  { %448 = vmatpush1.msra.mxu0 %v278_v20  ;;  %v5407_v20 = vunpack.c.h.bf16 %v3075_v15  ;;  %593 = vmatprep.subr.mxu1 %v5469_v18 }
  0x4f   :  { %449 = vmatprep.subr.mxu0 %v277_v22  ;;  %v3098_v22 = vld [vmem:[%s5384_s2 + $0x50] sm:$0xff]  ;;  %594 = vmatpush1.msra.mxu1 %v5468_v17 }
  0x50   :  { %450 = vmatpush1.msra.mxu0 %v276_v23  ;;  %v3103_v23 = vld [vmem:[%s5384_s2 + $0xf8] sm:$0xff]  ;;  %v5465_v30 = vunpack.c.h.bf16 %v3098_v22 }
  0x51   :  { %451 = vmatprep.subr.mxu0 %v275_v25  ;;  %v5467_v25 = vunpack.c.h.bf16 %v3080_v16  ;;  %v5398_v33 = vunpack.c.l.bf16 %v3103_v23 }
  0x52   :  { %452 = vmatpush1.msra.mxu0 %v274_v26  ;;  %v5402_v26 = vunpack.c.l.bf16 %v3093_v21 }
  0x53   :  { %453 = vmatprep.subr.mxu0 %v273_v28  ;;  %v3116_v28 = vld [vmem:[%s5384_s2 + $0x48] sm:$0xff]  ;;  %595 = vmatprep.subr.mxu1 %v5467_v25 }
  0x54   :  { %454 = vmatpush1.msra.mxu0 %v272_v29  ;;  %v3121_v29 = vld [vmem:[%s5384_s2 + $0xf0] sm:$0xff]  ;;  %v5462_v36 = vunpack.c.h.bf16 %v3116_v28  ;;  %596 = vmatpush1.msra.mxu1 %v5466_v24 }
  0x55   :  { %455 = vmatprep.subr.mxu0 %v271_v31  ;;  %v5401_v31 = vunpack.c.h.bf16 %v3103_v23  ;;  %v5396_v39 = vunpack.c.l.bf16 %v3121_v29  ;;  %597 = vmatprep.subr.mxu1 %v5465_v30 }
  0x56   :  { %456 = vmatpush1.msra.mxu0 %v270_v32  ;;  %v5464_v32 = vunpack.c.l.bf16 %v3098_v22 }
  0x57   :  { %457 = vmatprep.subr.mxu0 %v269_v34  ;;  %v3138_v34 = vld [vmem:[%s5384_s2 + $0x40] sm:$0xff] }
  0x58   :  { %458 = vmatpush1.msra.mxu0 %v268_v35  ;;  %v3143_v35 = vld [vmem:[%s5384_s2 + $0xe8] sm:$0xff]  ;;  %v5455_v42 = vunpack.c.h.bf16 %v3138_v34  ;;  %598 = vmatpush1.msra.mxu1 %v5464_v32 }
  0x59   :  { %459 = vmatprep.subr.mxu0 %v267_v37  ;;  %v5397_v37 = vunpack.c.h.bf16 %v3121_v29  ;;  %v5394_v45 = vunpack.c.l.bf16 %v3143_v35  ;;  %599 = vmatprep.subr.mxu1 %v5462_v36 }
  0x5a   :  { %460 = vmatpush1.msra.mxu0 %v266_v38  ;;  %v5461_v38 = vunpack.c.l.bf16 %v3116_v28 }
  0x5b   :  { %461 = vmatprep.subr.mxu0 %v265_v40  ;;  %v3160_v40 = vld [vmem:[%s5384_s2 + $0x38] sm:$0xff] }
  0x5c   :  { %462 = vmatpush1.msra.mxu0 %v264_v41  ;;  %v3165_v41 = vld [vmem:[%s5384_s2 + $0xe0] sm:$0xff]  ;;  %v5433_v48 = vunpack.c.h.bf16 %v3160_v40  ;;  %600 = vmatpush1.msra.mxu1 %v5461_v38 }
  0x5d   :  { %463 = vmatprep.subr.mxu0 %v263_v43  ;;  %v5395_v43 = vunpack.c.h.bf16 %v3143_v35  ;;  %v5400_v51 = vunpack.c.l.bf16 %v3165_v41  ;;  %601 = vmatprep.subr.mxu1 %v5455_v42 }
  0x5e   :  { %464 = vmatpush1.msra.mxu0 %v262_v44  ;;  %v5454_v44 = vunpack.c.l.bf16 %v3138_v34 }
  0x5f   :  { %465 = vmatprep.subr.mxu0 %v261_v46  ;;  %v3182_v46 = vld [vmem:[%s5384_s2 + $0x30] sm:$0xff] }
  0x60   :  { %466 = vmatpush1.msra.mxu0 %v260_v47  ;;  %v3187_v47 = vld [vmem:[%s5384_s2 + $0xd8] sm:$0xff]  ;;  %v5427_v54 = vunpack.c.h.bf16 %v3182_v46  ;;  %602 = vmatpush1.msra.mxu1 %v5454_v44 }
  0x61   :  { %467 = vmatprep.subr.mxu0 %v259_v49  ;;  %v5399_v49 = vunpack.c.h.bf16 %v3165_v41  ;;  %603 = vmatprep.subr.mxu1 %v5433_v48 }
  0x62   :  { %468 = vmatpush1.msra.mxu0 %v258_v50  ;;  %v5432_v50 = vunpack.c.l.bf16 %v3160_v40 }
  0x63   :  { %469 = vmatprep.subr.mxu0 %v257_v52  ;;  %v3204_v52 = vld [vmem:[%s5384_s2 + $0x28] sm:$0xff] }
  0x64   :  { %470 = vmatpush1.msra.mxu0 %v256_v53  ;;  %v3209_v53 = vld [vmem:[%s5384_s2 + $0xd0] sm:$0xff]  ;;  %604 = vmatpush1.msra.mxu1 %v5432_v50 }
  0x65   :  { %471 = vmatprep.subr.mxu0 %v255_v55  ;;  %v5405_v55 = vunpack.c.h.bf16 %v3187_v47  ;;  %605 = vmatprep.subr.mxu1 %v5427_v54 }
  0x66   :  { %472 = vmatpush1.msra.mxu0 %v254_v56  ;;  %v5426_v56 = vunpack.c.l.bf16 %v3182_v46 }
  0x67   :  { %2454 = vmatprep.subr.msk.mxu0 %vm292_vm1, %v287_v58  ;;  %v5406_v58 = vunpack.c.l.bf16 %v3187_v47 }
  0x68   :  { %2455 = vmatpush2.msk.msra.mxu0 %vm292_vm1, %v286_v59  ;;  %v3226_v59 = vld [vmem:[%s5384_s2 + $0x20] sm:$0xff]  ;;  %606 = vmatpush1.msra.mxu1 %v5426_v56 }
  0x69   :  { %506 = vmatmul.mubr.f32.vlgmr.msra.gmra.mxu0 %v43_v61  ;;  %728 = vmatprep.subr.mxu0 %v5415_v60  ;;  %v3231_v61 = vld [vmem:[%s5384_s2 + $0xc8] sm:$0xff] }
  0x6a   :  { %729 = vmatpush1.msra.mxu0 %v5414_v62 }
  0x6b   :  { %730 = vmatprep.subr.mxu0 %v5413_v3 }
  0x6c   :  { %731 = vmatpush1.msra.mxu0 %v5410_v5  ;;  %v3292_v5 = vld [vmem:[%s5384_s2 + $0x8] sm:$0xff] }
  0x6d   :  { %732 = vmatprep.subr.mxu0 %v5409_v9 }
  0x6e   :  { %733 = vmatpush1.msra.mxu0 %v5408_v12 }
  0x6f   :  { %734 = vmatprep.subr.mxu0 %v5407_v20 }
  0x70   :  { %735 = vmatpush1.msra.mxu0 %v5404_v19  ;;  %v3270_v19 = vld [vmem:[%s5384_s2 + $0x10] sm:$0xff] }
  0x71   :  { %736 = vmatprep.subr.mxu0 %v5403_v27  ;;  %v5418_v27 = vunpack.c.l.bf16 %v3231_v61  ;;  %v5431_v62 = vunpack.c.l.bf16 %v3270_v19 }
  0x72   :  { %737 = vmatpush1.msra.mxu0 %v5402_v26  ;;  %v5419_v26 = vunpack.c.l.bf16 %v3226_v59 }
  0x73   :  { %738 = vmatprep.subr.mxu0 %v5401_v31  ;;  %v5417_v31 = vunpack.c.h.bf16 %v3231_v61 }
  0x74   :  { %739 = vmatpush1.msra.mxu0 %v5398_v33  ;;  %v3248_v33 = vld [vmem:[%s5384_s2 + $0x18] sm:$0xff] }
  0x75   :  { %740 = vmatprep.subr.mxu0 %v5397_v37  ;;  %v5412_v37 = vunpack.c.l.bf16 %v3209_v53  ;;  %v5425_v12 = vunpack.c.l.bf16 %v3248_v33 }
  0x76   :  { %741 = vmatpush1.msra.mxu0 %v5396_v39  ;;  %v5420_v39 = vunpack.c.l.bf16 %v3204_v52 }
  0x77   :  { %742 = vmatprep.subr.mxu0 %v5395_v43  ;;  %v5411_v43 = vunpack.c.h.bf16 %v3209_v53 }
  0x78   :  { %743 = vmatpush1.msra.mxu0 %v5394_v45  ;;  %v5421_v45 = vunpack.c.h.bf16 %v3204_v52 }
  0x79   :  { %744 = vmatprep.subr.mxu0 %v5399_v49  ;;  %v3253_v49 = vld [vmem:[%s5384_s2 + $0xc0] sm:$0xff] }
  0x7a   :  { %745 = vmatpush1.msra.mxu0 %v5400_v51  ;;  %v5416_v51 = vunpack.c.h.bf16 %v3226_v59  ;;  %607 = vmatprep.subr.mxu1 %v5421_v45  ;;  %v5423_v20 = vunpack.c.h.bf16 %v3253_v49  ;;  %v5424_v9 = vunpack.c.l.bf16 %v3253_v49 }
  0x7b   :  { %746 = vmatprep.subr.mxu0 %v5405_v55  ;;  %v3275_v55 = vld [vmem:[%s5384_s2 + $0xb8] sm:$0xff]  ;;  %608 = vmatpush1.msra.mxu1 %v5420_v39  ;;  %v5437_v39 = vunpack.c.l.bf16 %v3292_v5 }
  0x7c   :  { %747 = vmatpush1.msra.mxu0 %v5406_v58  ;;  %v5422_v58 = vunpack.c.h.bf16 %v3248_v33  ;;  %609 = vmatprep.subr.mxu1 %v5416_v51  ;;  %v5429_v3 = vunpack.c.h.bf16 %v3275_v55  ;;  %v5430_v60 = vunpack.c.l.bf16 %v3275_v55  ;;  %v3314_v51 = vld [vmem:[%s5384_s2] sm:$0xff] }
  0x7d   :  { %748 = vmatprep.subr.mxu0 %v5411_v43  ;;  %v3297_v43 = vld [vmem:[%s5384_s2 + $0xb0] sm:$0xff]  ;;  %610 = vmatpush1.msra.mxu1 %v5419_v26  ;;  %v5448_v56 = vunpack.c.l.bf16 %v3314_v51 }
  0x7e   :  { %749 = vmatpush1.msra.mxu0 %v5412_v37  ;;  %v5428_v37 = vunpack.c.h.bf16 %v3270_v19  ;;  %611 = vmatprep.subr.mxu1 %v5422_v58  ;;  %v5434_v26 = vunpack.c.h.bf16 %v3297_v43  ;;  %v5436_v45 = vunpack.c.l.bf16 %v3297_v43  ;;  %v3336_v58 = vld [vmem:[%s5384_s2 + $0xa0] sm:$0x11] }
  0x7f   :  { %750 = vmatprep.subr.mxu0 %v5417_v31  ;;  %v3319_v31 = vld [vmem:[%s5384_s2 + $0xa8] sm:$0xff]  ;;  %612 = vmatpush1.msra.mxu1 %v5425_v12  ;;  %v5442_v50 = vunpack.c.l.bf16 %v3336_v58 }
  0x80   :  { %751 = vmatpush1.msra.mxu0 %v5418_v27  ;;  %v5435_v27 = vunpack.c.h.bf16 %v3292_v5  ;;  %613 = vmatprep.subr.mxu1 %v5428_v37  ;;  %v5439_v12 = vunpack.c.h.bf16 %v3319_v31  ;;  %v5438_v54 = vunpack.c.l.bf16 %v3319_v31  ;;  %v3358_v37 = vld [vmem:[%s5384_s2 + $0x98] sm:$0xff] }
  0x81   :  { %752 = vmatprep.subr.mxu0 %v5423_v20  ;;  %v3341_v20 = vld [vmem:[%s5384_s2 + $0x148] sm:$0x11]  ;;  %614 = vmatpush1.msra.mxu1 %v5431_v62 }
  0x82   :  { %753 = vmatpush1.msra.mxu0 %v5424_v9  ;;  %v5449_v9 = vunpack.c.h.bf16 %v3314_v51  ;;  %615 = vmatprep.subr.mxu1 %v5435_v27  ;;  %v5440_v62 = vunpack.c.h.bf16 %v3341_v20  ;;  %v5441_v48 = vunpack.c.l.bf16 %v3341_v20 }
  0x83   :  { %754 = vmatprep.subr.mxu0 %v5429_v3  ;;  %v3363_v3 = vld [vmem:[%s5384_s2 + $0x140] sm:$0xff]  ;;  %616 = vmatpush1.msra.mxu1 %v5437_v39 }
  0x84   :  { %755 = vmatpush1.msra.mxu0 %v5430_v60  ;;  %v5443_v60 = vunpack.c.h.bf16 %v3336_v58  ;;  %617 = vmatprep.subr.mxu1 %v5449_v9  ;;  %v5445_v27 = vunpack.c.h.bf16 %v3363_v3  ;;  %v5446_v39 = vunpack.c.l.bf16 %v3363_v3 }
  0x85   :  { %756 = vmatprep.subr.mxu0 %v5434_v26  ;;  %v5444_v26 = vunpack.c.h.bf16 %v3358_v37  ;;  %618 = vmatpush1.msra.mxu1 %v5448_v56 }
  0x86   :  { %757 = vmatpush1.msra.mxu0 %v5436_v45  ;;  %v5447_v45 = vunpack.c.l.bf16 %v3358_v37  ;;  %2457 = vmatprep.subr.msk.mxu1 %vm292_vm1, %v5443_v60 }
  0x87   :  { %758 = vmatprep.subr.mxu0 %v5439_v12  ;;  %2458 = vmatpush2.msk.msra.mxu1 %vm292_vm1, %v5442_v50  ;;  %v3409_v12 = vld [vmem:[%s5384_s2 + $0x138] sm:$0xff] }
  0x88   :  { %759 = vmatpush1.msra.mxu0 %v5438_v54  ;;  %v3404_v54 = vld [vmem:[%s5384_s2 + $0x90] sm:$0xff]  ;;  %643 = vmatprep.subr.mxu1 %v5444_v26  ;;  %v5452_v60 = vunpack.c.l.bf16 %v3409_v12  ;;  %v3426_v26 = vld [vmem:[%s5384_s2 + $0x88] sm:$0xff] }
  0x89   :  { %2481 = vmatprep.subr.msk.mxu0 %vm292_vm1, %v5440_v62  ;;  %v5450_v62 = vunpack.c.h.bf16 %v3404_v54  ;;  %644 = vmatpush2.msra.mxu1 %v5447_v45  ;;  %v5453_v50 = vunpack.c.l.bf16 %v3404_v54  ;;  %v5459_v56 = vunpack.c.l.bf16 %v3426_v26 }
  0x8a   :  { %2482 = vmatpush2.msk.msra.mxu0 %vm292_vm1, %v5441_v48  ;;  %v5451_v48 = vunpack.c.h.bf16 %v3409_v12 }
  0x8b   :  { %784 = vmatprep.subr.mxu0 %v5445_v27  ;;  %v3431_v27 = vld [vmem:[%s5384_s2 + $0x130] sm:$0xff]  ;;  %645 = vmatprep.subr.mxu1 %v5450_v62  ;;  %v3448_v62 = vld [vmem:[%s5384_s2 + $0x80] sm:$0xff] }
  0x8c   :  { %785 = vmatpush2.msra.mxu0 %v5446_v39  ;;  %v5456_v39 = vunpack.c.h.bf16 %v3426_v26  ;;  %v5457_v45 = vunpack.c.h.bf16 %v3431_v27  ;;  %646 = vmatpush2.msra.mxu1 %v5453_v50  ;;  %v5458_v9 = vunpack.c.l.bf16 %v3431_v27  ;;  %v5473_v44 = vunpack.c.l.bf16 %v3448_v62 }
  0x8d   :  { %786 = vmatprep.subr.mxu0 %v5451_v48  ;;  %v3453_v48 = vld [vmem:[%s5384_s2 + $0x128] sm:$0xff] }
  0x8e   :  { %787 = vmatpush2.msra.mxu0 %v5452_v60  ;;  %647 = vmatprep.subr.mxu1 %v5456_v39  ;;  %v5460_v60 = vunpack.c.h.bf16 %v3448_v62  ;;  %v5463_v50 = vunpack.c.h.bf16 %v3453_v48  ;;  %v5470_v42 = vunpack.c.l.bf16 %v3453_v48  ;;  %v3470_v39 = vld [vmem:[%s5384_s2 + $0x1c8] sm:$0xff] }
  0x8f   :  { %788 = vmatprep.subr.mxu0 %v5457_v45  ;;  %648 = vmatpush2.msra.mxu1 %v5459_v56  ;;  %v3475_v45 = vld [vmem:[%s5384_s2 + $0x270] sm:$0xff] }
  0x90   :  { %789 = vmatpush2.msra.mxu0 %v5458_v9  ;;  %649 = vmatprep.subr.mxu1 %v5460_v60  ;;  %v5472_v9 = vunpack.c.h.bf16 %v3470_v39  ;;  %v5471_v56 = vunpack.c.h.bf16 %v3475_v45 }
  0x91   :  { %790 = vmatprep.subr.mxu0 %v5463_v50  ;;  %650 = vmatpush2.msra.mxu1 %v5473_v44  ;;  %v3535_v44 = vld [vmem:[%s5384_s2 + $0x258] sm:$0xff] }
  0x92   :  { %791 = vmatpush2.msra.mxu0 %v5470_v42  ;;  %869 = vmatprep.subr.mxu1 %v5472_v9  ;;  %v3494_v42 = vld [vmem:[%s5384_s2 + $0x1c0] sm:$0xff]  ;;  %5700 = vst [vmem:[#allocation9_spill] sm:$0xff] %v3535_v44 }
  0x93   :  { %1010 = vmatprep.subr.mxu0 %v5471_v56  ;;  %v3499_v56 = vld [vmem:[%s5384_s2 + $0x268] sm:$0xff] }
  0x94   :  { %5696 = vst [vmem:[#allocation5_spill] sm:$0xff] %v3499_v56 }
 0x106   :  { %v365_v60 = vpop.f32.mrf.mxu0  ;;  %v436_v38 = vpop.f32.mrf.mxu1 }
 0x107   :  { %v437_v32 = vadd.f32 %v436_v38, %v365_v60  ;;  %v5478_v60 = vunpack.c.l.bf16 %v3470_v39  ;;  %v5484_v38 = vunpack.c.l.bf16 %v3499_v56 }
 0x108   :  { %v367_v36 = vpop.f32.mrf.mxu0  ;;  %v438_v50 = vpop.f32.mrf.mxu1 }
 0x109   :  { %v439_v24 = vadd.f32 %v438_v50, %v367_v36  ;;  %v5479_v36 = vunpack.c.l.bf16 %v3475_v45  ;;  %v3530_v50 = vld [vmem:[%s5384_s2 + $0x1b0] sm:$0xff] }
 0x10a   :  { %5699 = vst [vmem:[#allocation8_spill] sm:$0xff] %v3530_v50  ;;  %v5710_v11 = vunpack.c.l.bf16 %v3530_v50 }
 0x129   :  { %v507_v30 = vpop.f32.mrf.mxu0 }
 0x12a   :  { %v508_v25 = vadd.f32 %v507_v30, %v437_v32  ;;  %v3516_v32 = vld [vmem:[%s5384_s2 + $0x260] sm:$0xff] }
 0x12b   :  { %v509_v17 = vpop.f32.mrf.mxu0  ;;  %5698 = vst [vmem:[#allocation7_spill] sm:$0xff] %v3516_v32  ;;  %v5487_v8 = vunpack.c.h.bf16 %v3516_v32  ;;  %v5705_v1 = vunpack.c.l.bf16 %v3516_v32 }
 0x12c   :  { %v510_v18 = vadd.f32 %v509_v17, %v439_v24  ;;  %v3505_v30 = vmul.f32 0.14285715, %v508_v25  ;;  %v5480_v17 = vunpack.c.h.bf16 %v3494_v42  ;;  %v3511_v24 = vld [vmem:[%s5384_s2 + $0x1b8] sm:$0xff]  ;;  %v5485_v25 = vunpack.c.l.bf16 %v3494_v42 }
 0x12d   :  { %5697 = vst [vmem:[#allocation6_spill] sm:$0xff] %v3511_v24  ;;  %v5486_v10 = vunpack.c.h.bf16 %v3511_v24  ;;  %v5488_v4 = vunpack.c.l.bf16 %v3511_v24 }
 0x12e   :  { %v3501_v9 = vmul.f32 0.14285715, %v510_v18  ;;  %v5483_v18 = vunpack.c.h.bf16 %v3499_v56 }
 0x130   :  { %2459 = vmatprep.mubr.msk.f32.mxu1 %vm577_vm2, %v3501_v9  ;;  %2483 = vmatprep.mubr.msk.f32.mxu0 %vm577_vm2, %v3501_v9 }
 0x131   :  { %652 = vmatmul.mubr.f32.vlgmr.msra.gmra.mxu1 %v3505_v30  ;;  %793 = vmatmul.mubr.f32.vlgmr.msra.gmra.mxu0 %v3505_v30 }
 0x132   :  { %870 = vmatpush1.msra.mxu1 %v5478_v60  ;;  %1011 = vmatpush1.msra.mxu0 %v5479_v36  ;;  %v3552_v60 = vld [vmem:[%s5384_s2 + $0x1a8] sm:$0xff]  ;;  %v3557_v36 = vld [vmem:[%s5384_s2 + $0x250] sm:$0xff] }
 0x133   :  { %871 = vmatprep.subr.mxu1 %v5480_v17  ;;  %2507 = vmatprep.mubr.msk.f32.mxu1 %vm577_vm2, %v3501_v9  ;;  %5701 = vst [vmem:[#allocation10_spill] sm:$0xff] %v3552_v60  ;;  %5702 = vst [vmem:[#allocation11_spill] sm:$0xff] %v3557_v36  ;;  %v3579_v17 = vld [vmem:[%s5384_s2 + $0x248] sm:$0xff]  ;;  %v5714_v13 = vunpack.c.h.bf16 %v3552_v60  ;;  %v5716_v32 = vunpack.c.l.bf16 %v3552_v60 }
 0x134   :  { %1012 = vmatprep.subr.mxu0 %v5483_v18  ;;  %2531 = vmatprep.mubr.msk.f32.mxu0 %vm577_vm2, %v3501_v9  ;;  %v3574_v18 = vld [vmem:[%s5384_s2 + $0x1a0] sm:$0xff]  ;;  %5704 = vst [vmem:[#allocation13_spill] sm:$0xff] %v3579_v17 }
 0x135   :  { %872 = vmatpush1.msra.mxu1 %v5485_v25  ;;  %1013 = vmatpush1.msra.mxu0 %v5484_v38  ;;  %5703 = vst [vmem:[#allocation12_spill] sm:$0xff] %v3574_v18  ;;  %v5708_v25 = vunpack.c.h.bf16 %v3530_v50  ;;  %v5711_v38 = vunpack.c.l.bf16 %v3535_v44  ;;  %v5720_v24 = vunpack.c.h.bf16 %v3574_v18 }
 0x136   :  { %873 = vmatprep.subr.mxu1 %v5486_v10  ;;  %1014 = vmatprep.subr.mxu0 %v5487_v8  ;;  %v3596_v10 = vld [vmem:[%s5384_s2 + $0x198] sm:$0xff]  ;;  %v3601_v8 = vld [vmem:[%s5384_s2 + $0x240] sm:$0xff] }
 0x137   :  { %874 = vmatpush1.msra.mxu1 %v5488_v4  ;;  %1015 = vmatpush1.msra.mxu0 %v5705_v1  ;;  %5706 = vst [vmem:[#allocation14_spill] sm:$0xff] %v3596_v10  ;;  %5707 = vst [vmem:[#allocation15_spill] sm:$0xff] %v3601_v8  ;;  %v5709_v4 = vunpack.c.h.bf16 %v3535_v44  ;;  %v5717_v1 = vunpack.c.l.bf16 %v3557_v36  ;;  %v5722_v44 = vunpack.c.l.bf16 %v3574_v18  ;;  %v5726_v50 = vunpack.c.h.bf16 %v3596_v10 }
 0x138   :  { %875 = vmatprep.subr.mxu1 %v5708_v25  ;;  %v3618_v25 = vld [vmem:[%s5384_s2 + $0x190] sm:$0xff] }
 0x139   :  { %1016 = vmatprep.subr.mxu0 %v5709_v4  ;;  %876 = vmatpush1.msra.mxu1 %v5710_v11  ;;  %5712 = vst [vmem:[#allocation16_spill] sm:$0xff] %v3618_v25  ;;  %v3623_v4 = vld [vmem:[%s5384_s2 + $0x238] sm:$0xff]  ;;  %v5715_v11 = vunpack.c.h.bf16 %v3557_v36  ;;  %v5728_v36 = vunpack.c.l.bf16 %v3596_v10  ;;  %v5732_v60 = vunpack.c.h.bf16 %v3618_v25 }
 0x13a   :  { %1017 = vmatpush1.msra.mxu0 %v5711_v38  ;;  %5713 = vst [vmem:[#allocation17_spill] sm:$0xff] %v3623_v4  ;;  %877 = vmatprep.subr.mxu1 %v5714_v13  ;;  %v3640_v13 = vld [vmem:[%s5384_s2 + $0x188] sm:$0xff]  ;;  %v5723_v38 = vunpack.c.l.bf16 %v3579_v17 }
 0x13b   :  { %1018 = vmatprep.subr.mxu0 %v5715_v11  ;;  %878 = vmatpush1.msra.mxu1 %v5716_v32  ;;  %5718 = vst [vmem:[#allocation18_spill] sm:$0xff] %v3640_v13  ;;  %v3645_v11 = vld [vmem:[%s5384_s2 + $0x230] sm:$0xff]  ;;  %v5721_v32 = vunpack.c.h.bf16 %v3579_v17  ;;  %v5734_v17 = vunpack.c.l.bf16 %v3618_v25  ;;  %v5738_v18 = vunpack.c.h.bf16 %v3640_v13 }
 0x13c   :  { %1019 = vmatpush1.msra.mxu0 %v5717_v1  ;;  %5719 = vst [vmem:[#allocation19_spill] sm:$0xff] %v3645_v11  ;;  %879 = vmatprep.subr.mxu1 %v5720_v24  ;;  %v3662_v24 = vld [vmem:[%s5384_s2 + $0x180] sm:$0xff]  ;;  %v5729_v1 = vunpack.c.l.bf16 %v3601_v8 }
 0x13d   :  { %1020 = vmatprep.subr.mxu0 %v5721_v32  ;;  %880 = vmatpush1.msra.mxu1 %v5722_v44  ;;  %5724 = vst [vmem:[#allocation20_spill] sm:$0xff] %v3662_v24  ;;  %v3667_v32 = vld [vmem:[%s5384_s2 + $0x228] sm:$0xff]  ;;  %v5727_v44 = vunpack.c.h.bf16 %v3601_v8  ;;  %v5740_v8 = vunpack.c.l.bf16 %v3640_v13  ;;  %v5744_v10 = vunpack.c.h.bf16 %v3662_v24 }
 0x13e   :  { %1021 = vmatpush1.msra.mxu0 %v5723_v38  ;;  %5725 = vst [vmem:[#allocation21_spill] sm:$0xff] %v3667_v32  ;;  %881 = vmatprep.subr.mxu1 %v5726_v50  ;;  %v3684_v50 = vld [vmem:[%s5384_s2 + $0x178] sm:$0xff]  ;;  %v5735_v38 = vunpack.c.l.bf16 %v3623_v4 }
 0x13f   :  { %1022 = vmatprep.subr.mxu0 %v5727_v44  ;;  %882 = vmatpush1.msra.mxu1 %v5728_v36  ;;  %5730 = vst [vmem:[#allocation22_spill] sm:$0xff] %v3684_v50  ;;  %v3689_v44 = vld [vmem:[%s5384_s2 + $0x220] sm:$0xff]  ;;  %v5733_v36 = vunpack.c.h.bf16 %v3623_v4  ;;  %v5746_v4 = vunpack.c.l.bf16 %v3662_v24  ;;  %v5750_v25 = vunpack.c.h.bf16 %v3684_v50 }
 0x140   :  { %1023 = vmatpush1.msra.mxu0 %v5729_v1  ;;  %5731 = vst [vmem:[#allocation23_spill] sm:$0xff] %v3689_v44  ;;  %883 = vmatprep.subr.mxu1 %v5732_v60  ;;  %v3706_v60 = vld [vmem:[%s5384_s2 + $0x170] sm:$0xff]  ;;  %v5741_v1 = vunpack.c.l.bf16 %v3645_v11 }
 0x141   :  { %1024 = vmatprep.subr.mxu0 %v5733_v36  ;;  %884 = vmatpush1.msra.mxu1 %v5734_v17  ;;  %5736 = vst [vmem:[#allocation24_spill] sm:$0xff] %v3706_v60  ;;  %v3711_v36 = vld [vmem:[%s5384_s2 + $0x218] sm:$0xff]  ;;  %v5739_v17 = vunpack.c.h.bf16 %v3645_v11  ;;  %v5752_v11 = vunpack.c.l.bf16 %v3684_v50  ;;  %v5756_v13 = vunpack.c.h.bf16 %v3706_v60 }
 0x142   :  { %1025 = vmatpush1.msra.mxu0 %v5735_v38  ;;  %5737 = vst [vmem:[#allocation25_spill] sm:$0xff] %v3711_v36  ;;  %885 = vmatprep.subr.mxu1 %v5738_v18  ;;  %v3728_v18 = vld [vmem:[%s5384_s2 + $0x168] sm:$0xff]  ;;  %v5747_v38 = vunpack.c.l.bf16 %v3667_v32 }
 0x143   :  { %1026 = vmatprep.subr.mxu0 %v5739_v17  ;;  %886 = vmatpush1.msra.mxu1 %v5740_v8  ;;  %5742 = vst [vmem:[#allocation26_spill] sm:$0xff] %v3728_v18  ;;  %v3733_v17 = vld [vmem:[%s5384_s2 + $0x210] sm:$0xff]  ;;  %v5745_v8 = vunpack.c.h.bf16 %v3667_v32  ;;  %v5758_v32 = vunpack.c.l.bf16 %v3706_v60  ;;  %v5762_v24 = vunpack.c.h.bf16 %v3728_v18 }
 0x144   :  { %1027 = vmatpush1.msra.mxu0 %v5741_v1  ;;  %5743 = vst [vmem:[#allocation27_spill] sm:$0xff] %v3733_v17  ;;  %887 = vmatprep.subr.mxu1 %v5744_v10  ;;  %v3750_v10 = vld [vmem:[%s5384_s2 + $0x160] sm:$0xff]  ;;  %v5753_v1 = vunpack.c.l.bf16 %v3689_v44 }
 0x145   :  { %1028 = vmatprep.subr.mxu0 %v5745_v8  ;;  %888 = vmatpush1.msra.mxu1 %v5746_v4  ;;  %5748 = vst [vmem:[#allocation28_spill] sm:$0xff] %v3750_v10  ;;  %v3755_v8 = vld [vmem:[%s5384_s2 + $0x208] sm:$0xff]  ;;  %v5751_v4 = vunpack.c.h.bf16 %v3689_v44  ;;  %v5764_v44 = vunpack.c.l.bf16 %v3728_v18  ;;  %v5768_v50 = vunpack.c.h.bf16 %v3750_v10 }
 0x146   :  { %1029 = vmatpush1.msra.mxu0 %v5747_v38  ;;  %5749 = vst [vmem:[#allocation29_spill] sm:$0xff] %v3755_v8  ;;  %889 = vmatprep.subr.mxu1 %v5750_v25  ;;  %v3772_v25 = vld [vmem:[%s5384_s2 + $0x158] sm:$0xff]  ;;  %v5759_v38 = vunpack.c.l.bf16 %v3711_v36 }
 0x147   :  { %1030 = vmatprep.subr.mxu0 %v5751_v4  ;;  %890 = vmatpush1.msra.mxu1 %v5752_v11  ;;  %5754 = vst [vmem:[#allocation30_spill] sm:$0xff] %v3772_v25  ;;  %v3777_v4 = vld [vmem:[%s5384_s2 + $0x200] sm:$0xff]  ;;  %v5757_v11 = vunpack.c.h.bf16 %v3711_v36  ;;  %v5770_v36 = vunpack.c.l.bf16 %v3750_v10  ;;  %v5774_v60 = vunpack.c.h.bf16 %v3772_v25 }
 0x148   :  { %1031 = vmatpush1.msra.mxu0 %v5753_v1  ;;  %5755 = vst [vmem:[#allocation31_spill] sm:$0xff] %v3777_v4  ;;  %891 = vmatprep.subr.mxu1 %v5756_v13  ;;  %v3794_v13 = vld [vmem:[%s5384_s2 + $0x150] sm:$0xff]  ;;  %v5765_v1 = vunpack.c.l.bf16 %v3733_v17 }
 0x149   :  { %1032 = vmatprep.subr.mxu0 %v5757_v11  ;;  %892 = vmatpush1.msra.mxu1 %v5758_v32  ;;  %5760 = vst [vmem:[#allocation32_spill] sm:$0xff] %v3794_v13  ;;  %v3799_v11 = vld [vmem:[%s5384_s2 + $0x1f8] sm:$0xff]  ;;  %v5763_v32 = vunpack.c.h.bf16 %v3733_v17  ;;  %v5776_v17 = vunpack.c.l.bf16 %v3772_v25  ;;  %v5780_v18 = vunpack.c.h.bf16 %v3794_v13 }
 0x14a   :  { %1033 = vmatpush1.msra.mxu0 %v5759_v38  ;;  %5761 = vst [vmem:[#allocation33_spill] sm:$0xff] %v3799_v11  ;;  %893 = vmatprep.subr.mxu1 %v5762_v24  ;;  %v3816_v24 = vld [vmem:[%s5384_s2 + $0x1f0] sm:$0x11]  ;;  %v5771_v38 = vunpack.c.l.bf16 %v3755_v8  ;;  %v3913_v25 = vld [vmem:[%s5384_s2 + $0x278] sm:$0xff] }
 0x14b   :  { %1034 = vmatprep.subr.mxu0 %v5763_v32  ;;  %894 = vmatpush1.msra.mxu1 %v5764_v44  ;;  %5766 = vst [vmem:[#allocation34_spill] sm:$0xff] %v3816_v24  ;;  %v3821_v32 = vld [vmem:[%s5384_s2 + $0x298] sm:$0x11]  ;;  %v5769_v44 = vunpack.c.h.bf16 %v3755_v8  ;;  %v5782_v8 = vunpack.c.l.bf16 %v3794_v13  ;;  %v5786_v10 = vunpack.c.h.bf16 %v3816_v24  ;;  %5791 = vst [vmem:[#allocation43_spill] sm:$0xff] %v3913_v25 }
 0x14c   :  { %1035 = vmatpush1.msra.mxu0 %v5765_v1  ;;  %5767 = vst [vmem:[#allocation35_spill] sm:$0xff] %v3821_v32  ;;  %895 = vmatprep.subr.mxu1 %v5768_v50  ;;  %v3838_v50 = vld [vmem:[%s5384_s2 + $0x1e8] sm:$0xff]  ;;  %v5777_v1 = vunpack.c.l.bf16 %v3777_v4 }
 0x14d   :  { %1036 = vmatprep.subr.mxu0 %v5769_v44  ;;  %896 = vmatpush1.msra.mxu1 %v5770_v36  ;;  %5772 = vst [vmem:[#allocation36_spill] sm:$0xff] %v3838_v50  ;;  %v3843_v44 = vld [vmem:[%s5384_s2 + $0x290] sm:$0xff]  ;;  %v5775_v36 = vunpack.c.h.bf16 %v3777_v4  ;;  %v5788_v4 = vunpack.c.l.bf16 %v3816_v24 }
 0x14e   :  { %1037 = vmatpush1.msra.mxu0 %v5771_v38  ;;  %5773 = vst [vmem:[#allocation37_spill] sm:$0xff] %v3843_v44  ;;  %897 = vmatprep.subr.mxu1 %v5774_v60  ;;  %v3860_v60 = vld [vmem:[%s5384_s2 + $0x1e0] sm:$0xff]  ;;  %v5783_v38 = vunpack.c.l.bf16 %v3799_v11 }
 0x14f   :  { %1038 = vmatprep.subr.mxu0 %v5775_v36  ;;  %898 = vmatpush1.msra.mxu1 %v5776_v17  ;;  %5778 = vst [vmem:[#allocation38_spill] sm:$0xff] %v3860_v60  ;;  %v3865_v36 = vld [vmem:[%s5384_s2 + $0x288] sm:$0xff]  ;;  %v5781_v17 = vunpack.c.h.bf16 %v3799_v11  ;;  %v5794_v11 = vunpack.c.l.bf16 %v3838_v50  ;;  %v5796_v56 = vunpack.c.h.bf16 %v3860_v60  ;;  %v5800_v13 = vunpack.c.l.bf16 %v3860_v60 }
 0x150   :  { %1039 = vmatpush1.msra.mxu0 %v5777_v1  ;;  %5779 = vst [vmem:[#allocation39_spill] sm:$0xff] %v3865_v36  ;;  %899 = vmatprep.subr.mxu1 %v5780_v18  ;;  %v3882_v18 = vld [vmem:[%s5384_s2 + $0x1d8] sm:$0xff]  ;;  %v5789_v1 = vunpack.c.l.bf16 %v3821_v32 }
 0x151   :  { %1040 = vmatprep.subr.mxu0 %v5781_v17  ;;  %900 = vmatpush1.msra.mxu1 %v5782_v8  ;;  %5784 = vst [vmem:[#allocation40_spill] sm:$0xff] %v3882_v18  ;;  %v3887_v17 = vld [vmem:[%s5384_s2 + $0x280] sm:$0xff]  ;;  %v5787_v8 = vunpack.c.h.bf16 %v3821_v32  ;;  %v5795_v32 = vunpack.c.l.bf16 %v3843_v44  ;;  %v5554_v24 = vunpack.c.l.bf16 %v3882_v18 }
 0x152   :  { %1041 = vmatpush1.msra.mxu0 %v5783_v38  ;;  %5785 = vst [vmem:[#allocation41_spill] sm:$0xff] %v3887_v17  ;;  %2505 = vmatprep.subr.msk.mxu1 %vm292_vm1, %v5786_v10  ;;  %v5793_v38 = vunpack.c.h.bf16 %v3843_v44  ;;  %v5803_v44 = vunpack.c.l.bf16 %v3887_v17  ;;  %v3962_v10 = vld [vmem:[%s5384_s2 + $0x310] sm:$0xff] }
 0x153   :  { %2529 = vmatprep.subr.msk.mxu0 %vm292_vm1, %v5787_v8  ;;  %2506 = vmatpush2.msk.msra.mxu1 %vm292_vm1, %v5788_v4  ;;  %v3908_v8 = vld [vmem:[%s5384_s2 + $0x1d0] sm:$0xff]  ;;  %v5792_v4 = vunpack.c.h.bf16 %v3838_v50  ;;  %5804 = vst [vmem:[#allocation46_spill] sm:$0xff] %v3962_v10 }
 0x154   :  { %2530 = vmatpush2.msk.msra.mxu0 %vm292_vm1, %v5789_v1  ;;  %5790 = vst [vmem:[#allocation42_spill] sm:$0xff] %v3908_v8  ;;  %v5553_v1 = vunpack.c.h.bf16 %v3882_v18 }
 0x155   :  { %925 = vmatprep.subr.mxu1 %v5792_v4  ;;  %1066 = vmatprep.subr.mxu0 %v5793_v38  ;;  %v5797_v4 = vunpack.c.h.bf16 %v3865_v36  ;;  %v5802_v38 = vunpack.c.h.bf16 %v3887_v17  ;;  %v3982_v17 = vld [vmem:[%s5384_s2 + $0x308] sm:$0xff] }
 0x156   :  { %926 = vmatpush2.msra.mxu1 %v5794_v11  ;;  %1067 = vmatpush2.msra.mxu0 %v5795_v32  ;;  %v3936_v11 = vld [vmem:[%s5384_s2 + $0x318] sm:$0xff]  ;;  %v3941_v32 = vld [vmem:[%s5384_s2 + $0x3c0] sm:$0xff]  ;;  %5809 = vst [vmem:[#allocation48_spill] sm:$0xff] %v3982_v17  ;;  %v5825_v18 = vunpack.c.h.bf16 %v3982_v17 }
 0x157   :  { %927 = vmatprep.subr.mxu1 %v5796_v56  ;;  %1068 = vmatprep.subr.mxu0 %v5797_v4  ;;  %5798 = vst [vmem:[#allocation44_spill] sm:$0xff] %v3936_v11  ;;  %5799 = vst [vmem:[#allocation45_spill] sm:$0xff] %v3941_v32  ;;  %v5801_v56 = vunpack.c.l.bf16 %v3865_v36  ;;  %v5557_v4 = vunpack.c.l.bf16 %v3908_v8  ;;  %v5827_v36 = vunpack.c.l.bf16 %v3982_v17 }
 0x158   :  { %928 = vmatpush2.msra.mxu1 %v5800_v13  ;;  %v5812_v13 = vunpack.c.h.bf16 %v3941_v32 }
 0x159   :  { %1069 = vmatpush2.msra.mxu0 %v5801_v56  ;;  %929 = vmatprep.subr.mxu1 %v5553_v1  ;;  %v3967_v1 = vld [vmem:[%s5384_s2 + $0x3b8] sm:$0xff]  ;;  %v5808_v56 = vunpack.c.l.bf16 %v3913_v25 }
 0x15a   :  { %1070 = vmatprep.subr.mxu0 %v5802_v38  ;;  %930 = vmatpush2.msra.mxu1 %v5554_v24  ;;  %5805 = vst [vmem:[#allocation47_spill] sm:$0xff] %v3967_v1  ;;  %v5806_v38 = vunpack.c.h.bf16 %v3908_v8  ;;  %v5807_v24 = vunpack.c.h.bf16 %v3913_v25  ;;  %v4002_v8 = vld [vmem:[%s5384_s2 + $0x300] sm:$0xff]  ;;  %v5816_v25 = vunpack.c.l.bf16 %v3941_v32  ;;  %v5821_v32 = vunpack.c.l.bf16 %v3962_v10 }
 0x15b   :  { %1071 = vmatpush2.msra.mxu0 %v5803_v44  ;;  %5813 = vst [vmem:[#allocation50_spill] sm:$0xff] %v4002_v8  ;;  %v5831_v60 = vunpack.c.h.bf16 %v4002_v8 }
 0x15c   :  { %931 = vmatprep.subr.mxu1 %v5806_v38  ;;  %1072 = vmatprep.subr.mxu0 %v5807_v24  ;;  %v3987_v38 = vld [vmem:[%s5384_s2 + $0x3b0] sm:$0xff]  ;;  %v4007_v24 = vld [vmem:[%s5384_s2 + $0x3a8] sm:$0xff] }
 0x15d   :  { %932 = vmatpush2.msra.mxu1 %v5557_v4  ;;  %1073 = vmatpush2.msra.mxu0 %v5808_v56  ;;  %5810 = vst [vmem:[#allocation49_spill] sm:$0xff] %v3987_v38  ;;  %v5811_v4 = vunpack.c.h.bf16 %v3936_v11  ;;  %5814 = vst [vmem:[#allocation51_spill] sm:$0xff] %v4007_v24  ;;  %v5815_v56 = vunpack.c.l.bf16 %v3936_v11  ;;  %v5822_v11 = vunpack.c.l.bf16 %v3967_v1  ;;  %v5828_v44 = vunpack.c.l.bf16 %v3987_v38 }
 0x15e   :  { %934 = vmatmul.mubr.f32.vlgmr.msra.gmra.mxu1 %v3505_v30  ;;  %1075 = vmatmul.mubr.f32.vlgmr.msra.gmra.mxu0 %v3505_v30 }
 0x15f   :  { %1151 = vmatprep.subr.mxu1 %v5811_v4  ;;  %1292 = vmatprep.subr.mxu0 %v5812_v13  ;;  %v4029_v4 = vld [vmem:[%s5384_s2 + $0x3a0] sm:$0xff]  ;;  %v5819_v13 = vunpack.c.h.bf16 %v3962_v10 }
 0x160   :  { %1152 = vmatpush1.msra.mxu1 %v5815_v56  ;;  %2555 = vmatprep.mubr.msk.f32.mxu1 %vm577_vm2, %v3501_v9  ;;  %v4024_v56 = vld [vmem:[%s5384_s2 + $0x2f8] sm:$0xff]  ;;  %5818 = vst [vmem:[#allocation53_spill] sm:$0xff] %v4029_v4 }
 0x161   :  { %1293 = vmatpush1.msra.mxu0 %v5816_v25  ;;  %2579 = vmatprep.mubr.msk.f32.mxu0 %vm577_vm2, %v3501_v9  ;;  %5817 = vst [vmem:[#allocation52_spill] sm:$0xff] %v4024_v56  ;;  %v5820_v25 = vunpack.c.h.bf16 %v3967_v1  ;;  %v5833_v1 = vunpack.c.l.bf16 %v4002_v8  ;;  %v5837_v10 = vunpack.c.h.bf16 %v4024_v56 }
 0x162   :  { %1153 = vmatprep.subr.mxu1 %v5819_v13  ;;  %v4046_v13 = vld [vmem:[%s5384_s2 + $0x2f0] sm:$0xff] }
 0x163   :  { %1294 = vmatprep.subr.mxu0 %v5820_v25  ;;  %1154 = vmatpush1.msra.mxu1 %v5821_v32  ;;  %5823 = vst [vmem:[#allocation54_spill] sm:$0xff] %v4046_v13  ;;  %v4051_v25 = vld [vmem:[%s5384_s2 + $0x398] sm:$0xff]  ;;  %v5826_v32 = vunpack.c.h.bf16 %v3987_v38  ;;  %v5839_v38 = vunpack.c.l.bf16 %v4024_v56  ;;  %v5843_v17 = vunpack.c.h.bf16 %v4046_v13 }
 0x164   :  { %1295 = vmatpush1.msra.mxu0 %v5822_v11  ;;  %5824 = vst [vmem:[#allocation55_spill] sm:$0xff] %v4051_v25  ;;  %1155 = vmatprep.subr.mxu1 %v5825_v18  ;;  %v4068_v18 = vld [vmem:[%s5384_s2 + $0x2e8] sm:$0xff]  ;;  %v5834_v11 = vunpack.c.l.bf16 %v4007_v24 }
 0x165   :  { %1296 = vmatprep.subr.mxu0 %v5826_v32  ;;  %1156 = vmatpush1.msra.mxu1 %v5827_v36  ;;  %5829 = vst [vmem:[#allocation56_spill] sm:$0xff] %v4068_v18  ;;  %v4073_v32 = vld [vmem:[%s5384_s2 + $0x390] sm:$0xff]  ;;  %v5832_v36 = vunpack.c.h.bf16 %v4007_v24  ;;  %v5845_v24 = vunpack.c.l.bf16 %v4046_v13  ;;  %v5849_v8 = vunpack.c.h.bf16 %v4068_v18 }
 0x166   :  { %1297 = vmatpush1.msra.mxu0 %v5828_v44  ;;  %5830 = vst [vmem:[#allocation57_spill] sm:$0xff] %v4073_v32  ;;  %1157 = vmatprep.subr.mxu1 %v5831_v60  ;;  %v4090_v60 = vld [vmem:[%s5384_s2 + $0x2e0] sm:$0xff]  ;;  %v5840_v44 = vunpack.c.l.bf16 %v4029_v4 }
 0x167   :  { %1298 = vmatprep.subr.mxu0 %v5832_v36  ;;  %1158 = vmatpush1.msra.mxu1 %v5833_v1  ;;  %5835 = vst [vmem:[#allocation58_spill] sm:$0xff] %v4090_v60  ;;  %v4095_v36 = vld [vmem:[%s5384_s2 + $0x388] sm:$0xff]  ;;  %v5838_v1 = vunpack.c.h.bf16 %v4029_v4  ;;  %v5851_v4 = vunpack.c.l.bf16 %v4068_v18  ;;  %v5855_v56 = vunpack.c.h.bf16 %v4090_v60 }
 0x168   :  { %1299 = vmatpush1.msra.mxu0 %v5834_v11  ;;  %5836 = vst [vmem:[#allocation59_spill] sm:$0xff] %v4095_v36  ;;  %1159 = vmatprep.subr.mxu1 %v5837_v10  ;;  %v4112_v10 = vld [vmem:[%s5384_s2 + $0x2d8] sm:$0xff]  ;;  %v5846_v11 = vunpack.c.l.bf16 %v4051_v25 }
 0x169   :  { %1300 = vmatprep.subr.mxu0 %v5838_v1  ;;  %1160 = vmatpush1.msra.mxu1 %v5839_v38  ;;  %5841 = vst [vmem:[#allocation60_spill] sm:$0xff] %v4112_v10  ;;  %v4117_v1 = vld [vmem:[%s5384_s2 + $0x380] sm:$0xff]  ;;  %v5844_v38 = vunpack.c.h.bf16 %v4051_v25  ;;  %v5857_v25 = vunpack.c.l.bf16 %v4090_v60  ;;  %v5861_v13 = vunpack.c.h.bf16 %v4112_v10 }
 0x16a   :  { %1301 = vmatpush1.msra.mxu0 %v5840_v44  ;;  %5842 = vst [vmem:[#allocation61_spill] sm:$0xff] %v4117_v1  ;;  %1161 = vmatprep.subr.mxu1 %v5843_v17  ;;  %v4134_v17 = vld [vmem:[%s5384_s2 + $0x2d0] sm:$0xff]  ;;  %v5852_v44 = vunpack.c.l.bf16 %v4073_v32 }
 0x16b   :  { %1302 = vmatprep.subr.mxu0 %v5844_v38  ;;  %1162 = vmatpush1.msra.mxu1 %v5845_v24  ;;  %5847 = vst [vmem:[#allocation62_spill] sm:$0xff] %v4134_v17  ;;  %v4139_v38 = vld [vmem:[%s5384_s2 + $0x378] sm:$0xff]  ;;  %v5850_v24 = vunpack.c.h.bf16 %v4073_v32  ;;  %v5863_v32 = vunpack.c.l.bf16 %v4112_v10  ;;  %v5867_v18 = vunpack.c.h.bf16 %v4134_v17 }
 0x16c   :  { %1303 = vmatpush1.msra.mxu0 %v5846_v11  ;;  %5848 = vst [vmem:[#allocation63_spill] sm:$0xff] %v4139_v38  ;;  %1163 = vmatprep.subr.mxu1 %v5849_v8  ;;  %v4156_v8 = vld [vmem:[%s5384_s2 + $0x2c8] sm:$0xff]  ;;  %v5858_v11 = vunpack.c.l.bf16 %v4095_v36 }
 0x16d   :  { %1304 = vmatprep.subr.mxu0 %v5850_v24  ;;  %1164 = vmatpush1.msra.mxu1 %v5851_v4  ;;  %5853 = vst [vmem:[#allocation64_spill] sm:$0xff] %v4156_v8  ;;  %v4161_v24 = vld [vmem:[%s5384_s2 + $0x370] sm:$0xff]  ;;  %v5856_v4 = vunpack.c.h.bf16 %v4095_v36  ;;  %v5869_v36 = vunpack.c.l.bf16 %v4134_v17  ;;  %v5873_v60 = vunpack.c.h.bf16 %v4156_v8 }
 0x16e   :  { %1305 = vmatpush1.msra.mxu0 %v5852_v44  ;;  %5854 = vst [vmem:[#allocation65_spill] sm:$0xff] %v4161_v24  ;;  %1165 = vmatprep.subr.mxu1 %v5855_v56  ;;  %v4178_v56 = vld [vmem:[%s5384_s2 + $0x2c0] sm:$0xff]  ;;  %v5864_v44 = vunpack.c.l.bf16 %v4117_v1 }
 0x16f   :  { %1306 = vmatprep.subr.mxu0 %v5856_v4  ;;  %1166 = vmatpush1.msra.mxu1 %v5857_v25  ;;  %5859 = vst [vmem:[#allocation66_spill] sm:$0xff] %v4178_v56  ;;  %v4183_v4 = vld [vmem:[%s5384_s2 + $0x368] sm:$0xff]  ;;  %v5862_v25 = vunpack.c.h.bf16 %v4117_v1  ;;  %v5875_v1 = vunpack.c.l.bf16 %v4156_v8  ;;  %v5879_v10 = vunpack.c.h.bf16 %v4178_v56 }
 0x170   :  { %1307 = vmatpush1.msra.mxu0 %v5858_v11  ;;  %5860 = vst [vmem:[#allocation67_spill] sm:$0xff] %v4183_v4  ;;  %1167 = vmatprep.subr.mxu1 %v5861_v13  ;;  %v4200_v13 = vld [vmem:[%s5384_s2 + $0x2b8] sm:$0xff]  ;;  %v5870_v11 = vunpack.c.l.bf16 %v4139_v38 }
 0x171   :  { %1308 = vmatprep.subr.mxu0 %v5862_v25  ;;  %1168 = vmatpush1.msra.mxu1 %v5863_v32  ;;  %5865 = vst [vmem:[#allocation68_spill] sm:$0xff] %v4200_v13  ;;  %v4205_v25 = vld [vmem:[%s5384_s2 + $0x360] sm:$0xff]  ;;  %v5868_v32 = vunpack.c.h.bf16 %v4139_v38  ;;  %v5881_v38 = vunpack.c.l.bf16 %v4178_v56  ;;  %v5885_v17 = vunpack.c.h.bf16 %v4200_v13 }
 0x172   :  { %1309 = vmatpush1.msra.mxu0 %v5864_v44  ;;  %5866 = vst [vmem:[#allocation69_spill] sm:$0xff] %v4205_v25  ;;  %1169 = vmatprep.subr.mxu1 %v5867_v18  ;;  %v4222_v18 = vld [vmem:[%s5384_s2 + $0x2b0] sm:$0xff]  ;;  %v5876_v44 = vunpack.c.l.bf16 %v4161_v24 }
 0x173   :  { %1310 = vmatprep.subr.mxu0 %v5868_v32  ;;  %1170 = vmatpush1.msra.mxu1 %v5869_v36  ;;  %5871 = vst [vmem:[#allocation70_spill] sm:$0xff] %v4222_v18  ;;  %v4227_v32 = vld [vmem:[%s5384_s2 + $0x358] sm:$0xff]  ;;  %v5874_v36 = vunpack.c.h.bf16 %v4161_v24  ;;  %v5887_v24 = vunpack.c.l.bf16 %v4200_v13  ;;  %v5891_v8 = vunpack.c.h.bf16 %v4222_v18 }
 0x174   :  { %1311 = vmatpush1.msra.mxu0 %v5870_v11  ;;  %5872 = vst [vmem:[#allocation71_spill] sm:$0xff] %v4227_v32  ;;  %1171 = vmatprep.subr.mxu1 %v5873_v60  ;;  %v4244_v60 = vld [vmem:[%s5384_s2 + $0x2a8] sm:$0xff]  ;;  %v5882_v11 = vunpack.c.l.bf16 %v4183_v4 }
 0x175   :  { %1312 = vmatprep.subr.mxu0 %v5874_v36  ;;  %1172 = vmatpush1.msra.mxu1 %v5875_v1  ;;  %5877 = vst [vmem:[#allocation72_spill] sm:$0xff] %v4244_v60  ;;  %v4249_v36 = vld [vmem:[%s5384_s2 + $0x350] sm:$0xff]  ;;  %v5880_v1 = vunpack.c.h.bf16 %v4183_v4  ;;  %v5893_v4 = vunpack.c.l.bf16 %v4222_v18  ;;  %v5895_v56 = vunpack.c.h.bf16 %v4244_v60 }
 0x176   :  { %1313 = vmatpush1.msra.mxu0 %v5876_v44  ;;  %5878 = vst [vmem:[#allocation73_spill] sm:$0xff] %v4249_v36  ;;  %1173 = vmatprep.subr.mxu1 %v5879_v10  ;;  %v4266_v10 = vld [vmem:[%s5384_s2 + $0x2a0] sm:$0xff]  ;;  %v5888_v44 = vunpack.c.l.bf16 %v4205_v25 }
 0x177   :  { %1314 = vmatprep.subr.mxu0 %v5880_v1  ;;  %1174 = vmatpush1.msra.mxu1 %v5881_v38  ;;  %5883 = vst [vmem:[#allocation74_spill] sm:$0xff] %v4266_v10  ;;  %v4271_v1 = vld [vmem:[%s5384_s2 + $0x348] sm:$0xff]  ;;  %v5886_v38 = vunpack.c.h.bf16 %v4205_v25  ;;  %v5897_v25 = vunpack.c.l.bf16 %v4244_v60  ;;  %v5899_v13 = vunpack.c.h.bf16 %v4266_v10 }
 0x178   :  { %1315 = vmatpush1.msra.mxu0 %v5882_v11  ;;  %5884 = vst [vmem:[#allocation75_spill] sm:$0xff] %v4271_v1  ;;  %1175 = vmatprep.subr.mxu1 %v5885_v17  ;;  %v4288_v17 = vld [vmem:[%s5384_s2 + $0x340] sm:$0x11]  ;;  %v5894_v11 = vunpack.c.l.bf16 %v4227_v32  ;;  %v4385_v60 = vld [vmem:[%s5384_s2 + $0x3c8] sm:$0xff] }
 0x179   :  { %1316 = vmatprep.subr.mxu0 %v5886_v38  ;;  %1176 = vmatpush1.msra.mxu1 %v5887_v24  ;;  %5889 = vst [vmem:[#allocation76_spill] sm:$0xff] %v4288_v17  ;;  %v4293_v38 = vld [vmem:[%s5384_s2 + $0x3e8] sm:$0x11]  ;;  %v5892_v24 = vunpack.c.h.bf16 %v4227_v32  ;;  %v5901_v32 = vunpack.c.l.bf16 %v4266_v10  ;;  %v5903_v18 = vunpack.c.h.bf16 %v4288_v17  ;;  %5908 = vst [vmem:[#allocation79_spill] sm:$0xff] %v4385_v60 }
 0x17a   :  { %1317 = vmatpush1.msra.mxu0 %v5888_v44  ;;  %5890 = vst [vmem:[#allocation77_spill] sm:$0xff] %v4293_v38  ;;  %1177 = vmatprep.subr.mxu1 %v5891_v8  ;;  %v4310_v8 = vld [vmem:[%s5384_s2 + $0x338] sm:$0xff]  ;;  %v5898_v44 = vunpack.c.l.bf16 %v4249_v36 }
 0x17b   :  { %1318 = vmatprep.subr.mxu0 %v5892_v24  ;;  %1178 = vmatpush1.msra.mxu1 %v5893_v4  ;;  %v4315_v24 = vld [vmem:[%s5384_s2 + $0x3e0] sm:$0xff]  ;;  %v5896_v4 = vunpack.c.h.bf16 %v4249_v36  ;;  %v5905_v36 = vunpack.c.l.bf16 %v4288_v17  ;;  %v4438_v17 = vld [vmem:[%s5384_s2 + $0x458] sm:$0xff] }
 0x17c   :  { %1319 = vmatpush1.msra.mxu0 %v5894_v11  ;;  %1179 = vmatprep.subr.mxu1 %v5895_v56  ;;  %v4332_v56 = vld [vmem:[%s5384_s2 + $0x330] sm:$0xff]  ;;  %v5902_v11 = vunpack.c.l.bf16 %v4271_v1  ;;  %5923 = vst [vmem:[#allocation82_spill] sm:$0xff] %v4438_v17 }
 0x17d   :  { %1320 = vmatprep.subr.mxu0 %v5896_v4  ;;  %1180 = vmatpush1.msra.mxu1 %v5897_v25  ;;  %v4337_v4 = vld [vmem:[%s5384_s2 + $0x3d8] sm:$0xff]  ;;  %v5900_v25 = vunpack.c.h.bf16 %v4271_v1  ;;  %v5911_v1 = vunpack.c.l.bf16 %v4310_v8  ;;  %v5913_v50 = vunpack.c.h.bf16 %v4332_v56 }
 0x17e   :  { %1321 = vmatpush1.msra.mxu0 %v5898_v44  ;;  %1181 = vmatprep.subr.mxu1 %v5899_v13  ;;  %v4354_v13 = vld [vmem:[%s5384_s2 + $0x328] sm:$0xff]  ;;  %v5906_v44 = vunpack.c.l.bf16 %v4293_v38  ;;  %v5917_v10 = vunpack.c.l.bf16 %v4337_v4 }
 0x17f   :  { %1322 = vmatprep.subr.mxu0 %v5900_v25  ;;  %1182 = vmatpush1.msra.mxu1 %v5901_v32  ;;  %v4359_v25 = vld [vmem:[%s5384_s2 + $0x3d0] sm:$0xff]  ;;  %v5904_v32 = vunpack.c.h.bf16 %v4293_v38  ;;  %v5912_v38 = vunpack.c.l.bf16 %v4315_v24 }
 0x180   :  { %1323 = vmatpush1.msra.mxu0 %v5902_v11  ;;  %2553 = vmatprep.subr.msk.mxu1 %vm292_vm1, %v5903_v18  ;;  %v5910_v11 = vunpack.c.h.bf16 %v4315_v24  ;;  %v4423_v18 = vld [vmem:[%s5384_s2 + $0x460] sm:$0xff] }
 0x181   :  { %2577 = vmatprep.subr.msk.mxu0 %vm292_vm1, %v5904_v32  ;;  %2554 = vmatpush2.msk.msra.mxu1 %vm292_vm1, %v5905_v36  ;;  %v4380_v32 = vld [vmem:[%s5384_s2 + $0x320] sm:$0xff]  ;;  %v5909_v36 = vunpack.c.h.bf16 %v4310_v8  ;;  %5919 = vst [vmem:[#allocation81_spill] sm:$0xff] %v4423_v18 }
 0x182   :  { %2578 = vmatpush2.msk.msra.mxu0 %vm292_vm1, %v5906_v44  ;;  %5907 = vst [vmem:[#allocation78_spill] sm:$0xff] %v4380_v32  ;;  %v5638_v44 = vunpack.c.h.bf16 %v4354_v13 }
 0x183   :  { %1207 = vmatprep.subr.mxu1 %v5909_v36  ;;  %1348 = vmatprep.subr.mxu0 %v5910_v11  ;;  %v5914_v36 = vunpack.c.h.bf16 %v4337_v4  ;;  %v5639_v11 = vunpack.c.h.bf16 %v4380_v32 }
 0x184   :  { %1208 = vmatpush2.msra.mxu1 %v5911_v1  ;;  %1349 = vmatpush2.msra.mxu0 %v5912_v38  ;;  %v4408_v1 = vld [vmem:[%s5384_s2 + $0x468] sm:$0xff]  ;;  %v5916_v38 = vunpack.c.l.bf16 %v4332_v56 }
 0x185   :  { %1209 = vmatprep.subr.mxu1 %v5913_v50  ;;  %1350 = vmatprep.subr.mxu0 %v5914_v36  ;;  %5915 = vst [vmem:[#allocation80_spill] sm:$0xff] %v4408_v1  ;;  %v5918_v36 = vunpack.c.h.bf16 %v4359_v25 }
 0x186   :  { %1210 = vmatpush2.msra.mxu1 %v5916_v38  ;;  %1351 = vmatpush2.msra.mxu0 %v5917_v10  ;;  %v5920_v38 = vunpack.c.l.bf16 %v4354_v13  ;;  %v5921_v10 = vunpack.c.l.bf16 %v4359_v25 }
 0x187   :  { %1211 = vmatprep.subr.mxu1 %v5638_v44  ;;  %1352 = vmatprep.subr.mxu0 %v5918_v36  ;;  %v5922_v44 = vunpack.c.h.bf16 %v4385_v60  ;;  %v5927_v36 = vunpack.c.h.bf16 %v4408_v1 }
 0x188   :  { %1212 = vmatpush2.msra.mxu1 %v5920_v38  ;;  %1353 = vmatpush2.msra.mxu0 %v5921_v10  ;;  %v5924_v38 = vunpack.c.l.bf16 %v4380_v32  ;;  %v5925_v10 = vunpack.c.l.bf16 %v4385_v60  ;;  %v5930_v60 = vunpack.c.h.bf16 %v4423_v18  ;;  %v5931_v32 = vunpack.c.l.bf16 %v4423_v18 }
 0x189   :  { %1213 = vmatprep.subr.mxu1 %v5639_v11  ;;  %1354 = vmatprep.subr.mxu0 %v5922_v44  ;;  %v4451_v11 = vld [vmem:[%s5384_s2 + $0x450] sm:$0xff]  ;;  %v4464_v44 = vld [vmem:[%s5384_s2 + $0x448] sm:$0xff] }
 0x18a   :  { %1214 = vmatpush2.msra.mxu1 %v5924_v38  ;;  %1355 = vmatpush2.msra.mxu0 %v5925_v10  ;;  %5926 = vst [vmem:[#allocation83_spill] sm:$0xff] %v4451_v11  ;;  %v5648_v38 = vunpack.c.h.bf16 %v4438_v17  ;;  %v5928_v10 = vunpack.c.l.bf16 %v4408_v1  ;;  %5929 = vst [vmem:[#allocation84_spill] sm:$0xff] %v4464_v44  ;;  %v5654_v50 = vunpack.c.h.bf16 %v4464_v44  ;;  %v5933_v1 = vunpack.c.l.bf16 %v4438_v17 }
 0x18b   :  { %1216 = vmatmul.mubr.f32.vlgmr.msra.gmra.mxu1 %v3505_v30  ;;  %1357 = vmatmul.mubr.f32.vlgmr.msra.gmra.mxu0 %v3505_v30  ;;  %v5935_v18 = vunpack.c.l.bf16 %v4451_v11  ;;  %v5937_v17 = vunpack.c.l.bf16 %v4464_v44 }
 0x18c   :  { %1433 = vmatprep.subr.mxu1 %v5927_v36  ;;  %2603 = vmatprep.mubr.msk.f32.mxu1 %vm577_vm2, %v3501_v9  ;;  %v5651_v36 = vunpack.c.h.bf16 %v4451_v11 }
 0x18d   :  { %1434 = vmatpush1.msra.mxu1 %v5928_v10  ;;  %v4475_v10 = vld [vmem:[%s5384_s2 + $0x440] sm:$0xff] }
 0x18e   :  { %1435 = vmatprep.subr.mxu1 %v5930_v60  ;;  %5932 = vst [vmem:[#allocation85_spill] sm:$0xff] %v4475_v10  ;;  %v5657_v9 = vunpack.c.h.bf16 %v4475_v10  ;;  %v5939_v11 = vunpack.c.l.bf16 %v4475_v10 }
 0x18f   :  { %1436 = vmatpush1.msra.mxu1 %v5931_v32  ;;  %v4486_v32 = vld [vmem:[%s5384_s2 + $0x438] sm:$0xff] }
 0x190   :  { %1437 = vmatprep.subr.mxu1 %v5648_v38  ;;  %5934 = vst [vmem:[#allocation86_spill] sm:$0xff] %v4486_v32  ;;  %v5660_v60 = vunpack.c.h.bf16 %v4486_v32  ;;  %v5941_v44 = vunpack.c.l.bf16 %v4486_v32 }
 0x191   :  { %1438 = vmatpush1.msra.mxu1 %v5933_v1  ;;  %v4497_v1 = vld [vmem:[%s5384_s2 + $0x430] sm:$0xff] }
 0x192   :  { %1439 = vmatprep.subr.mxu1 %v5651_v36  ;;  %5936 = vst [vmem:[#allocation87_spill] sm:$0xff] %v4497_v1  ;;  %v5663_v38 = vunpack.c.h.bf16 %v4497_v1  ;;  %v5943_v10 = vunpack.c.l.bf16 %v4497_v1 }
 0x193   :  { %1440 = vmatpush1.msra.mxu1 %v5935_v18  ;;  %v4508_v18 = vld [vmem:[%s5384_s2 + $0x428] sm:$0xff] }
 0x194   :  { %1441 = vmatprep.subr.mxu1 %v5654_v50  ;;  %5938 = vst [vmem:[#allocation88_spill] sm:$0xff] %v4508_v18  ;;  %v5666_v36 = vunpack.c.h.bf16 %v4508_v18  ;;  %v5945_v32 = vunpack.c.l.bf16 %v4508_v18 }
 0x195   :  { %1442 = vmatpush1.msra.mxu1 %v5937_v17  ;;  %v4519_v17 = vld [vmem:[%s5384_s2 + $0x420] sm:$0xff] }
 0x196   :  { %1443 = vmatprep.subr.mxu1 %v5657_v9  ;;  %5940 = vst [vmem:[#allocation89_spill] sm:$0xff] %v4519_v17  ;;  %v5669_v50 = vunpack.c.h.bf16 %v4519_v17  ;;  %v5947_v1 = vunpack.c.l.bf16 %v4519_v17 }
 0x197   :  { %1444 = vmatpush1.msra.mxu1 %v5939_v11  ;;  %v4530_v11 = vld [vmem:[%s5384_s2 + $0x418] sm:$0xff] }
 0x198   :  { %1445 = vmatprep.subr.mxu1 %v5660_v60  ;;  %5942 = vst [vmem:[#allocation90_spill] sm:$0xff] %v4530_v11  ;;  %v5672_v9 = vunpack.c.h.bf16 %v4530_v11  ;;  %v5949_v18 = vunpack.c.l.bf16 %v4530_v11 }
 0x199   :  { %1446 = vmatpush1.msra.mxu1 %v5941_v44  ;;  %v4541_v44 = vld [vmem:[%s5384_s2 + $0x410] sm:$0xff] }
 0x19a   :  { %1447 = vmatprep.subr.mxu1 %v5663_v38  ;;  %5944 = vst [vmem:[#allocation91_spill] sm:$0xff] %v4541_v44  ;;  %v5675_v60 = vunpack.c.h.bf16 %v4541_v44  ;;  %v5951_v17 = vunpack.c.l.bf16 %v4541_v44 }
 0x19b   :  { %1448 = vmatpush1.msra.mxu1 %v5943_v10  ;;  %v4552_v10 = vld [vmem:[%s5384_s2 + $0x408] sm:$0xff] }
 0x19c   :  { %1449 = vmatprep.subr.mxu1 %v5666_v36  ;;  %5946 = vst [vmem:[#allocation92_spill] sm:$0xff] %v4552_v10  ;;  %v5678_v38 = vunpack.c.h.bf16 %v4552_v10  ;;  %v5953_v11 = vunpack.c.l.bf16 %v4552_v10 }
 0x19d   :  { %1450 = vmatpush1.msra.mxu1 %v5945_v32  ;;  %v4563_v32 = vld [vmem:[%s5384_s2 + $0x400] sm:$0xff] }
 0x19e   :  { %1451 = vmatprep.subr.mxu1 %v5669_v50  ;;  %5948 = vst [vmem:[#allocation93_spill] sm:$0xff] %v4563_v32  ;;  %v5681_v36 = vunpack.c.h.bf16 %v4563_v32  ;;  %v5955_v44 = vunpack.c.l.bf16 %v4563_v32 }
 0x19f   :  { %1452 = vmatpush1.msra.mxu1 %v5947_v1  ;;  %v4574_v1 = vld [vmem:[%s5384_s2 + $0x3f8] sm:$0xff] }
 0x1a0   :  { %1453 = vmatprep.subr.mxu1 %v5672_v9  ;;  %5950 = vst [vmem:[#allocation94_spill] sm:$0xff] %v4574_v1  ;;  %v5684_v50 = vunpack.c.h.bf16 %v4574_v1  ;;  %v5956_v10 = vunpack.c.l.bf16 %v4574_v1 }
 0x1a1   :  { %1454 = vmatpush1.msra.mxu1 %v5949_v18  ;;  %v4585_v18 = vld [vmem:[%s5384_s2 + $0x3f0] sm:$0xff] }
 0x1a2   :  { %1455 = vmatprep.subr.mxu1 %v5675_v60  ;;  %5952 = vst [vmem:[#allocation95_spill] sm:$0xff] %v4585_v18  ;;  %v5685_v9 = vunpack.c.h.bf16 %v4585_v18  ;;  %v5957_v32 = vunpack.c.l.bf16 %v4585_v18 }
 0x1a3   :  { %1456 = vmatpush1.msra.mxu1 %v5951_v17  ;;  %v4596_v17 = vld [vmem:[%s5384_s2 + $0x490] sm:$0x11] }
 0x1a4   :  { %1457 = vmatprep.subr.mxu1 %v5678_v38  ;;  %5954 = vst [vmem:[#allocation96_spill] sm:$0xff] %v4596_v17  ;;  %v5688_v60 = vunpack.c.h.bf16 %v4596_v17 }
 0x1a5   :  { %1458 = vmatpush1.msra.mxu1 %v5953_v11  ;;  %v4607_v11 = vld [vmem:[%s5384_s2 + $0x488] sm:$0xff] }
 0x1a6   :  { %1459 = vmatprep.subr.mxu1 %v5681_v36 }
 0x1a7   :  { %1460 = vmatpush1.msra.mxu1 %v5955_v44  ;;  %v4618_v44 = vld [vmem:[%s5384_s2 + $0x480] sm:$0xff] }
 0x1a8   :  { %1461 = vmatprep.subr.mxu1 %v5684_v50  ;;  %v1421_v38 = vunpack.c.l.bf16 %v4618_v44  ;;  %v5959_v50 = vunpack.c.h.bf16 %v4607_v11 }
 0x1a9   :  { %1462 = vmatpush1.msra.mxu1 %v5956_v10  ;;  %v4629_v10 = vld [vmem:[%s5384_s2 + $0x478] sm:$0xff] }
 0x1aa   :  { %1463 = vmatprep.subr.mxu1 %v5685_v9  ;;  %v5958_v9 = vunpack.c.l.bf16 %v4596_v17  ;;  %v5693_v18 = vunpack.c.h.bf16 %v4629_v10  ;;  %v5694_v36 = vunpack.c.l.bf16 %v4629_v10  ;;  %v5961_v17 = vunpack.c.h.bf16 %v4618_v44 }
 0x1ab   :  { %1464 = vmatpush1.msra.mxu1 %v5957_v32  ;;  %v4642_v32 = vld [vmem:[%s5384_s2 + $0x470] sm:$0xff] }
 0x1ac   :  { %2601 = vmatprep.subr.msk.mxu1 %vm292_vm1, %v5688_v60  ;;  %v5960_v60 = vunpack.c.l.bf16 %v4607_v11  ;;  %v1417_v1 = vunpack.c.l.bf16 %v4642_v32 }
 0x1ad   :  { %2602 = vmatpush2.msk.msra.mxu1 %vm292_vm1, %v5958_v9  ;;  %v5695_v9 = vunpack.c.h.bf16 %v4642_v32 }
 0x1ae   :  { %1489 = vmatprep.subr.mxu1 %v5959_v50  ;;  %v5962_v50 = vunpack.c.h.bf16 %v2947_v2 }
 0x1af   :  { %1490 = vmatpush2.msra.mxu1 %v5960_v60  ;;  %v5963_v60 = vunpack.c.l.bf16 %v2947_v2  ;;  %v5970_v2 = vunpack.c.h.bf16 %v3080_v16 }
 0x1b0   :  { %1491 = vmatprep.subr.mxu1 %v5961_v17  ;;  %v5964_v17 = vunpack.c.h.bf16 %v3034_v63 }
 0x1b1   :  { %1492 = vmatpush2.msra.mxu1 %v1421_v38 }
 0x1b2   :  { %1493 = vmatprep.subr.mxu1 %v5693_v18  ;;  %v5965_v18 = vunpack.c.l.bf16 %v3034_v63  ;;  %v5972_v63 = vunpack.c.h.bf16 %v3098_v22 }
 0x1b3   :  { %1494 = vmatpush2.msra.mxu1 %v5694_v36  ;;  %v5966_v36 = vunpack.c.h.bf16 %v3048_v6 }
 0x1b4   :  { %1495 = vmatprep.subr.mxu1 %v5695_v9  ;;  %v5967_v9 = vunpack.c.l.bf16 %v3048_v6  ;;  %v5974_v6 = vunpack.c.h.bf16 %v3116_v28 }
 0x1b5   :  { %1496 = vmatpush2.msra.mxu1 %v1417_v1 }
 0x1b6   :  { %1498 = vmatmul.mubr.f32.vlgmr.msra.gmra.mxu1 %v3505_v30  ;;  %1703 = vmatprep.subr.mxu1 %v5962_v50  ;;  %v5968_v30 = vunpack.c.h.bf16 %v3070_v14  ;;  %v5969_v50 = vunpack.c.l.bf16 %v3070_v14  ;;  %v5976_v14 = vunpack.c.h.bf16 %v3138_v34 }
 0x1b7   :  { %1704 = vmatpush1.msra.mxu1 %v5963_v60  ;;  %v5971_v60 = vunpack.c.l.bf16 %v3080_v16  ;;  %v5978_v16 = vunpack.c.h.bf16 %v3160_v40 }
 0x1b8   :  { %1705 = vmatprep.subr.mxu1 %v5964_v17  ;;  %v5979_v17 = vunpack.c.l.bf16 %v3160_v40  ;;  %v5986_v40 = vunpack.c.h.bf16 %v3248_v33 }
 0x1b9   :  { %1706 = vmatpush1.msra.mxu1 %v5965_v18  ;;  %v5975_v18 = vunpack.c.l.bf16 %v3116_v28  ;;  %v5982_v28 = vunpack.c.h.bf16 %v3204_v52 }
 0x1ba   :  { %1707 = vmatprep.subr.mxu1 %v5966_v36  ;;  %v5973_v36 = vunpack.c.l.bf16 %v3098_v22  ;;  %v5980_v22 = vunpack.c.h.bf16 %v3182_v46 }
 0x1bb   :  { %1708 = vmatpush1.msra.mxu1 %v5967_v9  ;;  %v5977_v9 = vunpack.c.l.bf16 %v3138_v34  ;;  %v5984_v34 = vunpack.c.h.bf16 %v3226_v59 }
 0x1bc   :  { %1709 = vmatprep.subr.mxu1 %v5968_v30  ;;  %v5981_v30 = vunpack.c.l.bf16 %v3182_v46  ;;  %v5988_v46 = vunpack.c.h.bf16 %v3270_v19 }
 0x1bd   :  { %1710 = vmatpush1.msra.mxu1 %v5969_v50  ;;  %v5983_v50 = vunpack.c.l.bf16 %v3204_v52  ;;  %v5990_v52 = vunpack.c.h.bf16 %v3292_v5 }
 0x1be   :  { %1711 = vmatprep.subr.mxu1 %v5970_v2  ;;  %v5985_v2 = vunpack.c.l.bf16 %v3226_v59  ;;  %v5992_v59 = vunpack.c.h.bf16 %v3314_v51 }
 0x1bf   :  { %1712 = vmatpush1.msra.mxu1 %v5971_v60  ;;  %v5987_v60 = vunpack.c.l.bf16 %v3248_v33  ;;  %v5994_v33 = vunpack.c.h.bf16 %v3336_v58 }
 0x1c0   :  { %1713 = vmatprep.subr.mxu1 %v5972_v63  ;;  %v5989_v63 = vunpack.c.l.bf16 %v3270_v19  ;;  %v5996_v19 = vunpack.c.h.bf16 %v3358_v37 }
 0x1c1   :  { %1714 = vmatpush1.msra.mxu1 %v5973_v36  ;;  %v5991_v36 = vunpack.c.l.bf16 %v3292_v5  ;;  %v5997_v5 = vunpack.c.l.bf16 %v3358_v37  ;;  %v6004_v37 = vunpack.c.h.bf16 %v3470_v39 }
 0x1c2   :  { %1715 = vmatprep.subr.mxu1 %v5974_v6  ;;  %v5993_v6 = vunpack.c.l.bf16 %v3314_v51  ;;  %v5999_v51 = vunpack.c.l.bf16 %v3404_v54 }
 0x1c3   :  { %1716 = vmatpush1.msra.mxu1 %v5975_v18  ;;  %v5995_v18 = vunpack.c.l.bf16 %v3336_v58  ;;  %v6002_v58 = vunpack.c.h.bf16 %v3448_v62 }
 0x1c4   :  { %1717 = vmatprep.subr.mxu1 %v5976_v14  ;;  %v5998_v14 = vunpack.c.h.bf16 %v3404_v54  ;;  %v1506_v54 = vld [vmem:[%s5386_s4] sm:$0xff] }
 0x1c5   :  { %1718 = vmatpush1.msra.mxu1 %v5977_v9  ;;  %v6000_v9 = vunpack.c.h.bf16 %v3426_v26 }
 0x1c6   :  { %1719 = vmatprep.subr.mxu1 %v5978_v16  ;;  %v6001_v16 = vunpack.c.l.bf16 %v3426_v26  ;;  %v1507_v26 = vld [vmem:[%s5386_s4 + $0x8] sm:$0xff] }
 0x1c7   :  { %1720 = vmatpush1.msra.mxu1 %v5979_v17  ;;  %v6003_v17 = vunpack.c.l.bf16 %v3448_v62 }
 0x1c8   :  { %1721 = vmatprep.subr.mxu1 %v5980_v22  ;;  %v2681_v22 = vmov 0.0  }
 0x1c9   :  { %1722 = vmatpush1.msra.mxu1 %v5981_v30  ;;  %1589 = vmatprep.mubr.f32.mxu0 %v2681_v22  ;;  %v2682_v30 = vmov 0  }
 0x1ca   :  { %1723 = vmatprep.subr.mxu1 %v5982_v28  ;;  %2641 = vset.pattern.permute.xlu0 %v2682_v30 }
 0x1cb   :  { %1724 = vmatpush1.msra.mxu1 %v5983_v50  ;;  %2642 = vset.pattern.permute.xlu1 %v2682_v30  ;;  %v6016_v30 = vunpack.c.l.bf16 %v3103_v23 }
 0x1cc   :  { %1725 = vmatprep.subr.mxu1 %v5984_v34  ;;  %1510 = vperm.xlu0 %2641, %v1506_v54   ;;  %v6014_v54 = vunpack.c.l.bf16 %v3093_v21 }
 0x1cd   :  { %1726 = vmatpush1.msra.mxu1 %v5985_v2 }
 0x1ce   :  { %1727 = vmatprep.subr.mxu1 %v5986_v40 }
 0x1cf   :  { %1728 = vmatpush1.msra.mxu1 %v5987_v60 }
 0x1d0   :  { %1729 = vmatprep.subr.mxu1 %v5988_v46  ;;  %1515 = vperm.xlu0 %2641, %v1507_v26   ;;  %v6018_v26 = vunpack.c.l.bf16 %v3121_v29 }
 0x1d1   :  { %1730 = vmatpush1.msra.mxu1 %v5989_v63 }
 0x1d2   :  { %1731 = vmatprep.subr.mxu1 %v5990_v52 }
 0x1d3   :  { %1732 = vmatpush1.msra.mxu1 %v5991_v36 }
 0x1d4   :  { %1733 = vmatprep.subr.mxu1 %v5992_v59 }
 0x1d5   :  { %1734 = vmatpush1.msra.mxu1 %v5993_v6 }
 0x1d6   :  { %2606 = vmatprep.subr.msk.mxu1 %vm292_vm1, %v5994_v33 }
 0x1d7   :  { %2607 = vmatpush2.msk.msra.mxu1 %vm292_vm1, %v5995_v18  ;;  %v1504_v18 = vld [vmem:[%s5385_s3] sm:$0xff] }
 0x1d8   :  { %1759 = vmatprep.subr.mxu1 %v5996_v19  ;;  %v6005_v19 = vunpack.c.h.bf16 %v3018_v57 }
 0x1d9   :  { %1760 = vmatpush2.msra.mxu1 %v5997_v5  ;;  %v1505_v5 = vld [vmem:[%s5385_s3 + $0x8] sm:$0xff] }
 0x1da   :  { %1761 = vmatprep.subr.mxu1 %v5998_v14  ;;  %v6006_v14 = vunpack.c.l.bf16 %v3018_v57  ;;  %v6013_v57 = vunpack.c.h.bf16 %v3093_v21  ;;  %v6021_v21 = vunpack.c.h.bf16 %v3165_v41 }
 0x1db   :  { %1762 = vmatpush2.msra.mxu1 %v5999_v51  ;;  %v6007_v51 = vunpack.c.h.bf16 %v3039_v0 }
 0x1dc   :  { %1763 = vmatprep.subr.mxu1 %v6000_v9  ;;  %v6008_v9 = vunpack.c.l.bf16 %v3039_v0  ;;  %v6015_v0 = vunpack.c.h.bf16 %v3103_v23  ;;  %v6023_v23 = vunpack.c.h.bf16 %v3187_v47 }
 0x1dd   :  { %1764 = vmatpush2.msra.mxu1 %v6001_v16  ;;  %v6009_v16 = vunpack.c.h.bf16 %v3053_v7 }
 0x1de   :  { %1765 = vmatprep.subr.mxu1 %v6002_v58  ;;  %v6010_v58 = vunpack.c.l.bf16 %v3053_v7  ;;  %v6017_v7 = vunpack.c.h.bf16 %v3121_v29  ;;  %v6025_v29 = vunpack.c.h.bf16 %v3209_v53 }
 0x1df   :  { %1766 = vmatpush2.msra.mxu1 %v6003_v17  ;;  %v6011_v17 = vunpack.c.h.bf16 %v3075_v15 }
 0x1e0   :  { %1857 = vmatprep.subr.mxu1 %v6004_v37  ;;  %v6012_v37 = vunpack.c.l.bf16 %v3075_v15  ;;  %v6019_v15 = vunpack.c.h.bf16 %v3143_v35 }
 0x1f1   :  { %v653_v62 = vpop.f32.mrf.mxu1  ;;  %v794_v50 = vpop.f32.mrf.mxu0 }
 0x1f3   :  { %v655_v28 = vpop.f32.mrf.mxu1  ;;  %v796_v2 = vpop.f32.mrf.mxu0 }
 0x21e   :  { %v935_v34 = vpop.f32.mrf.mxu1  ;;  %v1076_v60 = vpop.f32.mrf.mxu0 }
 0x220   :  { %v937_v40 = vpop.f32.mrf.mxu1  ;;  %v1078_v63 = vpop.f32.mrf.mxu0 }
 0x24b   :  { %v1217_v46 = vpop.f32.mrf.mxu1  ;;  %v1358_v36 = vpop.f32.mrf.mxu0 }
 0x24d   :  { %v1219_v52 = vpop.f32.mrf.mxu1  ;;  %v1360_v33 = vpop.f32.mrf.mxu0 }
 0x276   :  { %v1499_v59 = vpop.f32.mrf.mxu1 }
 0x278   :  { %v1501_v6 = vpop.f32.mrf.mxu1 }
 0x279   :  { %1543 = vmatprep.subr.mxu0 %v1501_v6  ;;  %v6044_v6 = vunpack.c.l.bf16 %v3431_v27 }
 0x27a   :  { %1544 = vmatpush1.msra.mxu0 %v1499_v59  ;;  %v6043_v59 = vunpack.c.h.bf16 %v3431_v27 }
 0x27b   :  { %1545 = vmatprep.subr.mxu0 %v1360_v33  ;;  %v6046_v33 = vunpack.c.l.bf16 %v3453_v48 }
 0x27c   :  { %1546 = vmatpush1.msra.mxu0 %v1358_v36  ;;  %v6041_v36 = vunpack.c.h.bf16 %v3409_v12 }
 0x27d   :  { %1547 = vmatprep.subr.mxu0 %v1219_v52  ;;  %v6038_v52 = vunpack.c.l.bf16 %v3341_v20 }
 0x27e   :  { %1548 = vmatpush1.msra.mxu0 %v1217_v46  ;;  %v6034_v46 = vunpack.c.l.bf16 %v3297_v43 }
 0x27f   :  { %1549 = vmatprep.subr.mxu0 %v1078_v63  ;;  %v6036_v63 = vunpack.c.l.bf16 %v3319_v31 }
 0x280   :  { %1550 = vmatpush1.msra.mxu0 %v1076_v60  ;;  %v6032_v60 = vunpack.c.l.bf16 %v3275_v55 }
 0x281   :  { %1551 = vmatprep.subr.mxu0 %v937_v40  ;;  %v6030_v40 = vunpack.c.l.bf16 %v3253_v49 }
 0x282   :  { %1552 = vmatpush1.msra.mxu0 %v935_v34  ;;  %v6026_v34 = vunpack.c.l.bf16 %v3209_v53  ;;  %v6033_v53 = vunpack.c.h.bf16 %v3297_v43  ;;  %v6040_v43 = vunpack.c.l.bf16 %v3363_v3 }
 0x283   :  { %1553 = vmatprep.subr.mxu0 %v796_v2  ;;  %v6028_v2 = vunpack.c.l.bf16 %v3231_v61 }
 0x284   :  { %1554 = vmatpush1.msra.mxu0 %v794_v50  ;;  %v6024_v50 = vunpack.c.l.bf16 %v3187_v47  ;;  %v6031_v47 = vunpack.c.h.bf16 %v3275_v55  ;;  %v6039_v55 = vunpack.c.h.bf16 %v3363_v3  ;;  %v6047_v3 = vunpack.c.h.bf16 %v3475_v45 }
 0x285   :  { %1555 = vmatprep.subr.mxu0 %v655_v28  ;;  %v6022_v28 = vunpack.c.l.bf16 %v3165_v41  ;;  %v6029_v41 = vunpack.c.h.bf16 %v3253_v49  ;;  %v6037_v49 = vunpack.c.h.bf16 %v3341_v20  ;;  %v6045_v20 = vunpack.c.h.bf16 %v3453_v48 }
 0x286   :  { %1556 = vmatpush1.msra.mxu0 %v653_v62  ;;  %v6020_v62 = vunpack.c.l.bf16 %v3143_v35  ;;  %v6027_v35 = vunpack.c.h.bf16 %v3231_v61  ;;  %v6035_v61 = vunpack.c.h.bf16 %v3319_v31  ;;  %v6042_v31 = vunpack.c.l.bf16 %v3409_v12 }
 0x287   :  { %2604 = vmatmul.mubr.msk.f32.vlgmr.msra.gmra.mxu0 %vm1518_vm3, %v1504_v18  ;;  %1780 = vmatprep.subr.mxu0 %v6005_v19  ;;  %v1511_v18 = vpop.permute.xlu0 %1510 }
 0x288   :  { %1595 = vmatprep.mubr.f32.mxu0 %v2681_v22  ;;  %1781 = vmatpush1.msra.mxu0 %v6006_v14 }
 0x289   :  { %1782 = vmatprep.subr.mxu0 %v6007_v51 }
 0x28a   :  { %1783 = vmatpush1.msra.mxu0 %v6008_v9 }
 0x28b   :  { %2605 = vmatmul.mubr.msk.f32.gmra.mxu0 %vm1518_vm3, %v1505_v5  ;;  %1784 = vmatprep.subr.mxu0 %v6009_v16  ;;  %v1516_v16 = vpop.permute.xlu0 %1515 }
 0x28c   :  { %1785 = vmatpush1.msra.mxu0 %v6010_v58 }
 0x28d   :  { %1786 = vmatprep.subr.mxu0 %v6011_v17 }
 0x28e   :  { %1787 = vmatpush1.msra.mxu0 %v6012_v37 }
 0x28f   :  { %1788 = vmatprep.subr.mxu0 %v6013_v57 }
 0x290   :  { %1789 = vmatpush1.msra.mxu0 %v6014_v54  ;;  %v1653_v54 = vld [vmem:[%s5387_s5] sm:$0xff] }
 0x291   :  { %1790 = vmatprep.subr.mxu0 %v6015_v0 }
 0x292   :  { %1791 = vmatpush1.msra.mxu0 %v6016_v30 }
 0x293   :  { %1792 = vmatprep.subr.mxu0 %v6017_v7 }
 0x294   :  { %1793 = vmatpush1.msra.mxu0 %v6018_v26 }
 0x295   :  { %1794 = vmatprep.subr.mxu0 %v6019_v15 }
 0x296   :  { %1795 = vmatpush1.msra.mxu0 %v6020_v62 }
 0x297   :  { %1796 = vmatprep.subr.mxu0 %v6021_v21 }
 0x298   :  { %1797 = vmatpush1.msra.mxu0 %v6022_v28 }
 0x299   :  { %1798 = vmatprep.subr.mxu0 %v6023_v23 }
 0x29a   :  { %1799 = vmatpush1.msra.mxu0 %v6024_v50 }
 0x29b   :  { %1800 = vmatprep.subr.mxu0 %v6025_v29 }
 0x29c   :  { %1801 = vmatpush1.msra.mxu0 %v6026_v34 }
 0x29d   :  { %1802 = vmatprep.subr.mxu0 %v6027_v35 }
 0x29e   :  { %1803 = vmatpush1.msra.mxu0 %v6028_v2 }
 0x29f   :  { %1804 = vmatprep.subr.mxu0 %v6029_v41 }
 0x2a0   :  { %1805 = vmatpush1.msra.mxu0 %v6030_v40 }
 0x2a1   :  { %1806 = vmatprep.subr.mxu0 %v6031_v47  ;;  %v1669_v47 = vld [vmem:[%s5388_s6] sm:$0xff] }
 0x2a2   :  { %1807 = vmatpush1.msra.mxu0 %v6032_v60  ;;  %v2244_v60 = vld [vmem:[%s5390_s8] sm:$0xff] }
 0x2a3   :  { %1808 = vmatprep.subr.mxu0 %v6033_v53  ;;  %v1654_v53 = vld [vmem:[%s5387_s5 + $0x8] sm:$0xff] }
 0x2a4   :  { %1809 = vmatpush1.msra.mxu0 %v6034_v46  ;;  %v1670_v46 = vld [vmem:[%s5388_s6 + $0x8] sm:$0xff] }
 0x2a5   :  { %1810 = vmatprep.subr.mxu0 %v6035_v61  ;;  %v2245_v61 = vld [vmem:[%s5390_s8 + $0x8] sm:$0xff] }
 0x2a6   :  { %1811 = vmatpush1.msra.mxu0 %v6036_v63 }
 0x2a7   :  { %2610 = vmatprep.subr.msk.mxu0 %vm292_vm1, %v6037_v49 }
 0x2a8   :  { %2611 = vmatpush2.msk.msra.mxu0 %vm292_vm1, %v6038_v52 }
 0x2a9   :  { %1836 = vmatprep.subr.mxu0 %v6039_v55 }
 0x2aa   :  { %1837 = vmatpush2.msra.mxu0 %v6040_v43 }
 0x2ab   :  { %1838 = vmatprep.subr.mxu0 %v6041_v36 }
 0x2ac   :  { %1839 = vmatpush2.msra.mxu0 %v6042_v31 }
 0x2ad   :  { %1840 = vmatprep.subr.mxu0 %v6043_v59 }
 0x2ae   :  { %1841 = vmatpush2.msra.mxu0 %v6044_v6 }
 0x2af   :  { %1842 = vmatprep.subr.mxu0 %v6045_v20 }
 0x2b0   :  { %1843 = vmatpush2.msra.mxu0 %v6046_v33 }
 0x2b1   :  { %1934 = vmatprep.subr.mxu0 %v6047_v3 }
 0x347   :  { %v1591_v19 = vpop.f32.mrf.mxu0 }
 0x348   :  { %v1592_v14 = vadd.f32 %v1591_v19, %v1511_v18 }
 0x349   :  { %v1593_v5 = vpop.f32.mrf.mxu0 }
 0x34a   :  { %v1594_v12 = vadd.f32 %v1593_v5, %v1511_v18 }
 0x34b   :  { %v1597_v51 = vpop.f32.mrf.mxu0 }
 0x34c   :  { %v1602_v9 = vsel %vm577_vm2, %v1594_v12, 0.0  ;;  %v1598_v37 = vadd.f32 %v1597_v51, %v1516_v16 }
 0x34d   :  { %v1599_v27 = vpop.f32.mrf.mxu0  ;;  %v1603_v58 = vadd.f32 %v1602_v9, %v1592_v14 }
 0x34e   :  { %v1600_v17 = vadd.f32 %v1599_v27, %v1516_v16 }
 0x34f   :  { %1604 = vadd.xlane.f32.xlu1 %v1603_v58 }
 0x350   :  { %v1606_v48 = vsel %vm577_vm2, %v1600_v17, 0.0 }
 0x351   :  { %v1607_v57 = vadd.f32 %v1606_v48, %v1598_v37 }
 0x353   :  { %1608 = vadd.xlane.f32.xlu1 %v1607_v57 }
 0x364   :  { %1657 = vperm.xlu1 %2642, %v1653_v54  }
 0x3d8   :  { %v1605_v0 = vpop.xlane.xlu1 %1604 }
 0x3d9   :  { %v1611_v30 = vmul.f32 0.0061728396, %v1605_v0 }
 0x3db   :  { %v1613_v7 = vsub.f32 %v1592_v14, %v1611_v30  ;;  %v1614_v26 = vsub.f32 %v1594_v12, %v1611_v30 }
 0x3dc   :  { %v1609_v15 = vpop.xlane.xlu1 %1608 }
 0x3dd   :  { %v1612_v62 = vmul.f32 0.0061728396, %v1609_v15  ;;  %v1617_v21 = vmul.f32 %v1613_v7, %v1613_v7  ;;  %v1618_v28 = vmul.f32 %v1614_v26, %v1614_v26 }
 0x3df   :  { %v1615_v23 = vsub.f32 %v1598_v37, %v1612_v62  ;;  %v1616_v50 = vsub.f32 %v1600_v17, %v1612_v62  ;;  %v1621_v29 = vsel %vm577_vm2, %v1618_v28, 0.0 }
 0x3e0   :  { %v1622_v34 = vadd.f32 %v1621_v29, %v1617_v21  ;;  %v1658_v63 = vpop.permute.xlu1 %1657 }
 0x3e1   :  { %v1619_v35 = vmul.f32 %v1615_v23, %v1615_v23  ;;  %v1620_v2 = vmul.f32 %v1616_v50, %v1616_v50 }
 0x3e2   :  { %1623 = vadd.xlane.f32.xlu0 %v1622_v34 }
 0x3e3   :  { %v1625_v41 = vsel %vm577_vm2, %v1620_v2, 0.0  ;;  %v6048_v2 = vunpack.c.l.bf16 %v3470_v39  ;;  %v6055_v39 = vld [vmem:[#allocation6_spill] sm:$0xff] }
 0x3e4   :  { %v1626_v40 = vadd.f32 %v1625_v41, %v1619_v35  ;;  %v6049_v41 = vunpack.c.l.bf16 %v3475_v45  ;;  %v6056_v45 = vunpack.c.h.bf16 %v6055_v39 }
 0x3e6   :  { %1627 = vadd.xlane.f32.xlu1 %v1626_v40  ;;  %v6050_v40 = vunpack.c.h.bf16 %v3494_v42 }
 0x3f7   :  { %1673 = vperm.xlu1 %2642, %v1669_v47   ;;  %v6051_v47 = vld [vmem:[#allocation5_spill] sm:$0xff] }
 0x3f8   :  { %2248 = vperm.xlu0 %2641, %v2244_v60   ;;  %v6052_v60 = vunpack.c.h.bf16 %v6051_v47 }
 0x3fb   :  { %1662 = vperm.xlu1 %2642, %v1654_v53  }
 0x3ff   :  { %1678 = vperm.xlu1 %2642, %v1670_v46  }
 0x403   :  { %2253 = vperm.xlu1 %2642, %v2245_v61   ;;  %v6053_v61 = vunpack.c.l.bf16 %v3494_v42  ;;  %v6059_v42 = vunpack.c.l.bf16 %v6055_v39 }
 0x46b   :  { %v1624_v49 = vpop.xlane.xlu0 %1623 }
 0x46c   :  { %v1629_v52 = vmul.f32 0.0061728396, %v1624_v49  ;;  %v6057_v49 = vld [vmem:[#allocation7_spill] sm:$0xff] }
 0x46e   :  { %v1631_v55 = vadd.f32 1e-05, %v1629_v52  ;;  %v6058_v52 = vunpack.c.h.bf16 %v6057_v49 }
 0x46f   :  { %v1628_v43 = vpop.xlane.xlu1 %1627 }
 0x470   :  { %2643 = vrsqrt.f32 %v1631_v55  ;;  %v1630_v36 = vmul.f32 0.0061728396, %v1628_v43  ;;  %vm1635_vm4 = vcmp.eq.f32.partialorder %v1631_v55, inf  ;;  %v1638_v20 = vand.u32 2147483648, %v1631_v55  ;;  %v6061_v43 = vld [vmem:[#allocation8_spill] sm:$0xff] }
 0x471   :  { %vm1637_vm5 = vcmp.eq.f32.partialorder %v1631_v55, 0.0 }
 0x472   :  { %v1632_v31 = vadd.f32 1e-05, %v1630_v36  ;;  %v6062_v36 = vunpack.c.h.bf16 %v6061_v43 }
 0x473   :  { %v1674_v51 = vpop.permute.xlu1 %1673 }
 0x474   :  { %2645 = vrsqrt.f32 %v1632_v31  ;;  %vm1642_vm6 = vcmp.eq.f32.partialorder %v1632_v31, inf  ;;  %v1645_v5 = vand.u32 2147483648, %v1632_v31  ;;  %vm1644_vm7 = vcmp.eq.f32.partialorder %v1632_v31, 0.0 }
 0x477   :  { %v1663_v37 = vpop.permute.xlu1 %1662 }
 0x47d   :  { %v2644_v59 = vpop.eup %2643 }
 0x47e   :  { %v1634_v6 = vmul.f32 %v2644_v59, %v1631_v55 }
 0x480   :  { %v1636_v33 = vsel %vm1635_vm4, %v1631_v55, %v1634_v6  ;;  %v6060_v55 = vunpack.c.l.bf16 %v6057_v49  ;;  %v6065_v6 = vunpack.c.l.bf16 %v6061_v43 }
 0x481   :  { %v1639_v3 = vsel %vm1637_vm5, %v1638_v20, %v1636_v33  ;;  %v2646_v18 = vpop.eup %2645  ;;  %v6067_v33 = vld [vmem:[#allocation10_spill] sm:$0xff] }
 0x482   :  { %2647 = vrcp.f32 %v1639_v3  ;;  %v1641_v19 = vmul.f32 %v2646_v18, %v1632_v31  ;;  %v6068_v3 = vunpack.c.h.bf16 %v6067_v33  ;;  %v6069_v18 = vld [vmem:[#allocation11_spill] sm:$0xff] }
 0x484   :  { %v1643_v12 = vsel %vm1642_vm6, %v1632_v31, %v1641_v19  ;;  %v6063_v31 = vld [vmem:[#allocation9_spill] sm:$0xff]  ;;  %v6070_v19 = vunpack.c.h.bf16 %v6069_v18 }
 0x485   :  { %v1646_v14 = vsel %vm1644_vm7, %v1645_v5, %v1643_v12  ;;  %v6064_v59 = vunpack.c.h.bf16 %v6063_v31  ;;  %v6066_v20 = vunpack.c.l.bf16 %v6063_v31  ;;  %v6071_v5 = vunpack.c.l.bf16 %v6067_v33 }
 0x486   :  { %2649 = vrcp.f32 %v1646_v14  ;;  %v6072_v12 = vunpack.c.l.bf16 %v6069_v18  ;;  %v6073_v14 = vld [vmem:[#allocation12_spill] sm:$0xff] }
 0x48f   :  { %v2648_v9 = vpop.eup %2647 }
 0x490   :  { %v1648_v16 = vmul.f32 %v2648_v9, %v1613_v7  ;;  %v1649_v27 = vmul.f32 %v2648_v9, %v1614_v26  ;;  %v1679_v7 = vpop.permute.xlu1 %1678  ;;  %v6075_v9 = vld [vmem:[#allocation13_spill] sm:$0xff] }
 0x492   :  { %v1665_v58 = vmul.f32 %v1658_v63, %v1648_v16  ;;  %v1666_v17 = vmul.f32 %v1658_v63, %v1649_v27  ;;  %v6054_v63 = vunpack.c.l.bf16 %v6051_v47  ;;  %v6076_v16 = vunpack.c.h.bf16 %v6075_v9 }
 0x493   :  { %v2650_v48 = vpop.eup %2649  ;;  %v6077_v27 = vunpack.c.l.bf16 %v6073_v14 }
 0x494   :  { %v1681_v57 = vadd.f32 %v1674_v51, %v1665_v58  ;;  %v1682_v54 = vadd.f32 %v1674_v51, %v1666_v17  ;;  %v1651_v0 = vmul.f32 %v2650_v48, %v1615_v23  ;;  %v1652_v30 = vmul.f32 %v2650_v48, %v1616_v50  ;;  %v6079_v17 = vld [vmem:[#allocation14_spill] sm:$0xff]  ;;  %v6081_v48 = vld [vmem:[#allocation15_spill] sm:$0xff] }
 0x495   :  { %v6074_v51 = vunpack.c.h.bf16 %v6073_v14  ;;  %v6078_v58 = vunpack.c.l.bf16 %v6075_v9 }
 0x496   :  { %vm1685_vm8 = vcmp.gt.f32.partialorder %v1681_v57, 0.0  ;;  %vm1686_vm9 = vcmp.gt.f32.partialorder %v1682_v54, 0.0  ;;  %v1689_v15 = vmul.f32 0.2, %v1681_v57  ;;  %v1690_v62 = vmul.f32 0.2, %v1682_v54 }
 0x497   :  { %v1667_v21 = vmul.f32 %v1663_v37, %v1651_v0  ;;  %v1668_v28 = vmul.f32 %v1663_v37, %v1652_v30  ;;  %v6080_v37 = vunpack.c.h.bf16 %v6079_v17  ;;  %v6084_v0 = vunpack.c.l.bf16 %v6081_v48  ;;  %v6085_v30 = vld [vmem:[#allocation16_spill] sm:$0xff] }
 0x498   :  { %v4877_v29 = vsel %vm1685_vm8, %v1681_v57, %v1689_v15  ;;  %v4879_v34 = vsel %vm1686_vm9, %v1682_v54, %v1690_v62  ;;  %v6082_v57 = vunpack.c.h.bf16 %v6081_v48  ;;  %v6083_v54 = vunpack.c.l.bf16 %v6079_v17  ;;  %v6087_v62 = vld [vmem:[#allocation17_spill] sm:$0xff] }
 0x499   :  { %v1683_v26 = vadd.f32 %v1679_v7, %v1667_v21  ;;  %v1684_v35 = vadd.f32 %v1679_v7, %v1668_v28  ;;  %2608 = vmatprep.mubr.msk.f32.mxu1 %vm577_vm2, %v4879_v34  ;;  %2612 = vmatprep.mubr.msk.f32.mxu0 %vm577_vm2, %v4879_v34  ;;  %v6086_v15 = vunpack.c.h.bf16 %v6085_v30  ;;  %v6088_v21 = vunpack.c.h.bf16 %v6087_v62 }
 0x49a   :  { %1768 = vmatmul.mubr.f32.vlgmr.msra.gmra.mxu1 %v4877_v29  ;;  %1845 = vmatmul.mubr.f32.vlgmr.msra.gmra.mxu0 %v4877_v29  ;;  %v6089_v28 = vunpack.c.l.bf16 %v6085_v30  ;;  %v6090_v7 = vunpack.c.l.bf16 %v6087_v62 }
 0x49b   :  { %vm1687_vm10 = vcmp.gt.f32.partialorder %v1683_v26, 0.0  ;;  %vm1688_vm11 = vcmp.gt.f32.partialorder %v1684_v35, 0.0  ;;  %v1691_v23 = vmul.f32 0.2, %v1683_v26  ;;  %v1692_v50 = vmul.f32 0.2, %v1684_v35  ;;  %1858 = vmatpush1.msra.mxu1 %v6048_v2  ;;  %1935 = vmatpush1.msra.mxu0 %v6049_v41 }
 0x49c   :  { %1859 = vmatprep.subr.mxu1 %v6050_v40  ;;  %1936 = vmatprep.subr.mxu0 %v6052_v60  ;;  %v6097_v40 = vld [vmem:[#allocation20_spill] sm:$0xff]  ;;  %v6099_v60 = vld [vmem:[#allocation21_spill] sm:$0xff] }
 0x49d   :  { %v4895_v53 = vsel %vm1687_vm10, %v1683_v26, %v1691_v23  ;;  %v4897_v46 = vsel %vm1688_vm11, %v1684_v35, %v1692_v50  ;;  %1860 = vmatpush1.msra.mxu1 %v6053_v61  ;;  %1937 = vmatpush1.msra.mxu0 %v6054_v63  ;;  %v6091_v26 = vld [vmem:[#allocation18_spill] sm:$0xff]  ;;  %v6093_v23 = vld [vmem:[#allocation19_spill] sm:$0xff]  ;;  %v6098_v47 = vunpack.c.h.bf16 %v6097_v40  ;;  %v6100_v61 = vunpack.c.h.bf16 %v6099_v60 }
 0x49e   :  { %2609 = vmatprep.mubr.msk.f32.mxu1 %vm577_vm2, %v4897_v46  ;;  %2613 = vmatprep.mubr.msk.f32.mxu0 %vm577_vm2, %v4897_v46  ;;  %v6092_v35 = vunpack.c.h.bf16 %v6091_v26  ;;  %v6094_v50 = vunpack.c.h.bf16 %v6093_v23  ;;  %v6095_v2 = vunpack.c.l.bf16 %v6091_v26  ;;  %v6096_v41 = vunpack.c.l.bf16 %v6093_v23 }
 0x49f   :  { %1861 = vmatprep.subr.mxu1 %v6056_v45  ;;  %1938 = vmatprep.subr.mxu0 %v6058_v52  ;;  %v6101_v63 = vunpack.c.l.bf16 %v6097_v40  ;;  %v6102_v39 = vunpack.c.l.bf16 %v6099_v60  ;;  %v6103_v45 = vld [vmem:[#allocation22_spill] sm:$0xff]  ;;  %v6105_v52 = vld [vmem:[#allocation23_spill] sm:$0xff] }
 0x4a0   :  { %1774 = vmatmul.mubr.f32.gmra.mxu1 %v4895_v53  ;;  %1851 = vmatmul.mubr.f32.gmra.mxu0 %v4895_v53  ;;  %v6104_v49 = vunpack.c.h.bf16 %v6103_v45  ;;  %v6108_v43 = vunpack.c.l.bf16 %v6105_v52 }
 0x4a1   :  { %1862 = vmatpush1.msra.mxu1 %v6059_v42  ;;  %1939 = vmatpush1.msra.mxu0 %v6060_v55  ;;  %v6106_v42 = vunpack.c.h.bf16 %v6105_v52  ;;  %v6107_v55 = vunpack.c.l.bf16 %v6103_v45 }
 0x4a2   :  { %1863 = vmatprep.subr.mxu1 %v6062_v36  ;;  %2616 = vmatprep.mubr.msk.f32.mxu1 %vm577_vm2, %v4879_v34  ;;  %v6109_v36 = vld [vmem:[#allocation24_spill] sm:$0xff] }
 0x4a3   :  { %1940 = vmatprep.subr.mxu0 %v6064_v59  ;;  %2620 = vmatprep.mubr.msk.f32.mxu0 %vm577_vm2, %v4879_v34  ;;  %v6110_v31 = vunpack.c.h.bf16 %v6109_v36  ;;  %v6111_v59 = vld [vmem:[#allocation25_spill] sm:$0xff] }
 0x4a4   :  { %1864 = vmatpush1.msra.mxu1 %v6065_v6  ;;  %1941 = vmatpush1.msra.mxu0 %v6066_v20  ;;  %v6112_v6 = vunpack.c.h.bf16 %v6111_v59  ;;  %v6113_v20 = vunpack.c.l.bf16 %v6109_v36  ;;  %v6114_v33 = vunpack.c.l.bf16 %v6111_v59 }
 0x4a5   :  { %1865 = vmatprep.subr.mxu1 %v6068_v3  ;;  %1942 = vmatprep.subr.mxu0 %v6070_v19  ;;  %v6115_v3 = vld [vmem:[#allocation26_spill] sm:$0xff]  ;;  %v6117_v19 = vld [vmem:[#allocation27_spill] sm:$0xff] }
 0x4a6   :  { %1866 = vmatpush1.msra.mxu1 %v6071_v5  ;;  %1943 = vmatpush1.msra.mxu0 %v6072_v12  ;;  %v6116_v18 = vunpack.c.h.bf16 %v6115_v3  ;;  %v6118_v5 = vunpack.c.h.bf16 %v6117_v19  ;;  %v6119_v12 = vunpack.c.l.bf16 %v6115_v3  ;;  %v6120_v14 = vunpack.c.l.bf16 %v6117_v19 }
 0x4a7   :  { %1867 = vmatprep.subr.mxu1 %v6074_v51  ;;  %1944 = vmatprep.subr.mxu0 %v6076_v16  ;;  %v6121_v51 = vld [vmem:[#allocation28_spill] sm:$0xff]  ;;  %v6123_v16 = vld [vmem:[#allocation29_spill] sm:$0xff] }
 0x4a8   :  { %1868 = vmatpush1.msra.mxu1 %v6077_v27  ;;  %1945 = vmatpush1.msra.mxu0 %v6078_v58  ;;  %v6122_v9 = vunpack.c.h.bf16 %v6121_v51  ;;  %v6124_v27 = vunpack.c.h.bf16 %v6123_v16  ;;  %v6125_v58 = vunpack.c.l.bf16 %v6121_v51  ;;  %v6126_v17 = vunpack.c.l.bf16 %v6123_v16 }
 0x4a9   :  { %1869 = vmatprep.subr.mxu1 %v6080_v37  ;;  %1946 = vmatprep.subr.mxu0 %v6082_v57  ;;  %v6127_v37 = vld [vmem:[#allocation30_spill] sm:$0xff]  ;;  %v6129_v57 = vld [vmem:[#allocation31_spill] sm:$0xff] }
 0x4aa   :  { %1870 = vmatpush1.msra.mxu1 %v6083_v54  ;;  %1947 = vmatpush1.msra.mxu0 %v6084_v0  ;;  %v6128_v48 = vunpack.c.h.bf16 %v6127_v37  ;;  %v6130_v54 = vunpack.c.h.bf16 %v6129_v57  ;;  %v6131_v0 = vunpack.c.l.bf16 %v6127_v37  ;;  %v6132_v30 = vunpack.c.l.bf16 %v6129_v57 }
 0x4ab   :  { %1871 = vmatprep.subr.mxu1 %v6086_v15  ;;  %1948 = vmatprep.subr.mxu0 %v6088_v21  ;;  %v6133_v15 = vld [vmem:[#allocation32_spill] sm:$0xff]  ;;  %v6135_v21 = vld [vmem:[#allocation33_spill] sm:$0xff] }
 0x4ac   :  { %1872 = vmatpush1.msra.mxu1 %v6089_v28  ;;  %1949 = vmatpush1.msra.mxu0 %v6090_v7  ;;  %v6134_v62 = vunpack.c.h.bf16 %v6133_v15  ;;  %v6136_v28 = vunpack.c.h.bf16 %v6135_v21  ;;  %v6137_v7 = vunpack.c.l.bf16 %v6133_v15  ;;  %v6138_v26 = vunpack.c.l.bf16 %v6135_v21 }
 0x4ad   :  { %1873 = vmatprep.subr.mxu1 %v6092_v35  ;;  %1950 = vmatprep.subr.mxu0 %v6094_v50  ;;  %v6139_v35 = vld [vmem:[#allocation34_spill] sm:$0xff]  ;;  %v6141_v50 = vld [vmem:[#allocation35_spill] sm:$0xff] }
 0x4ae   :  { %1874 = vmatpush1.msra.mxu1 %v6095_v2  ;;  %1951 = vmatpush1.msra.mxu0 %v6096_v41  ;;  %v6140_v23 = vunpack.c.h.bf16 %v6139_v35  ;;  %v6142_v2 = vunpack.c.h.bf16 %v6141_v50  ;;  %v6143_v41 = vunpack.c.l.bf16 %v6139_v35  ;;  %v6144_v40 = vunpack.c.l.bf16 %v6141_v50 }
 0x4af   :  { %1875 = vmatprep.subr.mxu1 %v6098_v47  ;;  %1952 = vmatprep.subr.mxu0 %v6100_v61  ;;  %v6145_v47 = vld [vmem:[#allocation36_spill] sm:$0xff]  ;;  %v6147_v61 = vld [vmem:[#allocation37_spill] sm:$0xff] }
 0x4b0   :  { %1876 = vmatpush1.msra.mxu1 %v6101_v63  ;;  %1953 = vmatpush1.msra.mxu0 %v6102_v39  ;;  %v6146_v60 = vunpack.c.h.bf16 %v6145_v47  ;;  %v6148_v63 = vunpack.c.h.bf16 %v6147_v61  ;;  %v6149_v39 = vunpack.c.l.bf16 %v6145_v47  ;;  %v6150_v45 = vunpack.c.l.bf16 %v6147_v61 }
 0x4b1   :  { %1877 = vmatprep.subr.mxu1 %v6104_v49  ;;  %1954 = vmatprep.subr.mxu0 %v6106_v42  ;;  %v6151_v49 = vld [vmem:[#allocation38_spill] sm:$0xff]  ;;  %v6153_v42 = vld [vmem:[#allocation39_spill] sm:$0xff] }
 0x4b2   :  { %1878 = vmatpush1.msra.mxu1 %v6107_v55  ;;  %1955 = vmatpush1.msra.mxu0 %v6108_v43  ;;  %v6152_v52 = vunpack.c.h.bf16 %v6151_v49  ;;  %v6154_v55 = vunpack.c.h.bf16 %v6153_v42  ;;  %v6155_v43 = vunpack.c.l.bf16 %v6151_v49  ;;  %v6156_v36 = vunpack.c.l.bf16 %v6153_v42 }
 0x4b3   :  { %1879 = vmatprep.subr.mxu1 %v6110_v31  ;;  %1956 = vmatprep.subr.mxu0 %v6112_v6  ;;  %v6157_v31 = vld [vmem:[#allocation40_spill] sm:$0xff]  ;;  %v6159_v6 = vld [vmem:[#allocation41_spill] sm:$0xff] }
 0x4b4   :  { %1880 = vmatpush1.msra.mxu1 %v6113_v20  ;;  %1957 = vmatpush1.msra.mxu0 %v6114_v33  ;;  %v6158_v59 = vunpack.c.h.bf16 %v6157_v31  ;;  %v6160_v20 = vunpack.c.h.bf16 %v6159_v6  ;;  %v6161_v33 = vunpack.c.l.bf16 %v6157_v31  ;;  %v6162_v3 = vunpack.c.l.bf16 %v6159_v6 }
 0x4b5   :  { %1881 = vmatprep.subr.mxu1 %v6116_v18  ;;  %1958 = vmatprep.subr.mxu0 %v6118_v5  ;;  %v6163_v18 = vld [vmem:[#allocation42_spill] sm:$0xff]  ;;  %v6165_v5 = vld [vmem:[#allocation43_spill] sm:$0xff] }
 0x4b6   :  { %1882 = vmatpush1.msra.mxu1 %v6119_v12  ;;  %1959 = vmatpush1.msra.mxu0 %v6120_v14  ;;  %v6164_v19 = vunpack.c.h.bf16 %v6163_v18  ;;  %v6166_v12 = vunpack.c.h.bf16 %v6165_v5  ;;  %v6167_v14 = vunpack.c.l.bf16 %v6163_v18  ;;  %v6168_v51 = vunpack.c.l.bf16 %v6165_v5 }
 0x4b7   :  { %1883 = vmatprep.subr.mxu1 %v6122_v9  ;;  %1960 = vmatprep.subr.mxu0 %v6124_v27  ;;  %v6169_v9 = vld [vmem:[#allocation44_spill] sm:$0xff]  ;;  %v6171_v27 = vld [vmem:[#allocation45_spill] sm:$0xff] }
 0x4b8   :  { %1884 = vmatpush1.msra.mxu1 %v6125_v58  ;;  %1961 = vmatpush1.msra.mxu0 %v6126_v17  ;;  %v6170_v16 = vunpack.c.h.bf16 %v6169_v9  ;;  %v6172_v58 = vunpack.c.h.bf16 %v6171_v27  ;;  %v6173_v17 = vunpack.c.l.bf16 %v6169_v9  ;;  %v6174_v37 = vunpack.c.l.bf16 %v6171_v27 }
 0x4b9   :  { %1885 = vmatprep.subr.mxu1 %v6128_v48  ;;  %1962 = vmatprep.subr.mxu0 %v6130_v54  ;;  %v6175_v48 = vld [vmem:[#allocation46_spill] sm:$0xff]  ;;  %v6177_v54 = vld [vmem:[#allocation47_spill] sm:$0xff] }
 0x4ba   :  { %1886 = vmatpush1.msra.mxu1 %v6131_v0  ;;  %1963 = vmatpush1.msra.mxu0 %v6132_v30  ;;  %v6176_v57 = vunpack.c.h.bf16 %v6175_v48  ;;  %v6178_v0 = vunpack.c.h.bf16 %v6177_v54  ;;  %v6179_v30 = vunpack.c.l.bf16 %v6175_v48  ;;  %v6180_v15 = vunpack.c.l.bf16 %v6177_v54 }
 0x4bb   :  { %1887 = vmatprep.subr.mxu1 %v6134_v62  ;;  %1964 = vmatprep.subr.mxu0 %v6136_v28  ;;  %v6181_v62 = vld [vmem:[#allocation48_spill] sm:$0xff]  ;;  %v6183_v28 = vld [vmem:[#allocation49_spill] sm:$0xff] }
 0x4bc   :  { %1888 = vmatpush1.msra.mxu1 %v6137_v7  ;;  %1965 = vmatpush1.msra.mxu0 %v6138_v26  ;;  %v6182_v21 = vunpack.c.h.bf16 %v6181_v62  ;;  %v6184_v7 = vunpack.c.h.bf16 %v6183_v28  ;;  %v6185_v26 = vunpack.c.l.bf16 %v6181_v62  ;;  %v6186_v35 = vunpack.c.l.bf16 %v6183_v28 }
 0x4bd   :  { %2614 = vmatprep.subr.msk.mxu1 %vm292_vm1, %v6140_v23  ;;  %2618 = vmatprep.subr.msk.mxu0 %vm292_vm1, %v6142_v2  ;;  %v6187_v23 = vld [vmem:[#allocation50_spill] sm:$0xff]  ;;  %v6189_v2 = vld [vmem:[#allocation51_spill] sm:$0xff] }
 0x4be   :  { %2615 = vmatpush2.msk.msra.mxu1 %vm292_vm1, %v6143_v41  ;;  %2619 = vmatpush2.msk.msra.mxu0 %vm292_vm1, %v6144_v40  ;;  %v6188_v50 = vunpack.c.h.bf16 %v6187_v23  ;;  %v6190_v41 = vunpack.c.h.bf16 %v6189_v2  ;;  %v6191_v40 = vunpack.c.l.bf16 %v6187_v23  ;;  %v6192_v47 = vunpack.c.l.bf16 %v6189_v2 }
 0x4bf   :  { %1913 = vmatprep.subr.mxu1 %v6146_v60  ;;  %1990 = vmatprep.subr.mxu0 %v6148_v63  ;;  %v6193_v60 = vld [vmem:[#allocation52_spill] sm:$0xff]  ;;  %v6195_v63 = vld [vmem:[#allocation53_spill] sm:$0xff] }
 0x4c0   :  { %1914 = vmatpush2.msra.mxu1 %v6149_v39  ;;  %1991 = vmatpush2.msra.mxu0 %v6150_v45  ;;  %v6194_v61 = vunpack.c.h.bf16 %v6193_v60  ;;  %v6196_v39 = vunpack.c.h.bf16 %v6195_v63  ;;  %v6197_v45 = vunpack.c.l.bf16 %v6193_v60  ;;  %v6198_v49 = vunpack.c.l.bf16 %v6195_v63 }
 0x4c1   :  { %1915 = vmatprep.subr.mxu1 %v6152_v52  ;;  %1992 = vmatprep.subr.mxu0 %v6154_v55  ;;  %v6199_v52 = vld [vmem:[#allocation54_spill] sm:$0xff]  ;;  %v6201_v55 = vld [vmem:[#allocation55_spill] sm:$0xff] }
 0x4c2   :  { %1916 = vmatpush2.msra.mxu1 %v6155_v43  ;;  %1993 = vmatpush2.msra.mxu0 %v6156_v36  ;;  %v6200_v42 = vunpack.c.h.bf16 %v6199_v52  ;;  %v6202_v43 = vunpack.c.h.bf16 %v6201_v55  ;;  %v6203_v36 = vunpack.c.l.bf16 %v6199_v52  ;;  %v6204_v31 = vunpack.c.l.bf16 %v6201_v55 }
 0x4c3   :  { %1917 = vmatprep.subr.mxu1 %v6158_v59  ;;  %1994 = vmatprep.subr.mxu0 %v6160_v20  ;;  %v6205_v59 = vld [vmem:[#allocation56_spill] sm:$0xff]  ;;  %v6207_v20 = vld [vmem:[#allocation57_spill] sm:$0xff] }
 0x4c4   :  { %1918 = vmatpush2.msra.mxu1 %v6161_v33  ;;  %1995 = vmatpush2.msra.mxu0 %v6162_v3  ;;  %v6206_v6 = vunpack.c.h.bf16 %v6205_v59  ;;  %v6208_v33 = vunpack.c.h.bf16 %v6207_v20  ;;  %v6209_v3 = vunpack.c.l.bf16 %v6205_v59  ;;  %v6210_v18 = vunpack.c.l.bf16 %v6207_v20 }
 0x4c5   :  { %1919 = vmatprep.subr.mxu1 %v6164_v19  ;;  %1996 = vmatprep.subr.mxu0 %v6166_v12  ;;  %v6211_v19 = vld [vmem:[#allocation58_spill] sm:$0xff]  ;;  %v6213_v12 = vld [vmem:[#allocation59_spill] sm:$0xff] }
 0x4c6   :  { %1920 = vmatpush2.msra.mxu1 %v6167_v14  ;;  %1997 = vmatpush2.msra.mxu0 %v6168_v51  ;;  %v6212_v5 = vunpack.c.h.bf16 %v6211_v19  ;;  %v6214_v14 = vunpack.c.h.bf16 %v6213_v12  ;;  %v6215_v51 = vunpack.c.l.bf16 %v6211_v19  ;;  %v6216_v9 = vunpack.c.l.bf16 %v6213_v12 }
 0x4c7   :  { %1922 = vmatmul.mubr.f32.vlgmr.msra.gmra.mxu1 %v4877_v29  ;;  %1999 = vmatmul.mubr.f32.vlgmr.msra.gmra.mxu0 %v4877_v29 }
 0x4c8   :  { %2011 = vmatprep.subr.mxu1 %v6170_v16  ;;  %2088 = vmatprep.subr.mxu0 %v6172_v58  ;;  %v6217_v16 = vld [vmem:[#allocation60_spill] sm:$0xff]  ;;  %v6219_v58 = vld [vmem:[#allocation61_spill] sm:$0xff] }
 0x4c9   :  { %2617 = vmatprep.mubr.msk.f32.mxu1 %vm577_vm2, %v4897_v46  ;;  %2621 = vmatprep.mubr.msk.f32.mxu0 %vm577_vm2, %v4897_v46  ;;  %v6218_v27 = vunpack.c.h.bf16 %v6217_v16  ;;  %v6222_v48 = vunpack.c.l.bf16 %v6219_v58 }
 0x4ca   :  { %2012 = vmatpush1.msra.mxu1 %v6173_v17  ;;  %2089 = vmatpush1.msra.mxu0 %v6174_v37  ;;  %v6220_v17 = vunpack.c.h.bf16 %v6219_v58  ;;  %v6221_v37 = vunpack.c.l.bf16 %v6217_v16 }
 0x4cb   :  { %2013 = vmatprep.subr.mxu1 %v6176_v57  ;;  %2090 = vmatprep.subr.mxu0 %v6178_v0  ;;  %v6223_v57 = vld [vmem:[#allocation62_spill] sm:$0xff]  ;;  %v6225_v0 = vld [vmem:[#allocation63_spill] sm:$0xff] }
 0x4cc   :  { %2014 = vmatpush1.msra.mxu1 %v6179_v30  ;;  %2091 = vmatpush1.msra.mxu0 %v6180_v15  ;;  %v6224_v54 = vunpack.c.h.bf16 %v6223_v57  ;;  %v6226_v30 = vunpack.c.h.bf16 %v6225_v0  ;;  %v6227_v15 = vunpack.c.l.bf16 %v6223_v57  ;;  %v6228_v62 = vunpack.c.l.bf16 %v6225_v0 }
 0x4cd   :  { %1928 = vmatmul.mubr.f32.gmra.mxu1 %v4895_v53  ;;  %2005 = vmatmul.mubr.f32.gmra.mxu0 %v4895_v53  ;;  %v6272_v0 = vunpack.c.h.bf16 %v4315_v24 }
 0x4ce   :  { %2015 = vmatprep.subr.mxu1 %v6182_v21  ;;  %2092 = vmatprep.subr.mxu0 %v6184_v7  ;;  %v6229_v21 = vld [vmem:[#allocation64_spill] sm:$0xff]  ;;  %v6231_v7 = vld [vmem:[#allocation65_spill] sm:$0xff] }
 0x4cf   :  { %2016 = vmatpush1.msra.mxu1 %v6185_v26  ;;  %2624 = vmatprep.mubr.msk.f32.mxu1 %vm577_vm2, %v4879_v34  ;;  %v6230_v28 = vunpack.c.h.bf16 %v6229_v21  ;;  %v6232_v26 = vunpack.c.h.bf16 %v6231_v7  ;;  %v6234_v23 = vunpack.c.l.bf16 %v6231_v7  ;;  %v6278_v7 = vunpack.c.l.bf16 %v4337_v4 }
 0x4d0   :  { %2093 = vmatpush1.msra.mxu0 %v6186_v35  ;;  %2628 = vmatprep.mubr.msk.f32.mxu0 %vm577_vm2, %v4879_v34  ;;  %v6233_v35 = vunpack.c.l.bf16 %v6229_v21  ;;  %v6276_v21 = vunpack.c.h.bf16 %v4337_v4 }
 0x4d1   :  { %2017 = vmatprep.subr.mxu1 %v6188_v50  ;;  %2094 = vmatprep.subr.mxu0 %v6190_v41  ;;  %v6235_v50 = vld [vmem:[#allocation66_spill] sm:$0xff]  ;;  %v6237_v41 = vld [vmem:[#allocation67_spill] sm:$0xff] }
 0x4d2   :  { %2018 = vmatpush1.msra.mxu1 %v6191_v40  ;;  %2095 = vmatpush1.msra.mxu0 %v6192_v47  ;;  %v6236_v2 = vunpack.c.h.bf16 %v6235_v50  ;;  %v6238_v40 = vunpack.c.h.bf16 %v6237_v41  ;;  %v6239_v47 = vunpack.c.l.bf16 %v6235_v50  ;;  %v6240_v60 = vunpack.c.l.bf16 %v6237_v41 }
 0x4d3   :  { %2019 = vmatprep.subr.mxu1 %v6194_v61  ;;  %2096 = vmatprep.subr.mxu0 %v6196_v39  ;;  %v6241_v61 = vld [vmem:[#allocation68_spill] sm:$0xff]  ;;  %v6243_v39 = vld [vmem:[#allocation69_spill] sm:$0xff] }
 0x4d4   :  { %2020 = vmatpush1.msra.mxu1 %v6197_v45  ;;  %2097 = vmatpush1.msra.mxu0 %v6198_v49  ;;  %v6242_v63 = vunpack.c.h.bf16 %v6241_v61  ;;  %v6244_v45 = vunpack.c.h.bf16 %v6243_v39  ;;  %v6245_v49 = vunpack.c.l.bf16 %v6241_v61  ;;  %v6246_v52 = vunpack.c.l.bf16 %v6243_v39 }
 0x4d5   :  { %2021 = vmatprep.subr.mxu1 %v6200_v42  ;;  %2098 = vmatprep.subr.mxu0 %v6202_v43  ;;  %v6247_v42 = vld [vmem:[#allocation70_spill] sm:$0xff]  ;;  %v6249_v43 = vld [vmem:[#allocation71_spill] sm:$0xff] }
 0x4d6   :  { %2022 = vmatpush1.msra.mxu1 %v6203_v36  ;;  %2099 = vmatpush1.msra.mxu0 %v6204_v31  ;;  %v6248_v55 = vunpack.c.h.bf16 %v6247_v42  ;;  %v6250_v36 = vunpack.c.h.bf16 %v6249_v43  ;;  %v6251_v31 = vunpack.c.l.bf16 %v6247_v42  ;;  %v6252_v59 = vunpack.c.l.bf16 %v6249_v43 }
 0x4d7   :  { %2023 = vmatprep.subr.mxu1 %v6206_v6  ;;  %2100 = vmatprep.subr.mxu0 %v6208_v33  ;;  %v6253_v6 = vld [vmem:[#allocation72_spill] sm:$0xff]  ;;  %v6255_v33 = vld [vmem:[#allocation73_spill] sm:$0xff] }
 0x4d8   :  { %2024 = vmatpush1.msra.mxu1 %v6209_v3  ;;  %2101 = vmatpush1.msra.mxu0 %v6210_v18  ;;  %v6254_v20 = vunpack.c.h.bf16 %v6253_v6  ;;  %v6256_v3 = vunpack.c.h.bf16 %v6255_v33  ;;  %v6257_v18 = vunpack.c.l.bf16 %v6253_v6  ;;  %v6258_v19 = vunpack.c.l.bf16 %v6255_v33 }
 0x4d9   :  { %2025 = vmatprep.subr.mxu1 %v6212_v5  ;;  %2102 = vmatprep.subr.mxu0 %v6214_v14  ;;  %v6259_v5 = vld [vmem:[#allocation74_spill] sm:$0xff]  ;;  %v6261_v14 = vld [vmem:[#allocation75_spill] sm:$0xff] }
 0x4da   :  { %2026 = vmatpush1.msra.mxu1 %v6215_v51  ;;  %2103 = vmatpush1.msra.mxu0 %v6216_v9  ;;  %v6260_v12 = vunpack.c.h.bf16 %v6259_v5  ;;  %v6262_v51 = vunpack.c.h.bf16 %v6261_v14  ;;  %v6263_v9 = vunpack.c.l.bf16 %v6259_v5  ;;  %v6264_v16 = vunpack.c.l.bf16 %v6261_v14  ;;  %v6313_v5 = vld [vmem:[#allocation88_spill] sm:$0xff] }
 0x4db   :  { %2027 = vmatprep.subr.mxu1 %v6218_v27  ;;  %2104 = vmatprep.subr.mxu0 %v6220_v17  ;;  %v6265_v27 = vld [vmem:[#allocation76_spill] sm:$0xff]  ;;  %v6267_v17 = vld [vmem:[#allocation77_spill] sm:$0xff]  ;;  %v6315_v14 = vunpack.c.l.bf16 %v6313_v5 }
 0x4dc   :  { %2028 = vmatpush1.msra.mxu1 %v6221_v37  ;;  %2105 = vmatpush1.msra.mxu0 %v6222_v48  ;;  %v6266_v58 = vunpack.c.h.bf16 %v6265_v27  ;;  %v6268_v37 = vunpack.c.h.bf16 %v6267_v17  ;;  %v6269_v48 = vunpack.c.l.bf16 %v6265_v27  ;;  %v6270_v57 = vunpack.c.l.bf16 %v6267_v17  ;;  %v6319_v27 = vld [vmem:[#allocation90_spill] sm:$0xff] }
 0x4dd   :  { %2029 = vmatprep.subr.mxu1 %v6224_v54  ;;  %2106 = vmatprep.subr.mxu0 %v6226_v30  ;;  %v6271_v54 = vunpack.c.h.bf16 %v4310_v8  ;;  %v6273_v30 = vunpack.c.l.bf16 %v4310_v8  ;;  %v6280_v8 = vunpack.c.h.bf16 %v4359_v25  ;;  %v6321_v17 = vunpack.c.l.bf16 %v6319_v27 }
 0x4de   :  { %2030 = vmatpush1.msra.mxu1 %v6227_v15  ;;  %2107 = vmatpush1.msra.mxu0 %v6228_v62  ;;  %v6274_v15 = vunpack.c.l.bf16 %v4315_v24  ;;  %v6275_v62 = vunpack.c.h.bf16 %v4332_v56  ;;  %v6281_v24 = vunpack.c.l.bf16 %v4354_v13 }
 0x4df   :  { %2031 = vmatprep.subr.mxu1 %v6230_v28  ;;  %2108 = vmatprep.subr.mxu0 %v6232_v26  ;;  %v6277_v28 = vunpack.c.l.bf16 %v4332_v56  ;;  %v6279_v26 = vunpack.c.h.bf16 %v4354_v13  ;;  %v6285_v56 = vld [vmem:[#allocation79_spill] sm:$0xff]  ;;  %v6289_v13 = vld [vmem:[#allocation80_spill] sm:$0xff] }
 0x4e0   :  { %2032 = vmatpush1.msra.mxu1 %v6233_v35  ;;  %2109 = vmatpush1.msra.mxu0 %v6234_v23  ;;  %v6282_v35 = vunpack.c.l.bf16 %v4359_v25  ;;  %v6283_v23 = vld [vmem:[#allocation78_spill] sm:$0xff]  ;;  %v6288_v41 = vunpack.c.l.bf16 %v6285_v56  ;;  %v6291_v25 = vunpack.c.l.bf16 %v6289_v13 }
 0x4e1   :  { %2033 = vmatprep.subr.mxu1 %v6236_v2  ;;  %2110 = vmatprep.subr.mxu0 %v6238_v40  ;;  %v6284_v50 = vunpack.c.h.bf16 %v6283_v23  ;;  %v6286_v2 = vunpack.c.h.bf16 %v6285_v56  ;;  %v6287_v4 = vunpack.c.l.bf16 %v6283_v23  ;;  %v6290_v40 = vunpack.c.h.bf16 %v6289_v13  ;;  %v6337_v23 = vld [vmem:[#allocation96_spill] sm:$0xff] }
 0x4e2   :  { %2034 = vmatpush1.msra.mxu1 %v6239_v47  ;;  %2111 = vmatpush1.msra.mxu0 %v6240_v60  ;;  %v6292_v47 = vld [vmem:[#allocation81_spill] sm:$0xff]  ;;  %v6339_v56 = vunpack.c.l.bf16 %v6337_v23  ;;  %v6343_v13 = vunpack.c.h.bf16 %v4629_v10 }
 0x4e3   :  { %2035 = vmatprep.subr.mxu1 %v6242_v63  ;;  %2112 = vmatprep.subr.mxu0 %v6244_v45  ;;  %v6293_v60 = vunpack.c.h.bf16 %v6292_v47  ;;  %v6294_v61 = vunpack.c.l.bf16 %v6292_v47  ;;  %v6295_v63 = vld [vmem:[#allocation82_spill] sm:$0xff] }
 0x4e4   :  { %2036 = vmatpush1.msra.mxu1 %v6245_v49  ;;  %2113 = vmatpush1.msra.mxu0 %v6246_v52  ;;  %v6296_v39 = vunpack.c.h.bf16 %v6295_v63  ;;  %v6297_v45 = vunpack.c.l.bf16 %v6295_v63  ;;  %v6298_v49 = vld [vmem:[#allocation83_spill] sm:$0xff] }
 0x4e5   :  { %2037 = vmatprep.subr.mxu1 %v6248_v55  ;;  %2114 = vmatprep.subr.mxu0 %v6250_v36  ;;  %v6299_v52 = vunpack.c.h.bf16 %v6298_v49  ;;  %v6300_v42 = vunpack.c.l.bf16 %v6298_v49  ;;  %v6301_v55 = vld [vmem:[#allocation84_spill] sm:$0xff] }
 0x4e6   :  { %2038 = vmatpush1.msra.mxu1 %v6251_v31  ;;  %2115 = vmatpush1.msra.mxu0 %v6252_v59  ;;  %v6302_v43 = vunpack.c.h.bf16 %v6301_v55  ;;  %v6303_v36 = vunpack.c.l.bf16 %v6301_v55  ;;  %v6304_v31 = vld [vmem:[#allocation85_spill] sm:$0xff] }
 0x4e7   :  { %2039 = vmatprep.subr.mxu1 %v6254_v20  ;;  %2116 = vmatprep.subr.mxu0 %v6256_v3  ;;  %v6305_v59 = vunpack.c.h.bf16 %v6304_v31  ;;  %v6306_v6 = vunpack.c.l.bf16 %v6304_v31  ;;  %v6310_v3 = vld [vmem:[#allocation87_spill] sm:$0xff] }
 0x4e8   :  { %2040 = vmatpush1.msra.mxu1 %v6257_v18  ;;  %2117 = vmatpush1.msra.mxu0 %v6258_v19  ;;  %v6311_v18 = vunpack.c.h.bf16 %v6310_v3  ;;  %v6312_v19 = vunpack.c.l.bf16 %v6310_v3 }
 0x4e9   :  { %2041 = vmatprep.subr.mxu1 %v6260_v12  ;;  %2118 = vmatprep.subr.mxu0 %v6262_v51  ;;  %v6314_v12 = vunpack.c.h.bf16 %v6313_v5  ;;  %v6316_v51 = vld [vmem:[#allocation89_spill] sm:$0xff] }
 0x4ea   :  { %2042 = vmatpush1.msra.mxu1 %v6263_v9  ;;  %2119 = vmatpush1.msra.mxu0 %v6264_v16  ;;  %v6317_v9 = vunpack.c.h.bf16 %v6316_v51  ;;  %v6318_v16 = vunpack.c.l.bf16 %v6316_v51 }
 0x4eb   :  { %2622 = vmatprep.subr.msk.mxu1 %vm292_vm1, %v6266_v58  ;;  %2626 = vmatprep.subr.msk.mxu0 %vm292_vm1, %v6268_v37  ;;  %v6320_v58 = vunpack.c.h.bf16 %v6319_v27  ;;  %v6322_v37 = vld [vmem:[#allocation91_spill] sm:$0xff] }
 0x4ec   :  { %2623 = vmatpush2.msk.msra.mxu1 %vm292_vm1, %v6269_v48  ;;  %2627 = vmatpush2.msk.msra.mxu0 %vm292_vm1, %v6270_v57  ;;  %v6323_v48 = vunpack.c.h.bf16 %v6322_v37  ;;  %v6324_v57 = vunpack.c.l.bf16 %v6322_v37 }
 0x4ed   :  { %2067 = vmatprep.subr.mxu1 %v6271_v54  ;;  %2144 = vmatprep.subr.mxu0 %v6272_v0  ;;  %v6325_v54 = vld [vmem:[#allocation92_spill] sm:$0xff] }
 0x4ee   :  { %2068 = vmatpush2.msra.mxu1 %v6273_v30  ;;  %2145 = vmatpush2.msra.mxu0 %v6274_v15  ;;  %v6326_v0 = vunpack.c.h.bf16 %v6325_v54  ;;  %v6327_v30 = vunpack.c.l.bf16 %v6325_v54  ;;  %v6328_v15 = vld [vmem:[#allocation93_spill] sm:$0xff] }
 0x4ef   :  { %2069 = vmatprep.subr.mxu1 %v6275_v62  ;;  %2146 = vmatprep.subr.mxu0 %v6276_v21  ;;  %v6329_v62 = vunpack.c.h.bf16 %v6328_v15  ;;  %v6330_v21 = vunpack.c.l.bf16 %v6328_v15 }
 0x4f0   :  { %2070 = vmatpush2.msra.mxu1 %v6277_v28  ;;  %2147 = vmatpush2.msra.mxu0 %v6278_v7  ;;  %v6331_v28 = vld [vmem:[#allocation94_spill] sm:$0xff] }
 0x4f1   :  { %2071 = vmatprep.subr.mxu1 %v6279_v26  ;;  %2148 = vmatprep.subr.mxu0 %v6280_v8  ;;  %v6332_v7 = vunpack.c.h.bf16 %v6331_v28  ;;  %v6333_v26 = vunpack.c.l.bf16 %v6331_v28  ;;  %v6334_v8 = vld [vmem:[#allocation95_spill] sm:$0xff] }
 0x4f2   :  { %2072 = vmatpush2.msra.mxu1 %v6281_v24  ;;  %2149 = vmatpush2.msra.mxu0 %v6282_v35  ;;  %v6335_v24 = vunpack.c.h.bf16 %v6334_v8  ;;  %v6336_v35 = vunpack.c.l.bf16 %v6334_v8 }
 0x4f3   :  { %2073 = vmatprep.subr.mxu1 %v6284_v50  ;;  %2150 = vmatprep.subr.mxu0 %v6286_v2  ;;  %v6338_v50 = vunpack.c.h.bf16 %v6337_v23  ;;  %v6340_v2 = vunpack.c.h.bf16 %v4607_v11 }
 0x4f4   :  { %2074 = vmatpush2.msra.mxu1 %v6287_v4  ;;  %2151 = vmatpush2.msra.mxu0 %v6288_v41  ;;  %v6341_v4 = vunpack.c.l.bf16 %v4607_v11  ;;  %v6342_v41 = vunpack.c.h.bf16 %v4618_v44 }
 0x4f5   :  { %2076 = vmatmul.mubr.f32.vlgmr.msra.gmra.mxu1 %v4877_v29  ;;  %2153 = vmatmul.mubr.f32.vlgmr.msra.gmra.mxu0 %v4877_v29 }
 0x4f6   :  { %2165 = vmatprep.subr.mxu1 %v6290_v40  ;;  %2625 = vmatprep.mubr.msk.f32.mxu1 %vm577_vm2, %v4897_v46  ;;  %v6344_v40 = vunpack.c.l.bf16 %v4629_v10 }
 0x4f7   :  { %2629 = vmatprep.mubr.msk.f32.mxu0 %vm577_vm2, %v4897_v46  ;;  %2166 = vmatpush1.msra.mxu1 %v6291_v25  ;;  %v6345_v25 = vunpack.c.h.bf16 %v4642_v32 }
 0x4f8   :  { %2167 = vmatprep.subr.mxu1 %v6293_v60 }
 0x4f9   :  { %2168 = vmatpush1.msra.mxu1 %v6294_v61  ;;  %2159 = vmatmul.mubr.f32.gmra.mxu0 %v4895_v53 }
 0x4fa   :  { %2082 = vmatmul.mubr.f32.gmra.mxu1 %v4895_v53  ;;  %2169 = vmatprep.subr.mxu1 %v6296_v39 }
 0x4fb   :  { %2170 = vmatpush1.msra.mxu1 %v6297_v45  ;;  %2632 = vmatprep.mubr.msk.f32.mxu1 %vm577_vm2, %v4879_v34  ;;  %v6307_v34 = vld [vmem:[#allocation86_spill] sm:$0xff] }
 0x4fc   :  { %2171 = vmatprep.subr.mxu1 %v6299_v52  ;;  %2327 = vmatprep.mubr.f32.mxu0 %v2681_v22  ;;  %v6308_v20 = vunpack.c.h.bf16 %v6307_v34  ;;  %v6309_v33 = vunpack.c.l.bf16 %v6307_v34 }
 0x4fd   :  { %2172 = vmatpush1.msra.mxu1 %v6300_v42 }
 0x4fe   :  { %2173 = vmatprep.subr.mxu1 %v6302_v43 }
 0x4ff   :  { %2174 = vmatpush1.msra.mxu1 %v6303_v36 }
 0x500   :  { %2175 = vmatprep.subr.mxu1 %v6305_v59 }
 0x501   :  { %2176 = vmatpush1.msra.mxu1 %v6306_v6 }
 0x502   :  { %2177 = vmatprep.subr.mxu1 %v6308_v20 }
 0x503   :  { %2178 = vmatpush1.msra.mxu1 %v6309_v33 }
 0x504   :  { %2179 = vmatprep.subr.mxu1 %v6311_v18  ;;  %v2242_v18 = vld [vmem:[%s5389_s7] sm:$0xff] }
 0x505   :  { %2180 = vmatpush1.msra.mxu1 %v6312_v19  ;;  %v2243_v19 = vld [vmem:[%s5389_s7 + $0x8] sm:$0xff] }
 0x506   :  { %2181 = vmatprep.subr.mxu1 %v6314_v12  ;;  %v2249_v12 = vpop.permute.xlu0 %2248 }
 0x507   :  { %2182 = vmatpush1.msra.mxu1 %v6315_v14 }
 0x508   :  { %2183 = vmatprep.subr.mxu1 %v6317_v9 }
 0x509   :  { %2184 = vmatpush1.msra.mxu1 %v6318_v16 }
 0x50a   :  { %2185 = vmatprep.subr.mxu1 %v6320_v58  ;;  %v2254_v58 = vpop.permute.xlu1 %2253 }
 0x50b   :  { %2186 = vmatpush1.msra.mxu1 %v6321_v17 }
 0x50c   :  { %2187 = vmatprep.subr.mxu1 %v6323_v48 }
 0x50d   :  { %2188 = vmatpush1.msra.mxu1 %v6324_v57 }
 0x50e   :  { %2189 = vmatprep.subr.mxu1 %v6326_v0  ;;  %v2391_v0 = vld [vmem:[%s5391_s9 + $0x8] sm:$0xff] }
 0x50f   :  { %2190 = vmatpush1.msra.mxu1 %v6327_v30 }
 0x510   :  { %2191 = vmatprep.subr.mxu1 %v6329_v62 }
 0x511   :  { %2192 = vmatpush1.msra.mxu1 %v6330_v21 }
 0x512   :  { %2193 = vmatprep.subr.mxu1 %v6332_v7 }
 0x513   :  { %2194 = vmatpush1.msra.mxu1 %v6333_v26 }
 0x514   :  { %2195 = vmatprep.subr.mxu1 %v6335_v24 }
 0x515   :  { %2196 = vmatpush1.msra.mxu1 %v6336_v35 }
 0x516   :  { %2630 = vmatprep.subr.msk.mxu1 %vm292_vm1, %v6338_v50 }
 0x517   :  { %2631 = vmatpush2.msk.msra.mxu1 %vm292_vm1, %v6339_v56 }
 0x518   :  { %2221 = vmatprep.subr.mxu1 %v6340_v2 }
 0x519   :  { %2222 = vmatpush2.msra.mxu1 %v6341_v4 }
 0x51a   :  { %2223 = vmatprep.subr.mxu1 %v6342_v41 }
 0x51b   :  { %2224 = vmatpush2.msra.mxu1 %v1421_v38 }
 0x51c   :  { %2225 = vmatprep.subr.mxu1 %v6343_v13  ;;  %v2390_v13 = vld [vmem:[%s5391_s9] sm:$0xff]  ;;  %s2683_s9 = smov [#allocation2]  }
 0x51d   :  { %2226 = vmatpush2.msra.mxu1 %v6344_v40  ;;  %v2406_v40 = vld [vmem:[%s5392_s10] sm:$0xff] }
 0x51e   :  { %2227 = vmatprep.subr.mxu1 %v6345_v25  ;;  %v2407_v25 = vld [vmem:[%s5392_s10 + $0x8] sm:$0xff]  ;;  %s2443_s10 = sshll.u32 %s2683_s9, 4  ;;  %s2444_s10 = int_to_ptr.vmem [resolvable:$true] %s2443_s10 }
 0x51f   :  { %2228 = vmatpush2.msra.mxu1 %v1417_v1  ;;  %s2659_s4 = scalar_lea.vmem %s2444_s10, 512  ;;  %p2664_p1 = scmp.lt.s32.totalorder %s2444_s10, %s2444_s10 }
 0x520   :  { %2230 = vmatmul.mubr.f32.vlgmr.msra.gmra.mxu1 %v4877_v29  ;;  %p2660_p0 = scmp.ne.s32.totalorder %s2444_s10, %s2659_s4  ;;  %p2665_p2 = scmp.lt.s32.totalorder %s2659_s4, %s2659_s4 }
 0x521   :  { %2633 = vmatprep.mubr.msk.f32.mxu1 %vm577_vm2, %v4897_v46 }
 0x522   :  { %p2666_p3 = por %p2665_p2, %p2664_p1 }
 0x524   :  { %2236 = vmatmul.mubr.f32.gmra.mxu1 %v4895_v53  ;;  %p2667_p4 = pnand %p2666_p3, %p2660_p0 }
 0x55a   :  { %v1769_v38 = vpop.f32.mrf.mxu1  ;;  %v1846_v47 = vpop.f32.mrf.mxu0 }
 0x55c   :  { %v1771_v11 = vpop.f32.mrf.mxu1  ;;  %v1848_v61 = vpop.f32.mrf.mxu0 }
 0x560   :  { %v1775_v44 = vpop.f32.mrf.mxu1  ;;  %v1852_v39 = vpop.f32.mrf.mxu0 }
 0x562   :  { %v1777_v60 = vpop.f32.mrf.mxu1  ;;  %v1854_v49 = vpop.f32.mrf.mxu0 }
 0x587   :  { %v1923_v10 = vpop.f32.mrf.mxu1  ;;  %v2000_v32 = vpop.f32.mrf.mxu0 }
 0x589   :  { %v1925_v63 = vpop.f32.mrf.mxu1  ;;  %v2002_v29 = vpop.f32.mrf.mxu0 }
 0x58d   :  { %v1929_v45 = vpop.f32.mrf.mxu1  ;;  %v2006_v55 = vpop.f32.mrf.mxu0 }
 0x58f   :  { %v1931_v1 = vpop.f32.mrf.mxu1  ;;  %v2008_v43 = vpop.f32.mrf.mxu0 }
 0x5b5   :  { %v2077_v52 = vpop.f32.mrf.mxu1  ;;  %v2154_v53 = vpop.f32.mrf.mxu0 }
 0x5b7   :  { %v2079_v42 = vpop.f32.mrf.mxu1  ;;  %v2156_v59 = vpop.f32.mrf.mxu0 }
 0x5b9   :  { %v2160_v20 = vpop.f32.mrf.mxu0 }
 0x5ba   :  { %v2083_v46 = vpop.f32.mrf.mxu1 }
 0x5bb   :  { %v2162_v3 = vpop.f32.mrf.mxu0 }
 0x5bc   :  { %v2085_v36 = vpop.f32.mrf.mxu1 }
 0x5e0   :  { %v2231_v31 = vpop.f32.mrf.mxu1 }
 0x5e2   :  { %v2233_v6 = vpop.f32.mrf.mxu1 }
 0x5e4   :  { %v2237_v34 = vpop.f32.mrf.mxu1 }
 0x5e6   :  { %v2239_v33 = vpop.f32.mrf.mxu1 }
 0x5e7   :  { %2267 = vmatprep.subr.mxu0 %v2239_v33 }
 0x5e8   :  { %2268 = vmatpush1.msra.mxu0 %v2237_v34 }
 0x5e9   :  { %2269 = vmatprep.subr.mxu0 %v2233_v6 }
 0x5ea   :  { %2270 = vmatpush1.msra.mxu0 %v2231_v31 }
 0x5eb   :  { %2271 = vmatprep.subr.mxu0 %v2162_v3 }
 0x5ec   :  { %2272 = vmatpush1.msra.mxu0 %v2160_v20 }
 0x5ed   :  { %2273 = vmatprep.subr.mxu0 %v2156_v59 }
 0x5ee   :  { %2274 = vmatpush1.msra.mxu0 %v2154_v53 }
 0x5ef   :  { %2275 = vmatprep.subr.mxu0 %v2085_v36 }
 0x5f0   :  { %2276 = vmatpush1.msra.mxu0 %v2083_v46 }
 0x5f1   :  { %2277 = vmatprep.subr.mxu0 %v2079_v42 }
 0x5f2   :  { %2278 = vmatpush1.msra.mxu0 %v2077_v52 }
 0x5f3   :  { %2279 = vmatprep.subr.mxu0 %v2008_v43 }
 0x5f4   :  { %2280 = vmatpush1.msra.mxu0 %v2006_v55 }
 0x5f5   :  { %2281 = vmatprep.subr.mxu0 %v2002_v29 }
 0x5f6   :  { %2282 = vmatpush1.msra.mxu0 %v2000_v32 }
 0x5f7   :  { %2283 = vmatprep.subr.mxu0 %v1931_v1 }
 0x5f8   :  { %2284 = vmatpush1.msra.mxu0 %v1929_v45 }
 0x5f9   :  { %2285 = vmatprep.subr.mxu0 %v1925_v63 }
 0x5fa   :  { %2286 = vmatpush1.msra.mxu0 %v1923_v10 }
 0x5fb   :  { %2287 = vmatprep.subr.mxu0 %v1854_v49 }
 0x5fc   :  { %2288 = vmatpush1.msra.mxu0 %v1852_v39 }
 0x5fd   :  { %2289 = vmatprep.subr.mxu0 %v1848_v61 }
 0x5fe   :  { %2290 = vmatpush1.msra.mxu0 %v1846_v47 }
 0x5ff   :  { %2291 = vmatprep.subr.mxu0 %v1777_v60 }
 0x600   :  { %2292 = vmatpush1.msra.mxu0 %v1775_v44 }
 0x601   :  { %2293 = vmatprep.subr.mxu0 %v1771_v11 }
 0x602   :  { %2294 = vmatpush1.msra.mxu0 %v1769_v38 }
 0x603   :  { %2634 = vmatmul.mubr.msk.f32.vlgmr.msra.gmra.mxu0 %vm2256_vm12, %v2242_v18 }
 0x604   :  { %2333 = vmatprep.mubr.f32.mxu0 %v2681_v22 }
 0x607   :  { %2635 = vmatmul.mubr.msk.f32.gmra.mxu0 %vm2256_vm12, %v2243_v19 }
 0x6c3   :  { %v2329_v5 = vpop.f32.mrf.mxu0 }
 0x6c4   :  { %v2330_v9 = vadd.f32 %v2329_v5, %v2249_v12 }
 0x6c5   :  { %v2331_v14 = vpop.f32.mrf.mxu0 }
 0x6c6   :  { %v2332_v51 = vadd.f32 %v2331_v14, %v2249_v12 }
 0x6c7   :  { %v2335_v16 = vpop.f32.mrf.mxu0 }
 0x6c8   :  { %v2340_v27 = vsel %vm577_vm2, %v2332_v51, 0.0  ;;  %v2336_v57 = vadd.f32 %v2335_v16, %v2254_v58 }
 0x6c9   :  { %v2337_v17 = vpop.f32.mrf.mxu0  ;;  %v2341_v37 = vadd.f32 %v2340_v27, %v2330_v9 }
 0x6ca   :  { %v2338_v48 = vadd.f32 %v2337_v17, %v2254_v58 }
 0x6cb   :  { %2342 = vadd.xlane.f32.xlu1 %v2341_v37 }
 0x6cc   :  { %v2344_v22 = vsel %vm577_vm2, %v2338_v48, 0.0 }
 0x6cd   :  { %v2345_v54 = vadd.f32 %v2344_v22, %v2336_v57 }
 0x6cf   :  { %2346 = vadd.xlane.f32.xlu0 %v2345_v54 }
 0x6e5   :  { %2399 = vperm.xlu0 %2641, %v2391_v0  }
 0x754   :  { %v2343_v30 = vpop.xlane.xlu1 %2342 }
 0x755   :  { %v2348_v15 = vmul.f32 0.0061728396, %v2343_v30 }
 0x757   :  { %v2350_v62 = vsub.f32 %v2330_v9, %v2348_v15  ;;  %v2351_v21 = vsub.f32 %v2332_v51, %v2348_v15 }
 0x758   :  { %v2347_v28 = vpop.xlane.xlu0 %2346 }
 0x759   :  { %v2349_v7 = vmul.f32 0.0061728396, %v2347_v28  ;;  %v2354_v26 = vmul.f32 %v2350_v62, %v2350_v62  ;;  %v2355_v8 = vmul.f32 %v2351_v21, %v2351_v21 }
 0x75b   :  { %v2352_v24 = vsub.f32 %v2336_v57, %v2349_v7  ;;  %v2353_v35 = vsub.f32 %v2338_v48, %v2349_v7  ;;  %v2358_v23 = vsel %vm577_vm2, %v2355_v8, 0.0 }
 0x75c   :  { %v2359_v50 = vadd.f32 %v2358_v23, %v2354_v26 }
 0x75d   :  { %v2356_v56 = vmul.f32 %v2352_v24, %v2352_v24  ;;  %v2357_v2 = vmul.f32 %v2353_v35, %v2353_v35 }
 0x75e   :  { %2360 = vadd.xlane.f32.xlu1 %v2359_v50 }
 0x75f   :  { %v2362_v4 = vsel %vm577_vm2, %v2357_v2, 0.0 }
 0x760   :  { %v2363_v41 = vadd.f32 %v2362_v4, %v2356_v56  ;;  %v2400_v18 = vpop.permute.xlu0 %2399 }
 0x762   :  { %2364 = vadd.xlane.f32.xlu1 %v2363_v41 }
 0x773   :  { %2394 = vperm.xlu1 %2642, %v2390_v13  }
 0x777   :  { %2410 = vperm.xlu1 %2642, %v2406_v40  }
 0x77b   :  { %2415 = vperm.xlu1 %2642, %v2407_v25  }
 0x7e7   :  { %v2361_v38 = vpop.xlane.xlu1 %2360 }
 0x7e8   :  { %v2366_v11 = vmul.f32 0.0061728396, %v2361_v38 }
 0x7ea   :  { %v2368_v44 = vadd.f32 1e-05, %v2366_v11 }
 0x7eb   :  { %v2365_v47 = vpop.xlane.xlu1 %2364 }
 0x7ec   :  { %2651 = vrsqrt.f32 %v2368_v44  ;;  %v2367_v60 = vmul.f32 0.0061728396, %v2365_v47  ;;  %vm2372_vm13 = vcmp.eq.f32.partialorder %v2368_v44, inf  ;;  %v2375_v39 = vand.u32 2147483648, %v2368_v44 }
 0x7ed   :  { %vm2374_vm14 = vcmp.eq.f32.partialorder %v2368_v44, 0.0 }
 0x7ee   :  { %v2369_v10 = vadd.f32 1e-05, %v2367_v60 }
 0x7ef   :  { %v2395_v55 = vpop.permute.xlu1 %2394 }
 0x7f0   :  { %2653 = vrsqrt.f32 %v2369_v10  ;;  %vm2379_vm15 = vcmp.eq.f32.partialorder %v2369_v10, inf  ;;  %v2382_v52 = vand.u32 2147483648, %v2369_v10  ;;  %vm2381_vm0 = vcmp.eq.f32.partialorder %v2369_v10, 0.0 }
 0x7f3   :  { %v2411_v59 = vpop.permute.xlu1 %2410 }
 0x7f7   :  { %v2416_v16 = vpop.permute.xlu1 %2415 }
 0x7f9   :  { %v2652_v61 = vpop.eup %2651 }
 0x7fa   :  { %v2371_v63 = vmul.f32 %v2652_v61, %v2368_v44 }
 0x7fc   :  { %v2373_v45 = vsel %vm2372_vm13, %v2368_v44, %v2371_v63 }
 0x7fd   :  { %v2376_v49 = vsel %vm2374_vm14, %v2375_v39, %v2373_v45  ;;  %v2654_v32 = vpop.eup %2653 }
 0x7fe   :  { %2655 = vrcp.f32 %v2376_v49  ;;  %v2378_v1 = vmul.f32 %v2654_v32, %v2369_v10 }
 0x800   :  { %v2380_v29 = vsel %vm2379_vm15, %v2369_v10, %v2378_v1 }
 0x801   :  { %v2383_v42 = vsel %vm2381_vm0, %v2382_v52, %v2380_v29 }
 0x802   :  { %2657 = vrcp.f32 %v2383_v42 }
 0x80b   :  { %v2656_v46 = vpop.eup %2655 }
 0x80c   :  { %v2385_v43 = vmul.f32 %v2656_v46, %v2350_v62  ;;  %v2386_v53 = vmul.f32 %v2656_v46, %v2351_v21 }
 0x80e   :  { %v2402_v36 = vmul.f32 %v2395_v55, %v2385_v43  ;;  %v2403_v31 = vmul.f32 %v2395_v55, %v2386_v53 }
 0x80f   :  { %v2658_v6 = vpop.eup %2657 }
 0x810   :  { %v2418_v34 = vadd.f32 %v2411_v59, %v2402_v36  ;;  %v2419_v20 = vadd.f32 %v2411_v59, %v2403_v31  ;;  %v2388_v33 = vmul.f32 %v2658_v6, %v2352_v24  ;;  %v2389_v3 = vmul.f32 %v2658_v6, %v2353_v35 }
 0x812   :  { %vm2422_vm1 = vcmp.gt.f32.partialorder %v2418_v34, 0.0  ;;  %vm2423_vm3 = vcmp.gt.f32.partialorder %v2419_v20, 0.0  ;;  %v2426_v19 = vmul.f32 0.2, %v2418_v34  ;;  %v2427_v5 = vmul.f32 0.2, %v2419_v20 }
 0x813   :  { %v2404_v12 = vmul.f32 %v2400_v18, %v2388_v33  ;;  %v2405_v14 = vmul.f32 %v2400_v18, %v2389_v3 }
 0x814   :  { %v2430_v51 = vsel %vm2422_vm1, %v2418_v34, %v2426_v19  ;;  %v2431_v9 = vsel %vm2423_vm3, %v2419_v20, %v2427_v5 }
 0x815   :  { %2434 = vst [vmem:[#allocation2] sm:$0xff] %v2430_v51  ;;  %2435 = vst.msk [vmem:[#allocation2 + $0x8] sm:$0xff] %vm577_vm2, %v2431_v9  ;;  %v2420_v27 = vadd.f32 %v2416_v16, %v2404_v12  ;;  %v2421_v58 = vadd.f32 %v2416_v16, %v2405_v14 }
 0x817   :  { %vm2424_vm4 = vcmp.gt.f32.partialorder %v2420_v27, 0.0  ;;  %vm2425_vm5 = vcmp.gt.f32.partialorder %v2421_v58, 0.0  ;;  %v2428_v17 = vmul.f32 0.2, %v2420_v27  ;;  %v2429_v37 = vmul.f32 0.2, %v2421_v58 }
 0x819   :  { %v2432_v48 = vsel %vm2424_vm4, %v2420_v27, %v2428_v17  ;;  %v2433_v57 = vsel %vm2425_vm5, %v2421_v58, %v2429_v37 }
 0x81a   :  { %2436 = vst [vmem:[#allocation2 + $0x10] sm:$0xff] %v2432_v48  ;;  %2437 = vst.msk [vmem:[#allocation2 + $0x18] sm:$0xff] %vm577_vm2, %v2433_v57 }
 0x81b   :  { %2670 = shalt.err (!%p2667_p4)
}
 0x81c   :  { %s2684_s1 = smov 256   ;;  %s2685_s23 = smov 16  }
 0x81d   :  { %2449 = dma.vmem_to_hbm [thread:$0]  %s2444_s10, 512, %s5393_s11, [#allocation3], %s2684_s1, %s2684_s1, %s2685_s23  }
 0x81e   :  { %2679 = dma.done.wait [#allocation3], 512  }
 0x81f   :  { %2680 = vsyncadd [#allocation3], 4294966784 }
 0x820   :  { %2453 = vsyncpa [#allocation3], 1 }

</bundles_post_ra>
